<compile_context>
chip_gen: v5e
topology: v5e:2x2
jax: 0.10.0
libtpu: 0.0.40
codegen_flags: <defaults>
</compile_context>

<pallas_src>
import functools
import math

import jax
import jax.numpy as jnp
from jax import lax
from jax.experimental import pallas as pl
from jax.experimental.pallas import tpu as pltpu


# ----------------------------------------------------------------------------
# tiling helpers (caps sized for v7x's 64 MiB VMEM; also fine on v5e/v6e)
# ----------------------------------------------------------------------------
def _row_tile(m, max_rows=256):
    """Largest multiple-of-8 divisor of m that is <= max_rows and, when
    possible, leaves >= 2 grid steps (v7x shards parallel axes over 2 TCs).
    Falls back to the full dim for awkward m (single block; documented)."""
    cap = min(max_rows, m // 2) if m >= 16 else min(max_rows, m)
    best = None
    for t in range(8, cap + 1, 8):
        if m % t == 0:
            best = t
    return best if best is not None else m


def _col_tile(n, max_cols=2048):
    """Largest multiple-of-128 divisor of n that is <= max_cols, else n."""
    if n <= max_cols:
        return n
    best = None
    for t in range(128, max_cols + 1, 128):
        if n % t == 0:
            best = t
    return best if best is not None else n


# ----------------------------------------------------------------------------
# positional encoding table (same math as the PyTorch __init__)
# ----------------------------------------------------------------------------
def build_pe_table(max_len, d_model):
    position = jnp.arange(0.0, max_len, dtype=jnp.float32)[:, None]
    div_term = jnp.exp(jnp.arange(0.0, d_model, 2, dtype=jnp.float32)
                       * -(math.log(10000.0) / d_model))
    pe = jnp.zeros((max_len, d_model), jnp.float32)
    pe = pe.at[:, 0::2].set(jnp.sin(position * div_term))
    pe = pe.at[:, 1::2].set(jnp.cos(position * div_term))
    return pe


# ----------------------------------------------------------------------------
# fused linear kernel:  y = act(x @ w + b)  [+ residual + LayerNorm]  [column-split]
# ----------------------------------------------------------------------------
_GELU_C = math.sqrt(2.0 / math.pi)


def _gelu(x):
    # exact tanh-GELU from the reference module (f32 math)
    return 0.5 * x * (1.0 + jnp.tanh(_GELU_C * (x + 0.044715 * x * x * x)))


def _make_linear_kernel(split_sizes, activation, fuse_ln, eps):
    n_out = len(split_sizes)
    n_in = 6 if fuse_ln else 3

    def kernel(*refs):
        in_refs = refs[:n_in]
        out_refs = refs[n_in:n_in + n_out]
        acc_ref = refs[n_in + n_out]
        x_ref, w_ref, b_ref = in_refs[:3]

        k = pl.program_id(2)

        @pl.when(k == 0)
        def _init():
            acc_ref[...] = jnp.zeros_like(acc_ref)

        acc_ref[...] += jnp.dot(x_ref[...], w_ref[...],
                                preferred_element_type=jnp.float32)

        @pl.when(k == pl.num_programs(2) - 1)
        def _finalize():
            acc = acc_ref[...] + b_ref[...].astype(jnp.float32)
            if activation == "gelu":
                acc = _gelu(acc)
            if fuse_ln:  # residual add + LayerNorm fused on the f32 accumulator
                res_ref, g_ref, beta_ref = in_refs[3:6]
                y = acc + res_ref[...].astype(jnp.float32)
                mean = jnp.mean(y, axis=-1, keepdims=True)
                var = jnp.mean(jnp.square(y - mean), axis=-1, keepdims=True)
                acc = ((y - mean) * lax.rsqrt(var + eps)
                       * g_ref[...].astype(jnp.float32)
                       + beta_ref[...].astype(jnp.float32))
            off = 0
            for o_ref, sz in zip(out_refs, split_sizes):
                o_ref[...] = acc[:, off:off + sz].astype(o_ref.dtype)
                off += sz

    return kernel


def fused_linear(x, w, b, *, split_sizes=None, activation=None,
                 residual=None, gamma=None, beta=None, eps=1e-5,
                 out_dtype=None, mm_dtype=None,
                 max_rows=256, max_cols=2048, max_k=512):
    """x: (M, K); w: (K, N); b: (1, N); residual/gamma/beta: (M, N)/(1, N).

    * split_sizes=(n1, n2, ...)   -> fused QKV-style column split (no N tiling)
    * residual/gamma/beta given   -> fused residual + LayerNorm (no N tiling)
    * otherwise                   -> plain matmul(+gelu) with M/N/K tiling
    * mm_dtype=jnp.bfloat16 casts the matmul operands only (accumulate in f32).
    """
    M, K = x.shape
    N = w.shape[1]
    fuse_ln = residual is not None
    if fuse_ln:
        assert gamma is not None and beta is not None
    if split_sizes is None:
        split_sizes = (N,)
    split_sizes = tuple(split_sizes)
    multi = len(split_sizes) > 1
    assert sum(split_sizes) == N
    assert not (fuse_ln and multi)

    if out_dtype is None:
        out_dtype = x.dtype
    if mm_dtype is not None:
        x = x.astype(mm_dtype)
        w = w.astype(mm_dtype)

    tm = _row_tile(M, max_rows)
    tn = N if (fuse_ln or multi) else _col_tile(N, max_cols)
    tk = _col_tile(K, max_k)
    grid = (M // tm, N // tn, K // tk)

    in_specs = [
        pl.BlockSpec((tm, tk), lambda i, j, k: (i, k)),
        pl.BlockSpec((tk, tn), lambda i, j, k: (k, j)),
        pl.BlockSpec((1, tn), lambda i, j, k: (0, j)),
    ]
    args = [x, w, b]
    if fuse_ln:
        in_specs += [
            pl.BlockSpec((tm, N), lambda i, j, k: (i, 0)),
            pl.BlockSpec((1, N), lambda i, j, k: (0, 0)),
            pl.BlockSpec((1, N), lambda i, j, k: (0, 0)),
        ]
        args += [residual, gamma, beta]

    if multi:
        kernel_splits = split_sizes
        out_shape = tuple(jax.ShapeDtypeStruct((M, sz), out_dtype)
                          for sz in split_sizes)
        out_specs = tuple(pl.BlockSpec((tm, sz), lambda i, j, k: (i, j))
                          for sz in split_sizes)
    else:
        kernel_splits = (tn,)
        out_shape = (jax.ShapeDtypeStruct((M, N), out_dtype),)
        out_specs = (pl.BlockSpec((tm, tn), lambda i, j, k: (i, j)),)

    outs = pl.pallas_call(
        _make_linear_kernel(kernel_splits, activation, fuse_ln, eps),
        out_shape=out_shape,
        grid_spec=pltpu.PrefetchScalarGridSpec(
            num_scalar_prefetch=0,
            grid=grid,
            in_specs=in_specs,
            out_specs=out_specs,
            scratch_shapes=[pltpu.VMEM((tm, tn), jnp.float32)]),
        compiler_params=pltpu.CompilerParams(
            dimension_semantics=("parallel", "parallel", "arbitrary")),
    )(*args)
    if not multi:
        return outs[0] if isinstance(outs, (tuple, list)) else outs
    return outs


# ----------------------------------------------------------------------------
# attention core: heads stay packed in the lane dim, grid = (batch, Sq-tiles)
# ----------------------------------------------------------------------------
def _make_attention_kernel(n_heads, d_k, d_v):
    def kernel(q_ref, k_ref, v_ref, ctx_ref, attn_ref):
        q = q_ref[...]          # (tq, H*dk) -- 1/sqrt(dk) already folded into WQ
        k = k_ref[...]          # (Sk, H*dk)
        v = v_ref[...]          # (Sk, H*dv)
        ctx_parts = []
        for h in range(n_heads):          # static unroll: all heads share the step
            qh = q[:, h * d_k:(h + 1) * d_k]
            kh = k[:, h * d_k:(h + 1) * d_k]
            vh = v[:, h * d_v:(h + 1) * d_v]
            s = lax.dot_general(qh, kh, (((1,), (1,)), ((), ())),
                                preferred_element_type=jnp.float32)   # (tq, Sk)
            m = jnp.max(s, axis=-1, keepdims=True)
            e = jnp.exp(s - m)
            denom = jnp.sum(e, axis=-1, keepdims=True)
            inv = pl.reciprocal(denom, approx=True)   # EUP slot, off the VALU
            inv = inv * (2.0 - denom * inv)           # one Newton step, O(tq) only
            p = e * inv
            attn_ref[h] = p.astype(attn_ref.dtype)    # direct (B,H,Sq,Sk) layout
            ctx_parts.append(jnp.dot(p.astype(v.dtype), vh,
                                     preferred_element_type=jnp.float32))
        ctx_ref[...] = jnp.concatenate(ctx_parts, axis=-1).astype(ctx_ref.dtype)

    return kernel


def attention_core(q, k, v, *, n_heads, d_k, d_v, attn_dtype=jnp.float32,
                   max_q_rows=256):
    """q: (B, Sq, H*dk); k: (B, Sk, H*dk); v: (B, Sk, H*dv) -- head-packed
    straight out of the fused QKV projection (no wrapper transposes).
    Returns ctx (B, Sq, H*dv) and attn (B, H, Sq, Sk).
    Sk is not tiled because the module returns the full attention maps; the
    (B, Sq-tile) grid bounds per-step VMEM (for very large H*Sk, add a
    head-group grid axis)."""
    B, Sq, _ = q.shape
    Sk = k.shape[1]
    tq = _row_tile(Sq, max_q_rows)
    grid = (B, Sq // tq)
    ctx, attn = pl.pallas_call(
        _make_attention_kernel(n_heads, d_k, d_v),
        out_shape=(jax.ShapeDtypeStruct((B, Sq, n_heads * d_v), q.dtype),
                   jax.ShapeDtypeStruct((B, n_heads, Sq, Sk), attn_dtype)),
        grid_spec=pltpu.PrefetchScalarGridSpec(
            num_scalar_prefetch=0,
            grid=grid,
            in_specs=[
                pl.BlockSpec((None, tq, n_heads * d_k), lambda b, i: (b, i, 0)),
                pl.BlockSpec((None, Sk, n_heads * d_k), lambda b, i: (b, 0, 0)),
                pl.BlockSpec((None, Sk, n_heads * d_v), lambda b, i: (b, 0, 0)),
            ],
            out_specs=(
                pl.BlockSpec((None, tq, n_heads * d_v), lambda b, i: (b, i, 0)),
                pl.BlockSpec((None, n_heads, tq, Sk), lambda b, i: (b, 0, i, 0)),
            )),
        compiler_params=pltpu.CompilerParams(
            dimension_semantics=("parallel", "parallel")),
    )(q, k, v)
    return ctx, attn


# ----------------------------------------------------------------------------
# module-level wrappers (layout plumbing only; reshapes are free)
# ----------------------------------------------------------------------------
def mha_self(x, p, *, n_heads, d_k, d_v, mm_dtype):
    B, S, D = x.shape
    nq, nv = n_heads * d_k, n_heads * d_v
    x2 = x.reshape(B * S, D)
    q, k, v = fused_linear(x2, p["w_qkv"], p["b_qkv"],
                           split_sizes=(nq, nq, nv),
                           out_dtype=mm_dtype, mm_dtype=mm_dtype)
    ctx, attn = attention_core(q.reshape(B, S, nq), k.reshape(B, S, nq),
                               v.reshape(B, S, nv),
                               n_heads=n_heads, d_k=d_k, d_v=d_v)
    out = fused_linear(ctx.reshape(B * S, nv), p["wo"], p["bo"],
                       residual=x2, gamma=p["ln_g"], beta=p["ln_b"],
                       out_dtype=x.dtype, mm_dtype=mm_dtype)
    return out.reshape(B, S, D), attn


def mha_cross(x, kv, p, *, n_heads, d_k, d_v, mm_dtype):
    B, Sq, D = x.shape
    Sk = kv.shape[1]
    nq, nv = n_heads * d_k, n_heads * d_v
    x2 = x.reshape(B * Sq, D)
    kv2 = kv.reshape(B * Sk, D)
    q = fused_linear(x2, p["w_q"], p["b_q"], out_dtype=mm_dtype, mm_dtype=mm_dtype)
    k, v = fused_linear(kv2, p["w_kv"], p["b_kv"], split_sizes=(nq, nv),
                        out_dtype=mm_dtype, mm_dtype=mm_dtype)
    ctx, attn = attention_core(q.reshape(B, Sq, nq), k.reshape(B, Sk, nq),
                               v.reshape(B, Sk, nv),
                               n_heads=n_heads, d_k=d_k, d_v=d_v)
    out = fused_linear(ctx.reshape(B * Sq, nv), p["wo"], p["bo"],
                       residual=x2, gamma=p["ln_g"], beta=p["ln_b"],
                       out_dtype=x.dtype, mm_dtype=mm_dtype)
    return out.reshape(B, Sq, D), attn


def poswise_ffn(x, p, *, mm_dtype):
    B, S, D = x.shape
    x2 = x.reshape(B * S, D)
    h = fused_linear(x2, p["w1"], p["b1"], activation="gelu",
                     out_dtype=mm_dtype, mm_dtype=mm_dtype)
    out = fused_linear(h, p["w2"], p["b2"],
                       residual=x2, gamma=p["ln_g"], beta=p["ln_b"],
                       out_dtype=x.dtype, mm_dtype=mm_dtype)
    return out.reshape(B, S, D)


def decoder_forward(kparams, dec_inputs, enc_inputs, enc_outputs, pe,
                    *, n_heads, d_k, d_v, mm_dtype=jnp.float32):
    # enc_inputs mirrors the PyTorch signature but the reference forward never
    # uses it (this Decoder applies no attention masks).
    del enc_inputs
    B, S, D = dec_inputs.shape
    # Positional encoding: trivially mem-bound broadcast add; left to XLA per
    # perf review (avoids a B-sublane pallas_call + extra HBM round-trip).
    # Dropout p=0 -> identity.
    x = dec_inputs + pe[:S][None, :, :].astype(dec_inputs.dtype)
    self_attns, enc_attns = [], []
    for lp in kparams["layers"]:
        x, sa = mha_self(x, lp["self_attn"], n_heads=n_heads, d_k=d_k, d_v=d_v,
                         mm_dtype=mm_dtype)
        x, ca = mha_cross(x, enc_outputs, lp["enc_attn"], n_heads=n_heads,
                          d_k=d_k, d_v=d_v, mm_dtype=mm_dtype)
        x = poswise_ffn(x, lp["ffn"], mm_dtype=mm_dtype)
        self_attns.append(sa)
        enc_attns.append(ca)
    # attn maps already come out as (B, H, Sq, Sk); stack on axis=1 gives the
    # module's (B, L, H, Sq, Sk) without a separate full-tensor permute.
    return x, jnp.stack(self_attns, axis=1), jnp.stack(enc_attns, axis=1)


# ----------------------------------------------------------------------------
# parameter init (nn.Linear-style uniform ranges) + kernel-layout preparation
# ----------------------------------------------------------------------------
def _init_linear(key, d_in, d_out):
    kw, kb = jax.random.split(key)
    bound = 1.0 / math.sqrt(d_in)
    w = jax.random.uniform(kw, (d_in, d_out), jnp.float32, -bound, bound)
    b = jax.random.uniform(kb, (1, d_out), jnp.float32, -bound, bound)
    return w, b


def _init_mha(key, d_model, d_k, d_v, n_heads):
    ks = jax.random.split(key, 4)
    wq, bq = _init_linear(ks[0], d_model, d_k * n_heads)
    wk, bk = _init_linear(ks[1], d_model, d_k * n_heads)
    wv, bv = _init_linear(ks[2], d_model, d_v * n_heads)
    wo, bo = _init_linear(ks[3], d_v * n_heads, d_model)
    return dict(wq=wq, bq=bq, wk=wk, bk=bk, wv=wv, bv=bv, wo=wo, bo=bo,
                ln_g=jnp.ones((1, d_model), jnp.float32),
                ln_b=jnp.zeros((1, d_model), jnp.float32))


def _init_ffn(key, d_model, d_ff):
    k1, k2 = jax.random.split(key)
    w1, b1 = _init_linear(k1, d_model, d_ff)
    w2, b2 = _init_linear(k2, d_ff, d_model)
    return dict(w1=w1, b1=b1, w2=w2, b2=b2,
                ln_g=jnp.ones((1, d_model), jnp.float32),
                ln_b=jnp.zeros((1, d_model), jnp.float32))


def init_decoder_params(key, d_model, d_ff, d_k, d_v, n_heads, n_layers):
    layers = []
    for _ in range(n_layers):
        key, k1, k2, k3 = jax.random.split(key, 4)
        layers.append(dict(self_attn=_init_mha(k1, d_model, d_k, d_v, n_heads),
                           enc_attn=_init_mha(k2, d_model, d_k, d_v, n_heads),
                           ffn=_init_ffn(k3, d_model, d_ff)))
    return dict(layers=layers)


def prepare_decoder_params(params, *, d_k):
    """One-time repack: concat Q|K|V (K|V) weights and fold 1/sqrt(d_k) into WQ."""
    scale = 1.0 / math.sqrt(d_k)
    layers = []
    for lp in params["layers"]:
        sa, ea, ff = lp["self_attn"], lp["enc_attn"], lp["ffn"]
        layers.append(dict(
            self_attn=dict(
                w_qkv=jnp.concatenate([sa["wq"] * scale, sa["wk"], sa["wv"]], axis=1),
                b_qkv=jnp.concatenate([sa["bq"] * scale, sa["bk"], sa["bv"]], axis=1),
                wo=sa["wo"], bo=sa["bo"], ln_g=sa["ln_g"], ln_b=sa["ln_b"]),
            enc_attn=dict(
                w_q=ea["wq"] * scale, b_q=ea["bq"] * scale,
                w_kv=jnp.concatenate([ea["wk"], ea["wv"]], axis=1),
                b_kv=jnp.concatenate([ea["bk"], ea["bv"]], axis=1),
                wo=ea["wo"], bo=ea["bo"], ln_g=ea["ln_g"], ln_b=ea["ln_b"]),
            ffn=dict(ff)))
    return dict(layers=layers)


# ----------------------------------------------------------------------------
# pure-JAX reference (correctness check only)
# ----------------------------------------------------------------------------
def _ref_ln(x, g, b, eps=1e-5):
    m = x.mean(-1, keepdims=True)
    v = jnp.square(x - m).mean(-1, keepdims=True)
    return (x - m) / jnp.sqrt(v + eps) * g + b


def _ref_gelu(x):
    return 0.5 * x * (1.0 + jnp.tanh(math.sqrt(2.0 / math.pi)
                                     * (x + 0.044715 * x ** 3)))


def _ref_mha(Q, K, V, p, n_heads, d_k, d_v):
    B, Sq, D = Q.shape
    Sk = K.shape[1]
    q = (Q.reshape(-1, D) @ p["wq"] + p["bq"]).reshape(B, Sq, n_heads, d_k).transpose(0, 2, 1, 3)
    k = (K.reshape(-1, D) @ p["wk"] + p["bk"]).reshape(B, Sk, n_heads, d_k).transpose(0, 2, 1, 3)
    v = (V.reshape(-1, D) @ p["wv"] + p["bv"]).reshape(B, Sk, n_heads, d_v).transpose(0, 2, 1, 3)
    s = jnp.einsum("bhqd,bhkd->bhqk", q, k) / math.sqrt(d_k)
    a = jax.nn.softmax(s, axis=-1)
    c = jnp.einsum("bhqk,bhkd->bhqd", a, v).transpose(0, 2, 1, 3).reshape(B * Sq, n_heads * d_v)
    o = (c @ p["wo"] + p["bo"]).reshape(B, Sq, D)
    return _ref_ln(o + Q, p["ln_g"], p["ln_b"]), a


def _ref_decoder(params, dec_inputs, enc_outputs, pe, n_heads, d_k, d_v):
    B, S, D = dec_inputs.shape
    x = dec_inputs + pe[None, :S, :]
    sas, cas = [], []
    for lp in params["layers"]:
        x, sa = _ref_mha(x, x, x, lp["self_attn"], n_heads, d_k, d_v)
        x, ca = _ref_mha(x, enc_outputs, enc_outputs, lp["enc_attn"], n_heads, d_k, d_v)
        p = lp["ffn"]
        x2 = x.reshape(-1, D)
        h = _ref_gelu(x2 @ p["w1"] + p["b1"])
        o = h @ p["w2"] + p["b2"]
        x = _ref_ln(o + x2, p["ln_g"], p["ln_b"]).reshape(B, S, D)
        sas.append(sa)
        cas.append(ca)
    return (x,
            jnp.stack(sas).transpose(1, 0, 2, 3, 4),
            jnp.stack(cas).transpose(1, 0, 2, 3, 4))


# ----------------------------------------------------------------------------
if __name__ == "__main__":
    D_MODEL, D_FF, D_K, D_V, N_HEADS, N_LAYERS = 32, 64, 8, 8, 4, 2
    B, S_DEC, S_ENC = 2, 8, 8
    MAX_LEN = 64  # stands in for max_len=5000 at small scale

    key = jax.random.PRNGKey(0)
    k_in, k_enc_in, k_enc_out, k_params = jax.random.split(key, 4)
    dec_inputs = jax.random.normal(k_in, (B, S_DEC, D_MODEL), jnp.float32)
    enc_inputs = jax.random.normal(k_enc_in, (B, S_ENC, D_MODEL), jnp.float32)
    enc_outputs = jax.random.normal(k_enc_out, (B, S_ENC, D_MODEL), jnp.float32)

    params = init_decoder_params(k_params, D_MODEL, D_FF, D_K, D_V, N_HEADS, N_LAYERS)
    kparams = prepare_decoder_params(params, d_k=D_K)
    pe = build_pe_table(MAX_LEN, D_MODEL)

    # mm_dtype=jnp.float32 keeps the check against the f32 reference tight.
    # For production on v5e/v6e/v7x pass mm_dtype=jnp.bfloat16: matmul operands
    # drop to bf16 (256-wide MXU, half the HBM/VMEM bytes) while LN / softmax /
    # GELU accumulate in f32.
    fwd = jax.jit(functools.partial(decoder_forward, n_heads=N_HEADS,
                                    d_k=D_K, d_v=D_V, mm_dtype=jnp.float32))
    dec_out, self_attns, enc_attns = fwd(kparams, dec_inputs, enc_inputs,
                                         enc_outputs, pe)
    jax.block_until_ready((dec_out, self_attns, enc_attns))

    # sanity check vs pure-JAX reference
    r_out, r_sa, r_ca = _ref_decoder(params, dec_inputs, enc_outputs, pe,
                                     N_HEADS, D_K, D_V)
    assert dec_out.shape == (B, S_DEC, D_MODEL)
    assert self_attns.shape == (B, N_LAYERS, N_HEADS, S_DEC, S_DEC)
    assert enc_attns.shape == (B, N_LAYERS, N_HEADS, S_DEC, S_ENC)
    assert jnp.allclose(dec_out, r_out, atol=1e-3, rtol=1e-3), "dec_outputs mismatch"
    assert jnp.allclose(self_attns, r_sa, atol=1e-3, rtol=1e-3), "self-attn mismatch"
    assert jnp.allclose(enc_attns, r_ca, atol=1e-3, rtol=1e-3), "enc-attn mismatch"

    print("KERNEL_OK")
</pallas_src>

<mosaic_0001>
module attributes {stable_mosaic.version = 11 : i64} {
  func.func @kernel(%arg0: i32, %arg1: i32, %arg2: i32, %arg3: memref<8x32xf32, #tpu.memory_space<vmem>>, %arg4: memref<32x64xf32, #tpu.memory_space<vmem>>, %arg5: memref<1x64xf32, #tpu.memory_space<vmem>>, %arg6: memref<8x32xf32, #tpu.memory_space<vmem>>, %arg7: memref<8x32xf32, #tpu.memory_space<vmem>>, %arg8: memref<8x64xf32, #tpu.memory_space<vmem>>) attributes {dimension_semantics = [#tpu.dimension_semantics<parallel>, #tpu.dimension_semantics<parallel>, #tpu.dimension_semantics<arbitrary>], iteration_bounds = array<i64: 2, 1, 1>, scalar_prefetch = 0 : i64, scratch_operands = 1 : i64, tpu.core_type = #tpu.core_type<tc>, window_params = [{transform_indices = @transform_0, window_bounds = array<i64: 8, 32>}, {transform_indices = @transform_1, window_bounds = array<i64: 32, 64>}, {transform_indices = @transform_2, window_bounds = array<i64: 1, 64>}, {transform_indices = @transform_3, window_bounds = array<i64: 8, 32>}, {transform_indices = @transform_4, window_bounds = array<i64: 8, 32>}]} {
    %c0_i32 = arith.constant 0 : i32
    %0 = arith.cmpi eq, %arg2, %c0_i32 : i32
    %1 = arith.extui %0 : i1 to i32
    %c0_i32_0 = arith.constant 0 : i32
    %2 = arith.cmpi ne, %1, %c0_i32_0 : i32
    scf.if %2 {
      %cst_10 = arith.constant 0.000000e+00 : f32
      %12 = vector.broadcast %cst_10 : f32 to vector<8x64xf32>
      %c0_11 = arith.constant 0 : index
      %c0_12 = arith.constant 0 : index
      %13 = vector.load %arg8[%c0_11, %c0_12] : memref<8x64xf32, #tpu.memory_space<vmem>>, vector<8x64xf32>
      tpu.vector_store %arg8[%c0_11, %c0_12], %12 {strides = array<i32>} : memref<8x64xf32, #tpu.memory_space<vmem>>, vector<8x64xf32>,
    } else {
    }
    %c0 = arith.constant 0 : index
    %c0_1 = arith.constant 0 : index
    %3 = vector.load %arg8[%c0, %c0_1] : memref<8x64xf32, #tpu.memory_space<vmem>>, vector<8x64xf32>
    %c0_2 = arith.constant 0 : index
    %c0_3 = arith.constant 0 : index
    %4 = vector.load %arg3[%c0_2, %c0_3] : memref<8x32xf32, #tpu.memory_space<vmem>>, vector<8x32xf32>
    %c0_4 = arith.constant 0 : index
    %c0_5 = arith.constant 0 : index
    %5 = vector.load %arg4[%c0_4, %c0_5] : memref<32x64xf32, #tpu.memory_space<vmem>>, vector<32x64xf32>
    %cst = arith.constant dense<0.000000e+00> : vector<8x64xf32>
    %6 = tpu.matmul %4, %5, %cst {dimension_numbers = #tpu.dot_dimension_numbers<[1], [0], [0], [1], [0, 0, 1, 1], [], []>} : vector<8x32xf32>, vector<32x64xf32>, vector<8x64xf32> -> vector<8x64xf32>
    %7 = arith.addf %3, %6 : vector<8x64xf32>
    %c0_6 = arith.constant 0 : index
    %c0_7 = arith.constant 0 : index
    %8 = vector.load %arg8[%c0_6, %c0_7] : memref<8x64xf32, #tpu.memory_space<vmem>>, vector<8x64xf32>
    tpu.vector_store %arg8[%c0_6, %c0_7], %7 {strides = array<i32>} : memref<8x64xf32, #tpu.memory_space<vmem>>, vector<8x64xf32>,
    %c0_i32_8 = arith.constant 0 : i32
    %9 = arith.cmpi eq, %arg2, %c0_i32_8 : i32
    %10 = arith.extui %9 : i1 to i32
    %c0_i32_9 = arith.constant 0 : i32
    %11 = arith.cmpi ne, %10, %c0_i32_9 : i32
    scf.if %11 {
      %c0_10 = arith.constant 0 : index
      %c0_11 = arith.constant 0 : index
      %12 = vector.load %arg8[%c0_10, %c0_11] : memref<8x64xf32, #tpu.memory_space<vmem>>, vector<8x64xf32>
      %c0_12 = arith.constant 0 : index
      %c0_13 = arith.constant 0 : index
      %13 = vector.load %arg5[%c0_12, %c0_13] : memref<1x64xf32, #tpu.memory_space<vmem>>, vector<1x64xf32>
      %14 = vector.broadcast %13 : vector<1x64xf32> to vector<8x64xf32>
      %15 = arith.addf %12, %14 : vector<8x64xf32>
      %16 = vector.extract_strided_slice %15 {offsets = [0, 0], sizes = [8, 32], strides = [1, 1]} : vector<8x64xf32> to vector<8x32xf32>
      %c0_14 = arith.constant 0 : index
      %c0_15 = arith.constant 0 : index
      %17 = vector.load %arg6[%c0_14, %c0_15] : memref<8x32xf32, #tpu.memory_space<vmem>>, vector<8x32xf32>
      tpu.vector_store %arg6[%c0_14, %c0_15], %16 {strides = array<i32>} : memref<8x32xf32, #tpu.memory_space<vmem>>, vector<8x32xf32>,
      %18 = vector.extract_strided_slice %15 {offsets = [0, 32], sizes = [8, 32], strides = [1, 1]} : vector<8x64xf32> to vector<8x32xf32>
      %c0_16 = arith.constant 0 : index
      %c0_17 = arith.constant 0 : index
      %19 = vector.load %arg7[%c0_16, %c0_17] : memref<8x32xf32, #tpu.memory_space<vmem>>, vector<8x32xf32>
      tpu.vector_store %arg7[%c0_16, %c0_17], %18 {strides = array<i32>} : memref<8x32xf32, #tpu.memory_space<vmem>>, vector<8x32xf32>,
    } else {
    }
    return
  }
  func.func @transform_0(%arg0: i32, %arg1: i32, %arg2: i32) -> (i32, i32) {
    %c0_i32 = arith.constant 0 : i32
    return %arg0, %arg2 : i32, i32
  }
  func.func @transform_1(%arg0: i32, %arg1: i32, %arg2: i32) -> (i32, i32) {
    %c0_i32 = arith.constant 0 : i32
    return %arg2, %arg1 : i32, i32
  }
  func.func @transform_2(%arg0: i32, %arg1: i32, %arg2: i32) -> (i32, i32) {
    %c0_i32 = arith.constant 0 : i32
    %c0_i32_0 = arith.constant 0 : i32
    return %c0_i32, %arg1 : i32, i32
  }
  func.func @transform_3(%arg0: i32, %arg1: i32, %arg2: i32) -> (i32, i32) {
    %c0_i32 = arith.constant 0 : i32
    return %arg0, %arg1 : i32, i32
  }
  func.func @transform_4(%arg0: i32, %arg1: i32, %arg2: i32) -> (i32, i32) {
    %c0_i32 = arith.constant 0 : i32
    return %arg0, %arg1 : i32, i32
  }
}

module attributes {stable_mosaic.version = 11 : i64} {
  func.func @kernel(%arg0: i32, %arg1: i32, %arg2: i32, %arg3: memref<8x32xf32, #tpu.memory_space<vmem>>, %arg4: memref<32x96xf32, #tpu.memory_space<vmem>>, %arg5: memref<1x96xf32, #tpu.memory_space<vmem>>, %arg6: memref<8x32xf32, #tpu.memory_space<vmem>>, %arg7: memref<8x32xf32, #tpu.memory_space<vmem>>, %arg8: memref<8x32xf32, #tpu.memory_space<vmem>>, %arg9: memref<8x96xf32, #tpu.memory_space<vmem>>) attributes {dimension_semantics = [#tpu.dimension_semantics<parallel>, #tpu.dimension_semantics<parallel>, #tpu.dimension_semantics<arbitrary>], iteration_bounds = array<i64: 2, 1, 1>, scalar_prefetch = 0 : i64, scratch_operands = 1 : i64, tpu.core_type = #tpu.core_type<tc>, window_params = [{transform_indices = @transform_0, window_bounds = array<i64: 8, 32>}, {transform_indices = @transform_1, window_bounds = array<i64: 32, 96>}, {transform_indices = @transform_2, window_bounds = array<i64: 1, 96>}, {transform_indices = @transform_3, window_bounds = array<i64: 8, 32>}, {transform_indices = @transform_4, window_bounds = array<i64: 8, 32>}, {transform_indices = @transform_5, window_bounds = array<i64: 8, 32>}]} {
    %c0_i32 = arith.constant 0 : i32
    %0 = arith.cmpi eq, %arg2, %c0_i32 : i32
    %1 = arith.extui %0 : i1 to i32
    %c0_i32_0 = arith.constant 0 : i32
    %2 = arith.cmpi ne, %1, %c0_i32_0 : i32
    scf.if %2 {
      %cst_10 = arith.constant 0.000000e+00 : f32
      %12 = vector.broadcast %cst_10 : f32 to vector<8x96xf32>
      %c0_11 = arith.constant 0 : index
      %c0_12 = arith.constant 0 : index
      %13 = vector.load %arg9[%c0_11, %c0_12] : memref<8x96xf32, #tpu.memory_space<vmem>>, vector<8x96xf32>
      tpu.vector_store %arg9[%c0_11, %c0_12], %12 {strides = array<i32>} : memref<8x96xf32, #tpu.memory_space<vmem>>, vector<8x96xf32>,
    } else {
    }
    %c0 = arith.constant 0 : index
    %c0_1 = arith.constant 0 : index
    %3 = vector.load %arg9[%c0, %c0_1] : memref<8x96xf32, #tpu.memory_space<vmem>>, vector<8x96xf32>
    %c0_2 = arith.constant 0 : index
    %c0_3 = arith.constant 0 : index
    %4 = vector.load %arg3[%c0_2, %c0_3] : memref<8x32xf32, #tpu.memory_space<vmem>>, vector<8x32xf32>
    %c0_4 = arith.constant 0 : index
    %c0_5 = arith.constant 0 : index
    %5 = vector.load %arg4[%c0_4, %c0_5] : memref<32x96xf32, #tpu.memory_space<vmem>>, vector<32x96xf32>
    %cst = arith.constant dense<0.000000e+00> : vector<8x96xf32>
    %6 = tpu.matmul %4, %5, %cst {dimension_numbers = #tpu.dot_dimension_numbers<[1], [0], [0], [1], [0, 0, 1, 1], [], []>} : vector<8x32xf32>, vector<32x96xf32>, vector<8x96xf32> -> vector<8x96xf32>
    %7 = arith.addf %3, %6 : vector<8x96xf32>
    %c0_6 = arith.constant 0 : index
    %c0_7 = arith.constant 0 : index
    %8 = vector.load %arg9[%c0_6, %c0_7] : memref<8x96xf32, #tpu.memory_space<vmem>>, vector<8x96xf32>
    tpu.vector_store %arg9[%c0_6, %c0_7], %7 {strides = array<i32>} : memref<8x96xf32, #tpu.memory_space<vmem>>, vector<8x96xf32>,
    %c0_i32_8 = arith.constant 0 : i32
    %9 = arith.cmpi eq, %arg2, %c0_i32_8 : i32
    %10 = arith.extui %9 : i1 to i32
    %c0_i32_9 = arith.constant 0 : i32
    %11 = arith.cmpi ne, %10, %c0_i32_9 : i32
    scf.if %11 {
      %c0_10 = arith.constant 0 : index
      %c0_11 = arith.constant 0 : index
      %12 = vector.load %arg9[%c0_10, %c0_11] : memref<8x96xf32, #tpu.memory_space<vmem>>, vector<8x96xf32>
      %c0_12 = arith.constant 0 : index
      %c0_13 = arith.constant 0 : index
      %13 = vector.load %arg5[%c0_12, %c0_13] : memref<1x96xf32, #tpu.memory_space<vmem>>, vector<1x96xf32>
      %14 = vector.broadcast %13 : vector<1x96xf32> to vector<8x96xf32>
      %15 = arith.addf %12, %14 : vector<8x96xf32>
      %16 = vector.extract_strided_slice %15 {offsets = [0, 0], sizes = [8, 32], strides = [1, 1]} : vector<8x96xf32> to vector<8x32xf32>
      %c0_14 = arith.constant 0 : index
      %c0_15 = arith.constant 0 : index
      %17 = vector.load %arg6[%c0_14, %c0_15] : memref<8x32xf32, #tpu.memory_space<vmem>>, vector<8x32xf32>
      tpu.vector_store %arg6[%c0_14, %c0_15], %16 {strides = array<i32>} : memref<8x32xf32, #tpu.memory_space<vmem>>, vector<8x32xf32>,
      %18 = vector.extract_strided_slice %15 {offsets = [0, 32], sizes = [8, 32], strides = [1, 1]} : vector<8x96xf32> to vector<8x32xf32>
      %c0_16 = arith.constant 0 : index
      %c0_17 = arith.constant 0 : index
      %19 = vector.load %arg7[%c0_16, %c0_17] : memref<8x32xf32, #tpu.memory_space<vmem>>, vector<8x32xf32>
      tpu.vector_store %arg7[%c0_16, %c0_17], %18 {strides = array<i32>} : memref<8x32xf32, #tpu.memory_space<vmem>>, vector<8x32xf32>,
      %20 = vector.extract_strided_slice %15 {offsets = [0, 64], sizes = [8, 32], strides = [1, 1]} : vector<8x96xf32> to vector<8x32xf32>
      %c0_18 = arith.constant 0 : index
      %c0_19 = arith.constant 0 : index
      %21 = vector.load %arg8[%c0_18, %c0_19] : memref<8x32xf32, #tpu.memory_space<vmem>>, vector<8x32xf32>
      tpu.vector_store %arg8[%c0_18, %c0_19], %20 {strides = array<i32>} : memref<8x32xf32, #tpu.memory_space<vmem>>, vector<8x32xf32>,
    } else {
    }
    return
  }
  func.func @transform_0(%arg0: i32, %arg1: i32, %arg2: i32) -> (i32, i32) {
    %c0_i32 = arith.constant 0 : i32
    return %arg0, %arg2 : i32, i32
  }
  func.func @transform_1(%arg0: i32, %arg1: i32, %arg2: i32) -> (i32, i32) {
    %c0_i32 = arith.constant 0 : i32
    return %arg2, %arg1 : i32, i32
  }
  func.func @transform_2(%arg0: i32, %arg1: i32, %arg2: i32) -> (i32, i32) {
    %c0_i32 = arith.constant 0 : i32
    %c0_i32_0 = arith.constant 0 : i32
    return %c0_i32, %arg1 : i32, i32
  }
  func.func @transform_3(%arg0: i32, %arg1: i32, %arg2: i32) -> (i32, i32) {
    %c0_i32 = arith.constant 0 : i32
    return %arg0, %arg1 : i32, i32
  }
  func.func @transform_4(%arg0: i32, %arg1: i32, %arg2: i32) -> (i32, i32) {
    %c0_i32 = arith.constant 0 : i32
    return %arg0, %arg1 : i32, i32
  }
  func.func @transform_5(%arg0: i32, %arg1: i32, %arg2: i32) -> (i32, i32) {
    %c0_i32 = arith.constant 0 : i32
    return %arg0, %arg1 : i32, i32
  }
}

module attributes {stable_mosaic.version = 11 : i64} {
  func.func @kernel(%arg0: i32, %arg1: i32, %arg2: i32, %arg3: memref<8x32xf32, #tpu.memory_space<vmem>>, %arg4: memref<32x32xf32, #tpu.memory_space<vmem>>, %arg5: memref<1x32xf32, #tpu.memory_space<vmem>>, %arg6: memref<8x32xf32, #tpu.memory_space<vmem>>, %arg7: memref<1x32xf32, #tpu.memory_space<vmem>>, %arg8: memref<1x32xf32, #tpu.memory_space<vmem>>, %arg9: memref<8x32xf32, #tpu.memory_space<vmem>>, %arg10: memref<8x32xf32, #tpu.memory_space<vmem>>) attributes {dimension_semantics = [#tpu.dimension_semantics<parallel>, #tpu.dimension_semantics<parallel>, #tpu.dimension_semantics<arbitrary>], iteration_bounds = array<i64: 2, 1, 1>, scalar_prefetch = 0 : i64, scratch_operands = 1 : i64, tpu.core_type = #tpu.core_type<tc>, window_params = [{transform_indices = @transform_0, window_bounds = array<i64: 8, 32>}, {transform_indices = @transform_1, window_bounds = array<i64: 32, 32>}, {transform_indices = @transform_2, window_bounds = array<i64: 1, 32>}, {transform_indices = @transform_3, window_bounds = array<i64: 8, 32>}, {pipeline_mode = #tpu.pipeline_mode<synchronous>, transform_indices = @transform_4, window_bounds = array<i64: 1, 32>}, {pipeline_mode = #tpu.pipeline_mode<synchronous>, transform_indices = @transform_5, window_bounds = array<i64: 1, 32>}, {transform_indices = @transform_6, window_bounds = array<i64: 8, 32>}]} {
    %c0_i32 = arith.constant 0 : i32
    %0 = arith.cmpi eq, %arg2, %c0_i32 : i32
    %1 = arith.extui %0 : i1 to i32
    %c0_i32_0 = arith.constant 0 : i32
    %2 = arith.cmpi ne, %1, %c0_i32_0 : i32
    scf.if %2 {
      %cst_10 = arith.constant 0.000000e+00 : f32
      %12 = vector.broadcast %cst_10 : f32 to vector<8x32xf32>
      %c0_11 = arith.constant 0 : index
      %c0_12 = arith.constant 0 : index
      %13 = vector.load %arg10[%c0_11, %c0_12] : memref<8x32xf32, #tpu.memory_space<vmem>>, vector<8x32xf32>
      tpu.vector_store %arg10[%c0_11, %c0_12], %12 {strides = array<i32>} : memref<8x32xf32, #tpu.memory_space<vmem>>, vector<8x32xf32>,
    } else {
    }
    %c0 = arith.constant 0 : index
    %c0_1 = arith.constant 0 : index
    %3 = vector.load %arg10[%c0, %c0_1] : memref<8x32xf32, #tpu.memory_space<vmem>>, vector<8x32xf32>
    %c0_2 = arith.constant 0 : index
    %c0_3 = arith.constant 0 : index
    %4 = vector.load %arg3[%c0_2, %c0_3] : memref<8x32xf32, #tpu.memory_space<vmem>>, vector<8x32xf32>
    %c0_4 = arith.constant 0 : index
    %c0_5 = arith.constant 0 : index
    %5 = vector.load %arg4[%c0_4, %c0_5] : memref<32x32xf32, #tpu.memory_space<vmem>>, vector<32x32xf32>
    %cst = arith.constant dense<0.000000e+00> : vector<8x32xf32>
    %6 = tpu.matmul %4, %5, %cst {dimension_numbers = #tpu.dot_dimension_numbers<[1], [0], [0], [1], [0, 0, 1, 1], [], []>} : vector<8x32xf32>, vector<32x32xf32>, vector<8x32xf32> -> vector<8x32xf32>
    %7 = arith.addf %3, %6 : vector<8x32xf32>
    %c0_6 = arith.constant 0 : index
    %c0_7 = arith.constant 0 : index
    %8 = vector.load %arg10[%c0_6, %c0_7] : memref<8x32xf32, #tpu.memory_space<vmem>>, vector<8x32xf32>
    tpu.vector_store %arg10[%c0_6, %c0_7], %7 {strides = array<i32>} : memref<8x32xf32, #tpu.memory_space<vmem>>, vector<8x32xf32>,
    %c0_i32_8 = arith.constant 0 : i32
    %9 = arith.cmpi eq, %arg2, %c0_i32_8 : i32
    %10 = arith.extui %9 : i1 to i32
    %c0_i32_9 = arith.constant 0 : i32
    %11 = arith.cmpi ne, %10, %c0_i32_9 : i32
    scf.if %11 {
      %c0_10 = arith.constant 0 : index
      %c0_11 = arith.constant 0 : index
      %12 = vector.load %arg10[%c0_10, %c0_11] : memref<8x32xf32, #tpu.memory_space<vmem>>, vector<8x32xf32>
      %c0_12 = arith.constant 0 : index
      %c0_13 = arith.constant 0 : index
      %13 = vector.load %arg5[%c0_12, %c0_13] : memref<1x32xf32, #tpu.memory_space<vmem>>, vector<1x32xf32>
      %14 = vector.broadcast %13 : vector<1x32xf32> to vector<8x32xf32>
      %15 = arith.addf %12, %14 : vector<8x32xf32>
      %c0_14 = arith.constant 0 : index
      %c0_15 = arith.constant 0 : index
      %16 = vector.load %arg6[%c0_14, %c0_15] : memref<8x32xf32, #tpu.memory_space<vmem>>, vector<8x32xf32>
      %17 = arith.addf %15, %16 : vector<8x32xf32>
      %cst_16 = arith.constant dense<0.000000e+00> : vector<8xf32>
      %18 = vector.multi_reduction <add>, %17, %cst_16 [1] : vector<8x32xf32> to vector<8xf32>
      %19 = vector.shape_cast %18 : vector<8xf32> to vector<8x1xf32>
      %cst_17 = arith.constant 3.200000e+01 : f32
      %20 = vector.broadcast %cst_17 : f32 to vector<8x1xf32>
      %21 = arith.divf %19, %20 : vector<8x1xf32>
      %22 = vector.broadcast %21 : vector<8x1xf32> to vector<8x32xf32>
      %23 = arith.subf %17, %22 : vector<8x32xf32>
      %24 = arith.mulf %23, %23 : vector<8x32xf32>
      %cst_18 = arith.constant dense<0.000000e+00> : vector<8xf32>
      %25 = vector.multi_reduction <add>, %24, %cst_18 [1] : vector<8x32xf32> to vector<8xf32>
      %26 = vector.shape_cast %25 : vector<8xf32> to vector<8x1xf32>
      %cst_19 = arith.constant 3.200000e+01 : f32
      %27 = vector.broadcast %cst_19 : f32 to vector<8x1xf32>
      %28 = arith.divf %26, %27 : vector<8x1xf32>
      %29 = vector.broadcast %21 : vector<8x1xf32> to vector<8x32xf32>
      %30 = arith.subf %17, %29 : vector<8x32xf32>
      %cst_20 = arith.constant 9.99999974E-6 : f32
      %31 = vector.broadcast %cst_20 : f32 to vector<8x1xf32>
      %32 = arith.addf %28, %31 : vector<8x1xf32>
      %33 = math.rsqrt %32 : vector<8x1xf32>
      %34 = vector.broadcast %33 : vector<8x1xf32> to vector<8x32xf32>
      %35 = arith.mulf %30, %34 : vector<8x32xf32>
      %c0_21 = arith.constant 0 : index
      %c0_22 = arith.constant 0 : index
      %36 = vector.load %arg7[%c0_21, %c0_22] : memref<1x32xf32, #tpu.memory_space<vmem>>, vector<1x32xf32>
      %37 = vector.broadcast %36 : vector<1x32xf32> to vector<8x32xf32>
      %38 = arith.mulf %35, %37 : vector<8x32xf32>
      %c0_23 = arith.constant 0 : index
      %c0_24 = arith.constant 0 : index
      %39 = vector.load %arg8[%c0_23, %c0_24] : memref<1x32xf32, #tpu.memory_space<vmem>>, vector<1x32xf32>
      %40 = vector.broadcast %39 : vector<1x32xf32> to vector<8x32xf32>
      %41 = arith.addf %38, %40 : vector<8x32xf32>
      %c0_25 = arith.constant 0 : index
      %c0_26 = arith.constant 0 : index
      %42 = vector.load %arg9[%c0_25, %c0_26] : memref<8x32xf32, #tpu.memory_space<vmem>>, vector<8x32xf32>
      tpu.vector_store %arg9[%c0_25, %c0_26], %41 {strides = array<i32>} : memref<8x32xf32, #tpu.memory_space<vmem>>, vector<8x32xf32>,
    } else {
    }
    return
  }
  func.func @transform_0(%arg0: i32, %arg1: i32, %arg2: i32) -> (i32, i32) {
    %c0_i32 = arith.constant 0 : i32
    return %arg0, %arg2 : i32, i32
  }
  func.func @transform_1(%arg0: i32, %arg1: i32, %arg2: i32) -> (i32, i32) {
    %c0_i32 = arith.constant 0 : i32
    return %arg2, %arg1 : i32, i32
  }
  func.func @transform_2(%arg0: i32, %arg1: i32, %arg2: i32) -> (i32, i32) {
    %c0_i32 = arith.constant 0 : i32
    %c0_i32_0 = arith.constant 0 : i32
    return %c0_i32, %arg1 : i32, i32
  }
  func.func @transform_3(%arg0: i32, %arg1: i32, %arg2: i32) -> (i32, i32) {
    %c0_i32 = arith.constant 0 : i32
    %c0_i32_0 = arith.constant 0 : i32
    return %arg0, %c0_i32 : i32, i32
  }
  func.func @transform_4(%arg0: i32, %arg1: i32, %arg2: i32) -> (i32, i32) {
    %c0_i32 = arith.constant 0 : i32
    %c0_i32_0 = arith.constant 0 : i32
    %c0_i32_1 = arith.constant 0 : i32
    return %c0_i32, %c0_i32_0 : i32, i32
  }
  func.func @transform_5(%arg0: i32, %arg1: i32, %arg2: i32) -> (i32, i32) {
    %c0_i32 = arith.constant 0 : i32
    %c0_i32_0 = arith.constant 0 : i32
    %c0_i32_1 = arith.constant 0 : i32
    return %c0_i32, %c0_i32_0 : i32, i32
  }
  func.func @transform_6(%arg0: i32, %arg1: i32, %arg2: i32) -> (i32, i32) {
    %c0_i32 = arith.constant 0 : i32
    return %arg0, %arg1 : i32, i32
  }
}

module attributes {stable_mosaic.version = 11 : i64} {
  func.func @kernel(%arg0: i32, %arg1: i32, %arg2: memref<1x8x32xf32, #tpu.memory_space<vmem>>, %arg3: memref<1x8x32xf32, #tpu.memory_space<vmem>>, %arg4: memref<1x8x32xf32, #tpu.memory_space<vmem>>, %arg5: memref<1x8x32xf32, #tpu.memory_space<vmem>>, %arg6: memref<1x4x8x8xf32, #tpu.memory_space<vmem>>) attributes {dimension_semantics = [#tpu.dimension_semantics<parallel>, #tpu.dimension_semantics<parallel>], iteration_bounds = array<i64: 2, 1>, scalar_prefetch = 0 : i64, scratch_operands = 0 : i64, tpu.core_type = #tpu.core_type<tc>, window_params = [{transform_indices = @transform_0, window_bounds = array<i64: 1, 8, 32>}, {transform_indices = @transform_1, window_bounds = array<i64: 1, 8, 32>}, {transform_indices = @transform_2, window_bounds = array<i64: 1, 8, 32>}, {transform_indices = @transform_3, window_bounds = array<i64: 1, 8, 32>}, {transform_indices = @transform_4, window_bounds = array<i64: 1, 4, 8, 8>}]} {
    %c0 = arith.constant 0 : index
    %c0_0 = arith.constant 0 : index
    %c0_1 = arith.constant 0 : index
    %0 = vector.load %arg2[%c0, %c0_0, %c0_1] : memref<1x8x32xf32, #tpu.memory_space<vmem>>, vector<1x8x32xf32>
    %1 = vector.shape_cast %0 : vector<1x8x32xf32> to vector<8x32xf32>
    %c0_2 = arith.constant 0 : index
    %c0_3 = arith.constant 0 : index
    %c0_4 = arith.constant 0 : index
    %2 = vector.load %arg3[%c0_2, %c0_3, %c0_4] : memref<1x8x32xf32, #tpu.memory_space<vmem>>, vector<1x8x32xf32>
    %3 = vector.shape_cast %2 : vector<1x8x32xf32> to vector<8x32xf32>
    %c0_5 = arith.constant 0 : index
    %c0_6 = arith.constant 0 : index
    %c0_7 = arith.constant 0 : index
    %4 = vector.load %arg4[%c0_5, %c0_6, %c0_7] : memref<1x8x32xf32, #tpu.memory_space<vmem>>, vector<1x8x32xf32>
    %5 = vector.shape_cast %4 : vector<1x8x32xf32> to vector<8x32xf32>
    %6 = vector.extract_strided_slice %1 {offsets = [0, 0], sizes = [8, 8], strides = [1, 1]} : vector<8x32xf32> to vector<8x8xf32>
    %7 = vector.extract_strided_slice %3 {offsets = [0, 0], sizes = [8, 8], strides = [1, 1]} : vector<8x32xf32> to vector<8x8xf32>
    %8 = vector.extract_strided_slice %5 {offsets = [0, 0], sizes = [8, 8], strides = [1, 1]} : vector<8x32xf32> to vector<8x8xf32>
    %cst = arith.constant dense<0.000000e+00> : vector<8x8xf32>
    %9 = tpu.matmul %6, %7, %cst {dimension_numbers = #tpu.dot_dimension_numbers<[1], [1], [0], [0], [0, 0, 1, 0], [], []>} : vector<8x8xf32>, vector<8x8xf32>, vector<8x8xf32> -> vector<8x8xf32>
    %cst_8 = arith.constant dense<0xFF800000> : vector<8xf32>
    %10 = vector.multi_reduction <maximumf>, %9, %cst_8 [1] : vector<8x8xf32> to vector<8xf32>
    %11 = vector.shape_cast %10 : vector<8xf32> to vector<8x1xf32>
    %12 = vector.broadcast %11 : vector<8x1xf32> to vector<8x8xf32>
    %13 = arith.subf %9, %12 : vector<8x8xf32>
    %14 = math.exp %13 : vector<8x8xf32>
    %cst_9 = arith.constant dense<0.000000e+00> : vector<8xf32>
    %15 = vector.multi_reduction <add>, %14, %cst_9 [1] : vector<8x8xf32> to vector<8xf32>
    %16 = vector.shape_cast %15 : vector<8xf32> to vector<8x1xf32>
    %17 = tpu.reciprocal %16 {approx = true} : vector<8x1xf32> -> vector<8x1xf32>
    %18 = arith.mulf %16, %17 : vector<8x1xf32>
    %cst_10 = arith.constant 2.000000e+00 : f32
    %19 = vector.broadcast %cst_10 : f32 to vector<8x1xf32>
    %20 = arith.subf %19, %18 : vector<8x1xf32>
    %21 = arith.mulf %17, %20 : vector<8x1xf32>
    %22 = vector.broadcast %21 : vector<8x1xf32> to vector<8x8xf32>
    %23 = arith.mulf %14, %22 : vector<8x8xf32>
    %c0_11 = arith.constant 0 : index
    %c0_12 = arith.constant 0 : index
    %c0_13 = arith.constant 0 : index
    %c0_14 = arith.constant 0 : index
    %24 = vector.load %arg6[%c0_11, %c0_12, %c0_13, %c0_14] : memref<1x4x8x8xf32, #tpu.memory_space<vmem>>, vector<1x1x8x8xf32>
    %25 = vector.shape_cast %24 : vector<1x1x8x8xf32> to vector<8x8xf32>
    %26 = vector.shape_cast %23 : vector<8x8xf32> to vector<1x1x8x8xf32>
    tpu.vector_store %arg6[%c0_11, %c0_12, %c0_13, %c0_14], %26 {strides = array<i32>} : memref<1x4x8x8xf32, #tpu.memory_space<vmem>>, vector<1x1x8x8xf32>,
    %cst_15 = arith.constant dense<0.000000e+00> : vector<8x8xf32>
    %27 = tpu.matmul %23, %8, %cst_15 {dimension_numbers = #tpu.dot_dimension_numbers<[1], [0], [0], [1], [0, 0, 1, 1], [], []>} : vector<8x8xf32>, vector<8x8xf32>, vector<8x8xf32> -> vector<8x8xf32>
    %28 = vector.extract_strided_slice %1 {offsets = [0, 8], sizes = [8, 8], strides = [1, 1]} : vector<8x32xf32> to vector<8x8xf32>
    %29 = vector.extract_strided_slice %3 {offsets = [0, 8], sizes = [8, 8], strides = [1, 1]} : vector<8x32xf32> to vector<8x8xf32>
    %30 = vector.extract_strided_slice %5 {offsets = [0, 8], sizes = [8, 8], strides = [1, 1]} : vector<8x32xf32> to vector<8x8xf32>
    %cst_16 = arith.constant dense<0.000000e+00> : vector<8x8xf32>
    %31 = tpu.matmul %28, %29, %cst_16 {dimension_numbers = #tpu.dot_dimension_numbers<[1], [1], [0], [0], [0, 0, 1, 0], [], []>} : vector<8x8xf32>, vector<8x8xf32>, vector<8x8xf32> -> vector<8x8xf32>
    %cst_17 = arith.constant dense<0xFF800000> : vector<8xf32>
    %32 = vector.multi_reduction <maximumf>, %31, %cst_17 [1] : vector<8x8xf32> to vector<8xf32>
    %33 = vector.shape_cast %32 : vector<8xf32> to vector<8x1xf32>
    %34 = vector.broadcast %33 : vector<8x1xf32> to vector<8x8xf32>
    %35 = arith.subf %31, %34 : vector<8x8xf32>
    %36 = math.exp %35 : vector<8x8xf32>
    %cst_18 = arith.constant dense<0.000000e+00> : vector<8xf32>
    %37 = vector.multi_reduction <add>, %36, %cst_18 [1] : vector<8x8xf32> to vector<8xf32>
    %38 = vector.shape_cast %37 : vector<8xf32> to vector<8x1xf32>
    %39 = tpu.reciprocal %38 {approx = true} : vector<8x1xf32> -> vector<8x1xf32>
    %40 = arith.mulf %38, %39 : vector<8x1xf32>
    %cst_19 = arith.constant 2.000000e+00 : f32
    %41 = vector.broadcast %cst_19 : f32 to vector<8x1xf32>
    %42 = arith.subf %41, %40 : vector<8x1xf32>
    %43 = arith.mulf %39, %42 : vector<8x1xf32>
    %44 = vector.broadcast %43 : vector<8x1xf32> to vector<8x8xf32>
    %45 = arith.mulf %36, %44 : vector<8x8xf32>
    %c0_20 = arith.constant 0 : index
    %c1 = arith.constant 1 : index
    %c0_21 = arith.constant 0 : index
    %c0_22 = arith.constant 0 : index
    %46 = vector.load %arg6[%c0_20, %c1, %c0_21, %c0_22] : memref<1x4x8x8xf32, #tpu.memory_space<vmem>>, vector<1x1x8x8xf32>
    %47 = vector.shape_cast %46 : vector<1x1x8x8xf32> to vector<8x8xf32>
    %48 = vector.shape_cast %45 : vector<8x8xf32> to vector<1x1x8x8xf32>
    tpu.vector_store %arg6[%c0_20, %c1, %c0_21, %c0_22], %48 {strides = array<i32>} : memref<1x4x8x8xf32, #tpu.memory_space<vmem>>, vector<1x1x8x8xf32>,
    %cst_23 = arith.constant dense<0.000000e+00> : vector<8x8xf32>
    %49 = tpu.matmul %45, %30, %cst_23 {dimension_numbers = #tpu.dot_dimension_numbers<[1], [0], [0], [1], [0, 0, 1, 1], [], []>} : vector<8x8xf32>, vector<8x8xf32>, vector<8x8xf32> -> vector<8x8xf32>
    %50 = vector.extract_strided_slice %1 {offsets = [0, 16], sizes = [8, 8], strides = [1, 1]} : vector<8x32xf32> to vector<8x8xf32>
    %51 = vector.extract_strided_slice %3 {offsets = [0, 16], sizes = [8, 8], strides = [1, 1]} : vector<8x32xf32> to vector<8x8xf32>
    %52 = vector.extract_strided_slice %5 {offsets = [0, 16], sizes = [8, 8], strides = [1, 1]} : vector<8x32xf32> to vector<8x8xf32>
    %cst_24 = arith.constant dense<0.000000e+00> : vector<8x8xf32>
    %53 = tpu.matmul %50, %51, %cst_24 {dimension_numbers = #tpu.dot_dimension_numbers<[1], [1], [0], [0], [0, 0, 1, 0], [], []>} : vector<8x8xf32>, vector<8x8xf32>, vector<8x8xf32> -> vector<8x8xf32>
    %cst_25 = arith.constant dense<0xFF800000> : vector<8xf32>
    %54 = vector.multi_reduction <maximumf>, %53, %cst_25 [1] : vector<8x8xf32> to vector<8xf32>
    %55 = vector.shape_cast %54 : vector<8xf32> to vector<8x1xf32>
    %56 = vector.broadcast %55 : vector<8x1xf32> to vector<8x8xf32>
    %57 = arith.subf %53, %56 : vector<8x8xf32>
    %58 = math.exp %57 : vector<8x8xf32>
    %cst_26 = arith.constant dense<0.000000e+00> : vector<8xf32>
    %59 = vector.multi_reduction <add>, %58, %cst_26 [1] : vector<8x8xf32> to vector<8xf32>
    %60 = vector.shape_cast %59 : vector<8xf32> to vector<8x1xf32>
    %61 = tpu.reciprocal %60 {approx = true} : vector<8x1xf32> -> vector<8x1xf32>
    %62 = arith.mulf %60, %61 : vector<8x1xf32>
    %cst_27 = arith.constant 2.000000e+00 : f32
    %63 = vector.broadcast %cst_27 : f32 to vector<8x1xf32>
    %64 = arith.subf %63, %62 : vector<8x1xf32>
    %65 = arith.mulf %61, %64 : vector<8x1xf32>
    %66 = vector.broadcast %65 : vector<8x1xf32> to vector<8x8xf32>
    %67 = arith.mulf %58, %66 : vector<8x8xf32>
    %c0_28 = arith.constant 0 : index
    %c2 = arith.constant 2 : index
    %c0_29 = arith.constant 0 : index
    %c0_30 = arith.constant 0 : index
    %68 = vector.load %arg6[%c0_28, %c2, %c0_29, %c0_30] : memref<1x4x8x8xf32, #tpu.memory_space<vmem>>, vector<1x1x8x8xf32>
    %69 = vector.shape_cast %68 : vector<1x1x8x8xf32> to vector<8x8xf32>
    %70 = vector.shape_cast %67 : vector<8x8xf32> to vector<1x1x8x8xf32>
    tpu.vector_store %arg6[%c0_28, %c2, %c0_29, %c0_30], %70 {strides = array<i32>} : memref<1x4x8x8xf32, #tpu.memory_space<vmem>>, vector<1x1x8x8xf32>,
    %cst_31 = arith.constant dense<0.000000e+00> : vector<8x8xf32>
    %71 = tpu.matmul %67, %52, %cst_31 {dimension_numbers = #tpu.dot_dimension_numbers<[1], [0], [0], [1], [0, 0, 1, 1], [], []>} : vector<8x8xf32>, vector<8x8xf32>, vector<8x8xf32> -> vector<8x8xf32>
    %72 = vector.extract_strided_slice %1 {offsets = [0, 24], sizes = [8, 8], strides = [1, 1]} : vector<8x32xf32> to vector<8x8xf32>
    %73 = vector.extract_strided_slice %3 {offsets = [0, 24], sizes = [8, 8], strides = [1, 1]} : vector<8x32xf32> to vector<8x8xf32>
    %74 = vector.extract_strided_slice %5 {offsets = [0, 24], sizes = [8, 8], strides = [1, 1]} : vector<8x32xf32> to vector<8x8xf32>
    %cst_32 = arith.constant dense<0.000000e+00> : vector<8x8xf32>
    %75 = tpu.matmul %72, %73, %cst_32 {dimension_numbers = #tpu.dot_dimension_numbers<[1], [1], [0], [0], [0, 0, 1, 0], [], []>} : vector<8x8xf32>, vector<8x8xf32>, vector<8x8xf32> -> vector<8x8xf32>
    %cst_33 = arith.constant dense<0xFF800000> : vector<8xf32>
    %76 = vector.multi_reduction <maximumf>, %75, %cst_33 [1] : vector<8x8xf32> to vector<8xf32>
    %77 = vector.shape_cast %76 : vector<8xf32> to vector<8x1xf32>
    %78 = vector.broadcast %77 : vector<8x1xf32> to vector<8x8xf32>
    %79 = arith.subf %75, %78 : vector<8x8xf32>
    %80 = math.exp %79 : vector<8x8xf32>
    %cst_34 = arith.constant dense<0.000000e+00> : vector<8xf32>
    %81 = vector.multi_reduction <add>, %80, %cst_34 [1] : vector<8x8xf32> to vector<8xf32>
    %82 = vector.shape_cast %81 : vector<8xf32> to vector<8x1xf32>
    %83 = tpu.reciprocal %82 {approx = true} : vector<8x1xf32> -> vector<8x1xf32>
    %84 = arith.mulf %82, %83 : vector<8x1xf32>
    %cst_35 = arith.constant 2.000000e+00 : f32
    %85 = vector.broadcast %cst_35 : f32 to vector<8x1xf32>
    %86 = arith.subf %85, %84 : vector<8x1xf32>
    %87 = arith.mulf %83, %86 : vector<8x1xf32>
    %88 = vector.broadcast %87 : vector<8x1xf32> to vector<8x8xf32>
    %89 = arith.mulf %80, %88 : vector<8x8xf32>
    %c0_36 = arith.constant 0 : index
    %c3 = arith.constant 3 : index
    %c0_37 = arith.constant 0 : index
    %c0_38 = arith.constant 0 : index
    %90 = vector.load %arg6[%c0_36, %c3, %c0_37, %c0_38] : memref<1x4x8x8xf32, #tpu.memory_space<vmem>>, vector<1x1x8x8xf32>
    %91 = vector.shape_cast %90 : vector<1x1x8x8xf32> to vector<8x8xf32>
    %92 = vector.shape_cast %89 : vector<8x8xf32> to vector<1x1x8x8xf32>
    tpu.vector_store %arg6[%c0_36, %c3, %c0_37, %c0_38], %92 {strides = array<i32>} : memref<1x4x8x8xf32, #tpu.memory_space<vmem>>, vector<1x1x8x8xf32>,
    %cst_39 = arith.constant dense<0.000000e+00> : vector<8x8xf32>
    %93 = tpu.matmul %89, %74, %cst_39 {dimension_numbers = #tpu.dot_dimension_numbers<[1], [0], [0], [1], [0, 0, 1, 1], [], []>} : vector<8x8xf32>, vector<8x8xf32>, vector<8x8xf32> -> vector<8x8xf32>
    %94 = tpu.concatenate %27, %49, %71, %93 in 1 : vector<8x8xf32>, vector<8x8xf32>, vector<8x8xf32>, vector<8x8xf32> -> vector<8x32xf32>
    %c0_40 = arith.constant 0 : index
    %c0_41 = arith.constant 0 : index
    %c0_42 = arith.constant 0 : index
    %95 = vector.load %arg5[%c0_40, %c0_41, %c0_42] : memref<1x8x32xf32, #tpu.memory_space<vmem>>, vector<1x8x32xf32>
    %96 = vector.shape_cast %95 : vector<1x8x32xf32> to vector<8x32xf32>
    %97 = vector.shape_cast %94 : vector<8x32xf32> to vector<1x8x32xf32>
    tpu.vector_store %arg5[%c0_40, %c0_41, %c0_42], %97 {strides = array<i32>} : memref<1x8x32xf32, #tpu.memory_space<vmem>>, vector<1x8x32xf32>,
    return
  }
  func.func @transform_0(%arg0: i32, %arg1: i32) -> (i32, i32, i32) {
    %c0_i32 = arith.constant 0 : i32
    %c0_i32_0 = arith.constant 0 : i32
    return %arg0, %arg1, %c0_i32 : i32, i32, i32
  }
  func.func @transform_1(%arg0: i32, %arg1: i32) -> (i32, i32, i32) {
    %c0_i32 = arith.constant 0 : i32
    %c0_i32_0 = arith.constant 0 : i32
    %c0_i32_1 = arith.constant 0 : i32
    return %arg0, %c0_i32, %c0_i32_0 : i32, i32, i32
  }
  func.func @transform_2(%arg0: i32, %arg1: i32) -> (i32, i32, i32) {
    %c0_i32 = arith.constant 0 : i32
    %c0_i32_0 = arith.constant 0 : i32
    %c0_i32_1 = arith.constant 0 : i32
    return %arg0, %c0_i32, %c0_i32_0 : i32, i32, i32
  }
  func.func @transform_3(%arg0: i32, %arg1: i32) -> (i32, i32, i32) {
    %c0_i32 = arith.constant 0 : i32
    %c0_i32_0 = arith.constant 0 : i32
    return %arg0, %arg1, %c0_i32 : i32, i32, i32
  }
  func.func @transform_4(%arg0: i32, %arg1: i32) -> (i32, i32, i32, i32) {
    %c0_i32 = arith.constant 0 : i32
    %c0_i32_0 = arith.constant 0 : i32
    %c0_i32_1 = arith.constant 0 : i32
    return %arg0, %c0_i32, %arg1, %c0_i32_0 : i32, i32, i32, i32
  }
}

module attributes {stable_mosaic.version = 11 : i64} {
  func.func @kernel(%arg0: i32, %arg1: i32, %arg2: i32, %arg3: memref<8x32xf32, #tpu.memory_space<vmem>>, %arg4: memref<32x32xf32, #tpu.memory_space<vmem>>, %arg5: memref<1x32xf32, #tpu.memory_space<vmem>>, %arg6: memref<8x32xf32, #tpu.memory_space<vmem>>, %arg7: memref<8x32xf32, #tpu.memory_space<vmem>>) attributes {dimension_semantics = [#tpu.dimension_semantics<parallel>, #tpu.dimension_semantics<parallel>, #tpu.dimension_semantics<arbitrary>], iteration_bounds = array<i64: 2, 1, 1>, scalar_prefetch = 0 : i64, scratch_operands = 1 : i64, tpu.core_type = #tpu.core_type<tc>, window_params = [{transform_indices = @transform_0, window_bounds = array<i64: 8, 32>}, {transform_indices = @transform_1, window_bounds = array<i64: 32, 32>}, {transform_indices = @transform_2, window_bounds = array<i64: 1, 32>}, {transform_indices = @transform_3, window_bounds = array<i64: 8, 32>}]} {
    %c0_i32 = arith.constant 0 : i32
    %0 = arith.cmpi eq, %arg2, %c0_i32 : i32
    %1 = arith.extui %0 : i1 to i32
    %c0_i32_0 = arith.constant 0 : i32
    %2 = arith.cmpi ne, %1, %c0_i32_0 : i32
    scf.if %2 {
      %cst_10 = arith.constant 0.000000e+00 : f32
      %12 = vector.broadcast %cst_10 : f32 to vector<8x32xf32>
      %c0_11 = arith.constant 0 : index
      %c0_12 = arith.constant 0 : index
      %13 = vector.load %arg7[%c0_11, %c0_12] : memref<8x32xf32, #tpu.memory_space<vmem>>, vector<8x32xf32>
      tpu.vector_store %arg7[%c0_11, %c0_12], %12 {strides = array<i32>} : memref<8x32xf32, #tpu.memory_space<vmem>>, vector<8x32xf32>,
    } else {
    }
    %c0 = arith.constant 0 : index
    %c0_1 = arith.constant 0 : index
    %3 = vector.load %arg7[%c0, %c0_1] : memref<8x32xf32, #tpu.memory_space<vmem>>, vector<8x32xf32>
    %c0_2 = arith.constant 0 : index
    %c0_3 = arith.constant 0 : index
    %4 = vector.load %arg3[%c0_2, %c0_3] : memref<8x32xf32, #tpu.memory_space<vmem>>, vector<8x32xf32>
    %c0_4 = arith.constant 0 : index
    %c0_5 = arith.constant 0 : index
    %5 = vector.load %arg4[%c0_4, %c0_5] : memref<32x32xf32, #tpu.memory_space<vmem>>, vector<32x32xf32>
    %cst = arith.constant dense<0.000000e+00> : vector<8x32xf32>
    %6 = tpu.matmul %4, %5, %cst {dimension_numbers = #tpu.dot_dimension_numbers<[1], [0], [0], [1], [0, 0, 1, 1], [], []>} : vector<8x32xf32>, vector<32x32xf32>, vector<8x32xf32> -> vector<8x32xf32>
    %7 = arith.addf %3, %6 : vector<8x32xf32>
    %c0_6 = arith.constant 0 : index
    %c0_7 = arith.constant 0 : index
    %8 = vector.load %arg7[%c0_6, %c0_7] : memref<8x32xf32, #tpu.memory_space<vmem>>, vector<8x32xf32>
    tpu.vector_store %arg7[%c0_6, %c0_7], %7 {strides = array<i32>} : memref<8x32xf32, #tpu.memory_space<vmem>>, vector<8x32xf32>,
    %c0_i32_8 = arith.constant 0 : i32
    %9 = arith.cmpi eq, %arg2, %c0_i32_8 : i32
    %10 = arith.extui %9 : i1 to i32
    %c0_i32_9 = arith.constant 0 : i32
    %11 = arith.cmpi ne, %10, %c0_i32_9 : i32
    scf.if %11 {
      %c0_10 = arith.constant 0 : index
      %c0_11 = arith.constant 0 : index
      %12 = vector.load %arg7[%c0_10, %c0_11] : memref<8x32xf32, #tpu.memory_space<vmem>>, vector<8x32xf32>
      %c0_12 = arith.constant 0 : index
      %c0_13 = arith.constant 0 : index
      %13 = vector.load %arg5[%c0_12, %c0_13] : memref<1x32xf32, #tpu.memory_space<vmem>>, vector<1x32xf32>
      %14 = vector.broadcast %13 : vector<1x32xf32> to vector<8x32xf32>
      %15 = arith.addf %12, %14 : vector<8x32xf32>
      %c0_14 = arith.constant 0 : index
      %c0_15 = arith.constant 0 : index
      %16 = vector.load %arg6[%c0_14, %c0_15] : memref<8x32xf32, #tpu.memory_space<vmem>>, vector<8x32xf32>
      tpu.vector_store %arg6[%c0_14, %c0_15], %15 {strides = array<i32>} : memref<8x32xf32, #tpu.memory_space<vmem>>, vector<8x32xf32>,
    } else {
    }
    return
  }
  func.func @transform_0(%arg0: i32, %arg1: i32, %arg2: i32) -> (i32, i32) {
    %c0_i32 = arith.constant 0 : i32
    return %arg0, %arg2 : i32, i32
  }
  func.func @transform_1(%arg0: i32, %arg1: i32, %arg2: i32) -> (i32, i32) {
    %c0_i32 = arith.constant 0 : i32
    return %arg2, %arg1 : i32, i32
  }
  func.func @transform_2(%arg0: i32, %arg1: i32, %arg2: i32) -> (i32, i32) {
    %c0_i32 = arith.constant 0 : i32
    %c0_i32_0 = arith.constant 0 : i32
    return %c0_i32, %arg1 : i32, i32
  }
  func.func @transform_3(%arg0: i32, %arg1: i32, %arg2: i32) -> (i32, i32) {
    %c0_i32 = arith.constant 0 : i32
    return %arg0, %arg1 : i32, i32
  }
}

module attributes {stable_mosaic.version = 11 : i64} {
  func.func @kernel(%arg0: i32, %arg1: i32, %arg2: i32, %arg3: memref<8x32xf32, #tpu.memory_space<vmem>>, %arg4: memref<32x32xf32, #tpu.memory_space<vmem>>, %arg5: memref<1x32xf32, #tpu.memory_space<vmem>>, %arg6: memref<8x32xf32, #tpu.memory_space<vmem>>, %arg7: memref<1x32xf32, #tpu.memory_space<vmem>>, %arg8: memref<1x32xf32, #tpu.memory_space<vmem>>, %arg9: memref<8x32xf32, #tpu.memory_space<vmem>>, %arg10: memref<8x32xf32, #tpu.memory_space<vmem>>) attributes {dimension_semantics = [#tpu.dimension_semantics<parallel>, #tpu.dimension_semantics<parallel>, #tpu.dimension_semantics<arbitrary>], iteration_bounds = array<i64: 2, 1, 1>, scalar_prefetch = 0 : i64, scratch_operands = 1 : i64, tpu.core_type = #tpu.core_type<tc>, window_params = [{transform_indices = @transform_0, window_bounds = array<i64: 8, 32>}, {transform_indices = @transform_1, window_bounds = array<i64: 32, 32>}, {transform_indices = @transform_2, window_bounds = array<i64: 1, 32>}, {transform_indices = @transform_3, window_bounds = array<i64: 8, 32>}, {pipeline_mode = #tpu.pipeline_mode<synchronous>, transform_indices = @transform_4, window_bounds = array<i64: 1, 32>}, {pipeline_mode = #tpu.pipeline_mode<synchronous>, transform_indices = @transform_5, window_bounds = array<i64: 1, 32>}, {transform_indices = @transform_6, window_bounds = array<i64: 8, 32>}]} {
    %c0_i32 = arith.constant 0 : i32
    %0 = arith.cmpi eq, %arg2, %c0_i32 : i32
    %1 = arith.extui %0 : i1 to i32
    %c0_i32_0 = arith.constant 0 : i32
    %2 = arith.cmpi ne, %1, %c0_i32_0 : i32
    scf.if %2 {
      %cst_10 = arith.constant 0.000000e+00 : f32
      %12 = vector.broadcast %cst_10 : f32 to vector<8x32xf32>
      %c0_11 = arith.constant 0 : index
      %c0_12 = arith.constant 0 : index
      %13 = vector.load %arg10[%c0_11, %c0_12] : memref<8x32xf32, #tpu.memory_space<vmem>>, vector<8x32xf32>
      tpu.vector_store %arg10[%c0_11, %c0_12], %12 {strides = array<i32>} : memref<8x32xf32, #tpu.memory_space<vmem>>, vector<8x32xf32>,
    } else {
    }
    %c0 = arith.constant 0 : index
    %c0_1 = arith.constant 0 : index
    %3 = vector.load %arg10[%c0, %c0_1] : memref<8x32xf32, #tpu.memory_space<vmem>>, vector<8x32xf32>
    %c0_2 = arith.constant 0 : index
    %c0_3 = arith.constant 0 : index
    %4 = vector.load %arg3[%c0_2, %c0_3] : memref<8x32xf32, #tpu.memory_space<vmem>>, vector<8x32xf32>
    %c0_4 = arith.constant 0 : index
    %c0_5 = arith.constant 0 : index
    %5 = vector.load %arg4[%c0_4, %c0_5] : memref<32x32xf32, #tpu.memory_space<vmem>>, vector<32x32xf32>
    %cst = arith.constant dense<0.000000e+00> : vector<8x32xf32>
    %6 = tpu.matmul %4, %5, %cst {dimension_numbers = #tpu.dot_dimension_numbers<[1], [0], [0], [1], [0, 0, 1, 1], [], []>} : vector<8x32xf32>, vector<32x32xf32>, vector<8x32xf32> -> vector<8x32xf32>
    %7 = arith.addf %3, %6 : vector<8x32xf32>
    %c0_6 = arith.constant 0 : index
    %c0_7 = arith.constant 0 : index
    %8 = vector.load %arg10[%c0_6, %c0_7] : memref<8x32xf32, #tpu.memory_space<vmem>>, vector<8x32xf32>
    tpu.vector_store %arg10[%c0_6, %c0_7], %7 {strides = array<i32>} : memref<8x32xf32, #tpu.memory_space<vmem>>, vector<8x32xf32>,
    %c0_i32_8 = arith.constant 0 : i32
    %9 = arith.cmpi eq, %arg2, %c0_i32_8 : i32
    %10 = arith.extui %9 : i1 to i32
    %c0_i32_9 = arith.constant 0 : i32
    %11 = arith.cmpi ne, %10, %c0_i32_9 : i32
    scf.if %11 {
      %c0_10 = arith.constant 0 : index
      %c0_11 = arith.constant 0 : index
      %12 = vector.load %arg10[%c0_10, %c0_11] : memref<8x32xf32, #tpu.memory_space<vmem>>, vector<8x32xf32>
      %c0_12 = arith.constant 0 : index
      %c0_13 = arith.constant 0 : index
      %13 = vector.load %arg5[%c0_12, %c0_13] : memref<1x32xf32, #tpu.memory_space<vmem>>, vector<1x32xf32>
      %14 = vector.broadcast %13 : vector<1x32xf32> to vector<8x32xf32>
      %15 = arith.addf %12, %14 : vector<8x32xf32>
      %c0_14 = arith.constant 0 : index
      %c0_15 = arith.constant 0 : index
      %16 = vector.load %arg6[%c0_14, %c0_15] : memref<8x32xf32, #tpu.memory_space<vmem>>, vector<8x32xf32>
      %17 = arith.addf %15, %16 : vector<8x32xf32>
      %cst_16 = arith.constant dense<0.000000e+00> : vector<8xf32>
      %18 = vector.multi_reduction <add>, %17, %cst_16 [1] : vector<8x32xf32> to vector<8xf32>
      %19 = vector.shape_cast %18 : vector<8xf32> to vector<8x1xf32>
      %cst_17 = arith.constant 3.200000e+01 : f32
      %20 = vector.broadcast %cst_17 : f32 to vector<8x1xf32>
      %21 = arith.divf %19, %20 : vector<8x1xf32>
      %22 = vector.broadcast %21 : vector<8x1xf32> to vector<8x32xf32>
      %23 = arith.subf %17, %22 : vector<8x32xf32>
      %24 = arith.mulf %23, %23 : vector<8x32xf32>
      %cst_18 = arith.constant dense<0.000000e+00> : vector<8xf32>
      %25 = vector.multi_reduction <add>, %24, %cst_18 [1] : vector<8x32xf32> to vector<8xf32>
      %26 = vector.shape_cast %25 : vector<8xf32> to vector<8x1xf32>
      %cst_19 = arith.constant 3.200000e+01 : f32
      %27 = vector.broadcast %cst_19 : f32 to vector<8x1xf32>
      %28 = arith.divf %26, %27 : vector<8x1xf32>
      %29 = vector.broadcast %21 : vector<8x1xf32> to vector<8x32xf32>
      %30 = arith.subf %17, %29 : vector<8x32xf32>
      %cst_20 = arith.constant 9.99999974E-6 : f32
      %31 = vector.broadcast %cst_20 : f32 to vector<8x1xf32>
      %32 = arith.addf %28, %31 : vector<8x1xf32>
      %33 = math.rsqrt %32 : vector<8x1xf32>
      %34 = vector.broadcast %33 : vector<8x1xf32> to vector<8x32xf32>
      %35 = arith.mulf %30, %34 : vector<8x32xf32>
      %c0_21 = arith.constant 0 : index
      %c0_22 = arith.constant 0 : index
      %36 = vector.load %arg7[%c0_21, %c0_22] : memref<1x32xf32, #tpu.memory_space<vmem>>, vector<1x32xf32>
      %37 = vector.broadcast %36 : vector<1x32xf32> to vector<8x32xf32>
      %38 = arith.mulf %35, %37 : vector<8x32xf32>
      %c0_23 = arith.constant 0 : index
      %c0_24 = arith.constant 0 : index
      %39 = vector.load %arg8[%c0_23, %c0_24] : memref<1x32xf32, #tpu.memory_space<vmem>>, vector<1x32xf32>
      %40 = vector.broadcast %39 : vector<1x32xf32> to vector<8x32xf32>
      %41 = arith.addf %38, %40 : vector<8x32xf32>
      %c0_25 = arith.constant 0 : index
      %c0_26 = arith.constant 0 : index
      %42 = vector.load %arg9[%c0_25, %c0_26] : memref<8x32xf32, #tpu.memory_space<vmem>>, vector<8x32xf32>
      tpu.vector_store %arg9[%c0_25, %c0_26], %41 {strides = array<i32>} : memref<8x32xf32, #tpu.memory_space<vmem>>, vector<8x32xf32>,
    } else {
    }
    return
  }
  func.func @transform_0(%arg0: i32, %arg1: i32, %arg2: i32) -> (i32, i32) {
    %c0_i32 = arith.constant 0 : i32
    return %arg0, %arg2 : i32, i32
  }
  func.func @transform_1(%arg0: i32, %arg1: i32, %arg2: i32) -> (i32, i32) {
    %c0_i32 = arith.constant 0 : i32
    return %arg2, %arg1 : i32, i32
  }
  func.func @transform_2(%arg0: i32, %arg1: i32, %arg2: i32) -> (i32, i32) {
    %c0_i32 = arith.constant 0 : i32
    %c0_i32_0 = arith.constant 0 : i32
    return %c0_i32, %arg1 : i32, i32
  }
  func.func @transform_3(%arg0: i32, %arg1: i32, %arg2: i32) -> (i32, i32) {
    %c0_i32 = arith.constant 0 : i32
    %c0_i32_0 = arith.constant 0 : i32
    return %arg0, %c0_i32 : i32, i32
  }
  func.func @transform_4(%arg0: i32, %arg1: i32, %arg2: i32) -> (i32, i32) {
    %c0_i32 = arith.constant 0 : i32
    %c0_i32_0 = arith.constant 0 : i32
    %c0_i32_1 = arith.constant 0 : i32
    return %c0_i32, %c0_i32_0 : i32, i32
  }
  func.func @transform_5(%arg0: i32, %arg1: i32, %arg2: i32) -> (i32, i32) {
    %c0_i32 = arith.constant 0 : i32
    %c0_i32_0 = arith.constant 0 : i32
    %c0_i32_1 = arith.constant 0 : i32
    return %c0_i32, %c0_i32_0 : i32, i32
  }
  func.func @transform_6(%arg0: i32, %arg1: i32, %arg2: i32) -> (i32, i32) {
    %c0_i32 = arith.constant 0 : i32
    return %arg0, %arg1 : i32, i32
  }
}

module attributes {stable_mosaic.version = 11 : i64} {
  func.func @kernel(%arg0: i32, %arg1: i32, %arg2: i32, %arg3: memref<8x32xf32, #tpu.memory_space<vmem>>, %arg4: memref<32x64xf32, #tpu.memory_space<vmem>>, %arg5: memref<1x64xf32, #tpu.memory_space<vmem>>, %arg6: memref<8x64xf32, #tpu.memory_space<vmem>>, %arg7: memref<8x64xf32, #tpu.memory_space<vmem>>) attributes {dimension_semantics = [#tpu.dimension_semantics<parallel>, #tpu.dimension_semantics<parallel>, #tpu.dimension_semantics<arbitrary>], iteration_bounds = array<i64: 2, 1, 1>, scalar_prefetch = 0 : i64, scratch_operands = 1 : i64, tpu.core_type = #tpu.core_type<tc>, window_params = [{transform_indices = @transform_0, window_bounds = array<i64: 8, 32>}, {transform_indices = @transform_1, window_bounds = array<i64: 32, 64>}, {transform_indices = @transform_2, window_bounds = array<i64: 1, 64>}, {transform_indices = @transform_3, window_bounds = array<i64: 8, 64>}]} {
    %c0_i32 = arith.constant 0 : i32
    %0 = arith.cmpi eq, %arg2, %c0_i32 : i32
    %1 = arith.extui %0 : i1 to i32
    %c0_i32_0 = arith.constant 0 : i32
    %2 = arith.cmpi ne, %1, %c0_i32_0 : i32
    scf.if %2 {
      %cst_10 = arith.constant 0.000000e+00 : f32
      %12 = vector.broadcast %cst_10 : f32 to vector<8x64xf32>
      %c0_11 = arith.constant 0 : index
      %c0_12 = arith.constant 0 : index
      %13 = vector.load %arg7[%c0_11, %c0_12] : memref<8x64xf32, #tpu.memory_space<vmem>>, vector<8x64xf32>
      tpu.vector_store %arg7[%c0_11, %c0_12], %12 {strides = array<i32>} : memref<8x64xf32, #tpu.memory_space<vmem>>, vector<8x64xf32>,
    } else {
    }
    %c0 = arith.constant 0 : index
    %c0_1 = arith.constant 0 : index
    %3 = vector.load %arg7[%c0, %c0_1] : memref<8x64xf32, #tpu.memory_space<vmem>>, vector<8x64xf32>
    %c0_2 = arith.constant 0 : index
    %c0_3 = arith.constant 0 : index
    %4 = vector.load %arg3[%c0_2, %c0_3] : memref<8x32xf32, #tpu.memory_space<vmem>>, vector<8x32xf32>
    %c0_4 = arith.constant 0 : index
    %c0_5 = arith.constant 0 : index
    %5 = vector.load %arg4[%c0_4, %c0_5] : memref<32x64xf32, #tpu.memory_space<vmem>>, vector<32x64xf32>
    %cst = arith.constant dense<0.000000e+00> : vector<8x64xf32>
    %6 = tpu.matmul %4, %5, %cst {dimension_numbers = #tpu.dot_dimension_numbers<[1], [0], [0], [1], [0, 0, 1, 1], [], []>} : vector<8x32xf32>, vector<32x64xf32>, vector<8x64xf32> -> vector<8x64xf32>
    %7 = arith.addf %3, %6 : vector<8x64xf32>
    %c0_6 = arith.constant 0 : index
    %c0_7 = arith.constant 0 : index
    %8 = vector.load %arg7[%c0_6, %c0_7] : memref<8x64xf32, #tpu.memory_space<vmem>>, vector<8x64xf32>
    tpu.vector_store %arg7[%c0_6, %c0_7], %7 {strides = array<i32>} : memref<8x64xf32, #tpu.memory_space<vmem>>, vector<8x64xf32>,
    %c0_i32_8 = arith.constant 0 : i32
    %9 = arith.cmpi eq, %arg2, %c0_i32_8 : i32
    %10 = arith.extui %9 : i1 to i32
    %c0_i32_9 = arith.constant 0 : i32
    %11 = arith.cmpi ne, %10, %c0_i32_9 : i32
    scf.if %11 {
      %c0_10 = arith.constant 0 : index
      %c0_11 = arith.constant 0 : index
      %12 = vector.load %arg7[%c0_10, %c0_11] : memref<8x64xf32, #tpu.memory_space<vmem>>, vector<8x64xf32>
      %c0_12 = arith.constant 0 : index
      %c0_13 = arith.constant 0 : index
      %13 = vector.load %arg5[%c0_12, %c0_13] : memref<1x64xf32, #tpu.memory_space<vmem>>, vector<1x64xf32>
      %14 = vector.broadcast %13 : vector<1x64xf32> to vector<8x64xf32>
      %15 = arith.addf %12, %14 : vector<8x64xf32>
      %cst_14 = arith.constant 5.000000e-01 : f32
      %16 = vector.broadcast %cst_14 : f32 to vector<8x64xf32>
      %17 = arith.mulf %16, %15 : vector<8x64xf32>
      %cst_15 = arith.constant 4.471500e-02 : f32
      %18 = vector.broadcast %cst_15 : f32 to vector<8x64xf32>
      %19 = arith.mulf %18, %15 : vector<8x64xf32>
      %20 = arith.mulf %19, %15 : vector<8x64xf32>
      %21 = arith.mulf %20, %15 : vector<8x64xf32>
      %22 = arith.addf %15, %21 : vector<8x64xf32>
      %cst_16 = arith.constant 0.797884583 : f32
      %23 = vector.broadcast %cst_16 : f32 to vector<8x64xf32>
      %24 = arith.mulf %23, %22 : vector<8x64xf32>
      %25 = math.tanh %24 : vector<8x64xf32>
      %cst_17 = arith.constant 1.000000e+00 : f32
      %26 = vector.broadcast %cst_17 : f32 to vector<8x64xf32>
      %27 = arith.addf %26, %25 : vector<8x64xf32>
      %28 = arith.mulf %17, %27 : vector<8x64xf32>
      %c0_18 = arith.constant 0 : index
      %c0_19 = arith.constant 0 : index
      %29 = vector.load %arg6[%c0_18, %c0_19] : memref<8x64xf32, #tpu.memory_space<vmem>>, vector<8x64xf32>
      tpu.vector_store %arg6[%c0_18, %c0_19], %28 {strides = array<i32>} : memref<8x64xf32, #tpu.memory_space<vmem>>, vector<8x64xf32>,
    } else {
    }
    return
  }
  func.func @transform_0(%arg0: i32, %arg1: i32, %arg2: i32) -> (i32, i32) {
    %c0_i32 = arith.constant 0 : i32
    return %arg0, %arg2 : i32, i32
  }
  func.func @transform_1(%arg0: i32, %arg1: i32, %arg2: i32) -> (i32, i32) {
    %c0_i32 = arith.constant 0 : i32
    return %arg2, %arg1 : i32, i32
  }
  func.func @transform_2(%arg0: i32, %arg1: i32, %arg2: i32) -> (i32, i32) {
    %c0_i32 = arith.constant 0 : i32
    %c0_i32_0 = arith.constant 0 : i32
    return %c0_i32, %arg1 : i32, i32
  }
  func.func @transform_3(%arg0: i32, %arg1: i32, %arg2: i32) -> (i32, i32) {
    %c0_i32 = arith.constant 0 : i32
    return %arg0, %arg1 : i32, i32
  }
}

module attributes {stable_mosaic.version = 11 : i64} {
  func.func @kernel(%arg0: i32, %arg1: i32, %arg2: i32, %arg3: memref<8x32xf32, #tpu.memory_space<vmem>>, %arg4: memref<32x96xf32, #tpu.memory_space<vmem>>, %arg5: memref<1x96xf32, #tpu.memory_space<vmem>>, %arg6: memref<8x32xf32, #tpu.memory_space<vmem>>, %arg7: memref<8x32xf32, #tpu.memory_space<vmem>>, %arg8: memref<8x32xf32, #tpu.memory_space<vmem>>, %arg9: memref<8x96xf32, #tpu.memory_space<vmem>>) attributes {dimension_semantics = [#tpu.dimension_semantics<parallel>, #tpu.dimension_semantics<parallel>, #tpu.dimension_semantics<arbitrary>], iteration_bounds = array<i64: 2, 1, 1>, scalar_prefetch = 0 : i64, scratch_operands = 1 : i64, tpu.core_type = #tpu.core_type<tc>, window_params = [{transform_indices = @transform_0, window_bounds = array<i64: 8, 32>}, {transform_indices = @transform_1, window_bounds = array<i64: 32, 96>}, {transform_indices = @transform_2, window_bounds = array<i64: 1, 96>}, {transform_indices = @transform_3, window_bounds = array<i64: 8, 32>}, {transform_indices = @transform_4, window_bounds = array<i64: 8, 32>}, {transform_indices = @transform_5, window_bounds = array<i64: 8, 32>}]} {
    %c0_i32 = arith.constant 0 : i32
    %0 = arith.cmpi eq, %arg2, %c0_i32 : i32
    %1 = arith.extui %0 : i1 to i32
    %c0_i32_0 = arith.constant 0 : i32
    %2 = arith.cmpi ne, %1, %c0_i32_0 : i32
    scf.if %2 {
      %cst_10 = arith.constant 0.000000e+00 : f32
      %12 = vector.broadcast %cst_10 : f32 to vector<8x96xf32>
      %c0_11 = arith.constant 0 : index
      %c0_12 = arith.constant 0 : index
      %13 = vector.load %arg9[%c0_11, %c0_12] : memref<8x96xf32, #tpu.memory_space<vmem>>, vector<8x96xf32>
      tpu.vector_store %arg9[%c0_11, %c0_12], %12 {strides = array<i32>} : memref<8x96xf32, #tpu.memory_space<vmem>>, vector<8x96xf32>,
    } else {
    }
    %c0 = arith.constant 0 : index
    %c0_1 = arith.constant 0 : index
    %3 = vector.load %arg9[%c0, %c0_1] : memref<8x96xf32, #tpu.memory_space<vmem>>, vector<8x96xf32>
    %c0_2 = arith.constant 0 : index
    %c0_3 = arith.constant 0 : index
    %4 = vector.load %arg3[%c0_2, %c0_3] : memref<8x32xf32, #tpu.memory_space<vmem>>, vector<8x32xf32>
    %c0_4 = arith.constant 0 : index
    %c0_5 = arith.constant 0 : index
    %5 = vector.load %arg4[%c0_4, %c0_5] : memref<32x96xf32, #tpu.memory_space<vmem>>, vector<32x96xf32>
    %cst = arith.constant dense<0.000000e+00> : vector<8x96xf32>
    %6 = tpu.matmul %4, %5, %cst {dimension_numbers = #tpu.dot_dimension_numbers<[1], [0], [0], [1], [0, 0, 1, 1], [], []>} : vector<8x32xf32>, vector<32x96xf32>, vector<8x96xf32> -> vector<8x96xf32>
    %7 = arith.addf %3, %6 : vector<8x96xf32>
    %c0_6 = arith.constant 0 : index
    %c0_7 = arith.constant 0 : index
    %8 = vector.load %arg9[%c0_6, %c0_7] : memref<8x96xf32, #tpu.memory_space<vmem>>, vector<8x96xf32>
    tpu.vector_store %arg9[%c0_6, %c0_7], %7 {strides = array<i32>} : memref<8x96xf32, #tpu.memory_space<vmem>>, vector<8x96xf32>,
    %c0_i32_8 = arith.constant 0 : i32
    %9 = arith.cmpi eq, %arg2, %c0_i32_8 : i32
    %10 = arith.extui %9 : i1 to i32
    %c0_i32_9 = arith.constant 0 : i32
    %11 = arith.cmpi ne, %10, %c0_i32_9 : i32
    scf.if %11 {
      %c0_10 = arith.constant 0 : index
      %c0_11 = arith.constant 0 : index
      %12 = vector.load %arg9[%c0_10, %c0_11] : memref<8x96xf32, #tpu.memory_space<vmem>>, vector<8x96xf32>
      %c0_12 = arith.constant 0 : index
      %c0_13 = arith.constant 0 : index
      %13 = vector.load %arg5[%c0_12, %c0_13] : memref<1x96xf32, #tpu.memory_space<vmem>>, vector<1x96xf32>
      %14 = vector.broadcast %13 : vector<1x96xf32> to vector<8x96xf32>
      %15 = arith.addf %12, %14 : vector<8x96xf32>
      %16 = vector.extract_strided_slice %15 {offsets = [0, 0], sizes = [8, 32], strides = [1, 1]} : vector<8x96xf32> to vector<8x32xf32>
      %c0_14 = arith.constant 0 : index
      %c0_15 = arith.constant 0 : index
      %17 = vector.load %arg6[%c0_14, %c0_15] : memref<8x32xf32, #tpu.memory_space<vmem>>, vector<8x32xf32>
      tpu.vector_store %arg6[%c0_14, %c0_15], %16 {strides = array<i32>} : memref<8x32xf32, #tpu.memory_space<vmem>>, vector<8x32xf32>,
      %18 = vector.extract_strided_slice %15 {offsets = [0, 32], sizes = [8, 32], strides = [1, 1]} : vector<8x96xf32> to vector<8x32xf32>
      %c0_16 = arith.constant 0 : index
      %c0_17 = arith.constant 0 : index
      %19 = vector.load %arg7[%c0_16, %c0_17] : memref<8x32xf32, #tpu.memory_space<vmem>>, vector<8x32xf32>
      tpu.vector_store %arg7[%c0_16, %c0_17], %18 {strides = array<i32>} : memref<8x32xf32, #tpu.memory_space<vmem>>, vector<8x32xf32>,
      %20 = vector.extract_strided_slice %15 {offsets = [0, 64], sizes = [8, 32], strides = [1, 1]} : vector<8x96xf32> to vector<8x32xf32>
      %c0_18 = arith.constant 0 : index
      %c0_19 = arith.constant 0 : index
      %21 = vector.load %arg8[%c0_18, %c0_19] : memref<8x32xf32, #tpu.memory_space<vmem>>, vector<8x32xf32>
      tpu.vector_store %arg8[%c0_18, %c0_19], %20 {strides = array<i32>} : memref<8x32xf32, #tpu.memory_space<vmem>>, vector<8x32xf32>,
    } else {
    }
    return
  }
  func.func @transform_0(%arg0: i32, %arg1: i32, %arg2: i32) -> (i32, i32) {
    %c0_i32 = arith.constant 0 : i32
    return %arg0, %arg2 : i32, i32
  }
  func.func @transform_1(%arg0: i32, %arg1: i32, %arg2: i32) -> (i32, i32) {
    %c0_i32 = arith.constant 0 : i32
    return %arg2, %arg1 : i32, i32
  }
  func.func @transform_2(%arg0: i32, %arg1: i32, %arg2: i32) -> (i32, i32) {
    %c0_i32 = arith.constant 0 : i32
    %c0_i32_0 = arith.constant 0 : i32
    return %c0_i32, %arg1 : i32, i32
  }
  func.func @transform_3(%arg0: i32, %arg1: i32, %arg2: i32) -> (i32, i32) {
    %c0_i32 = arith.constant 0 : i32
    return %arg0, %arg1 : i32, i32
  }
  func.func @transform_4(%arg0: i32, %arg1: i32, %arg2: i32) -> (i32, i32) {
    %c0_i32 = arith.constant 0 : i32
    return %arg0, %arg1 : i32, i32
  }
  func.func @transform_5(%arg0: i32, %arg1: i32, %arg2: i32) -> (i32, i32) {
    %c0_i32 = arith.constant 0 : i32
    return %arg0, %arg1 : i32, i32
  }
}

module attributes {stable_mosaic.version = 11 : i64} {
  func.func @kernel(%arg0: i32, %arg1: i32, %arg2: i32, %arg3: memref<8x64xf32, #tpu.memory_space<vmem>>, %arg4: memref<64x32xf32, #tpu.memory_space<vmem>>, %arg5: memref<1x32xf32, #tpu.memory_space<vmem>>, %arg6: memref<8x32xf32, #tpu.memory_space<vmem>>, %arg7: memref<1x32xf32, #tpu.memory_space<vmem>>, %arg8: memref<1x32xf32, #tpu.memory_space<vmem>>, %arg9: memref<8x32xf32, #tpu.memory_space<vmem>>, %arg10: memref<8x32xf32, #tpu.memory_space<vmem>>) attributes {dimension_semantics = [#tpu.dimension_semantics<parallel>, #tpu.dimension_semantics<parallel>, #tpu.dimension_semantics<arbitrary>], iteration_bounds = array<i64: 2, 1, 1>, scalar_prefetch = 0 : i64, scratch_operands = 1 : i64, tpu.core_type = #tpu.core_type<tc>, window_params = [{transform_indices = @transform_0, window_bounds = array<i64: 8, 64>}, {transform_indices = @transform_1, window_bounds = array<i64: 64, 32>}, {transform_indices = @transform_2, window_bounds = array<i64: 1, 32>}, {transform_indices = @transform_3, window_bounds = array<i64: 8, 32>}, {pipeline_mode = #tpu.pipeline_mode<synchronous>, transform_indices = @transform_4, window_bounds = array<i64: 1, 32>}, {pipeline_mode = #tpu.pipeline_mode<synchronous>, transform_indices = @transform_5, window_bounds = array<i64: 1, 32>}, {transform_indices = @transform_6, window_bounds = array<i64: 8, 32>}]} {
    %c0_i32 = arith.constant 0 : i32
    %0 = arith.cmpi eq, %arg2, %c0_i32 : i32
    %1 = arith.extui %0 : i1 to i32
    %c0_i32_0 = arith.constant 0 : i32
    %2 = arith.cmpi ne, %1, %c0_i32_0 : i32
    scf.if %2 {
      %cst_10 = arith.constant 0.000000e+00 : f32
      %12 = vector.broadcast %cst_10 : f32 to vector<8x32xf32>
      %c0_11 = arith.constant 0 : index
      %c0_12 = arith.constant 0 : index
      %13 = vector.load %arg10[%c0_11, %c0_12] : memref<8x32xf32, #tpu.memory_space<vmem>>, vector<8x32xf32>
      tpu.vector_store %arg10[%c0_11, %c0_12], %12 {strides = array<i32>} : memref<8x32xf32, #tpu.memory_space<vmem>>, vector<8x32xf32>,
    } else {
    }
    %c0 = arith.constant 0 : index
    %c0_1 = arith.constant 0 : index
    %3 = vector.load %arg10[%c0, %c0_1] : memref<8x32xf32, #tpu.memory_space<vmem>>, vector<8x32xf32>
    %c0_2 = arith.constant 0 : index
    %c0_3 = arith.constant 0 : index
    %4 = vector.load %arg3[%c0_2, %c0_3] : memref<8x64xf32, #tpu.memory_space<vmem>>, vector<8x64xf32>
    %c0_4 = arith.constant 0 : index
    %c0_5 = arith.constant 0 : index
    %5 = vector.load %arg4[%c0_4, %c0_5] : memref<64x32xf32, #tpu.memory_space<vmem>>, vector<64x32xf32>
    %cst = arith.constant dense<0.000000e+00> : vector<8x32xf32>
    %6 = tpu.matmul %4, %5, %cst {dimension_numbers = #tpu.dot_dimension_numbers<[1], [0], [0], [1], [0, 0, 1, 1], [], []>} : vector<8x64xf32>, vector<64x32xf32>, vector<8x32xf32> -> vector<8x32xf32>
    %7 = arith.addf %3, %6 : vector<8x32xf32>
    %c0_6 = arith.constant 0 : index
    %c0_7 = arith.constant 0 : index
    %8 = vector.load %arg10[%c0_6, %c0_7] : memref<8x32xf32, #tpu.memory_space<vmem>>, vector<8x32xf32>
    tpu.vector_store %arg10[%c0_6, %c0_7], %7 {strides = array<i32>} : memref<8x32xf32, #tpu.memory_space<vmem>>, vector<8x32xf32>,
    %c0_i32_8 = arith.constant 0 : i32
    %9 = arith.cmpi eq, %arg2, %c0_i32_8 : i32
    %10 = arith.extui %9 : i1 to i32
    %c0_i32_9 = arith.constant 0 : i32
    %11 = arith.cmpi ne, %10, %c0_i32_9 : i32
    scf.if %11 {
      %c0_10 = arith.constant 0 : index
      %c0_11 = arith.constant 0 : index
      %12 = vector.load %arg10[%c0_10, %c0_11] : memref<8x32xf32, #tpu.memory_space<vmem>>, vector<8x32xf32>
      %c0_12 = arith.constant 0 : index
      %c0_13 = arith.constant 0 : index
      %13 = vector.load %arg5[%c0_12, %c0_13] : memref<1x32xf32, #tpu.memory_space<vmem>>, vector<1x32xf32>
      %14 = vector.broadcast %13 : vector<1x32xf32> to vector<8x32xf32>
      %15 = arith.addf %12, %14 : vector<8x32xf32>
      %c0_14 = arith.constant 0 : index
      %c0_15 = arith.constant 0 : index
      %16 = vector.load %arg6[%c0_14, %c0_15] : memref<8x32xf32, #tpu.memory_space<vmem>>, vector<8x32xf32>
      %17 = arith.addf %15, %16 : vector<8x32xf32>
      %cst_16 = arith.constant dense<0.000000e+00> : vector<8xf32>
      %18 = vector.multi_reduction <add>, %17, %cst_16 [1] : vector<8x32xf32> to vector<8xf32>
      %19 = vector.shape_cast %18 : vector<8xf32> to vector<8x1xf32>
      %cst_17 = arith.constant 3.200000e+01 : f32
      %20 = vector.broadcast %cst_17 : f32 to vector<8x1xf32>
      %21 = arith.divf %19, %20 : vector<8x1xf32>
      %22 = vector.broadcast %21 : vector<8x1xf32> to vector<8x32xf32>
      %23 = arith.subf %17, %22 : vector<8x32xf32>
      %24 = arith.mulf %23, %23 : vector<8x32xf32>
      %cst_18 = arith.constant dense<0.000000e+00> : vector<8xf32>
      %25 = vector.multi_reduction <add>, %24, %cst_18 [1] : vector<8x32xf32> to vector<8xf32>
      %26 = vector.shape_cast %25 : vector<8xf32> to vector<8x1xf32>
      %cst_19 = arith.constant 3.200000e+01 : f32
      %27 = vector.broadcast %cst_19 : f32 to vector<8x1xf32>
      %28 = arith.divf %26, %27 : vector<8x1xf32>
      %29 = vector.broadcast %21 : vector<8x1xf32> to vector<8x32xf32>
      %30 = arith.subf %17, %29 : vector<8x32xf32>
      %cst_20 = arith.constant 9.99999974E-6 : f32
      %31 = vector.broadcast %cst_20 : f32 to vector<8x1xf32>
      %32 = arith.addf %28, %31 : vector<8x1xf32>
      %33 = math.rsqrt %32 : vector<8x1xf32>
      %34 = vector.broadcast %33 : vector<8x1xf32> to vector<8x32xf32>
      %35 = arith.mulf %30, %34 : vector<8x32xf32>
      %c0_21 = arith.constant 0 : index
      %c0_22 = arith.constant 0 : index
      %36 = vector.load %arg7[%c0_21, %c0_22] : memref<1x32xf32, #tpu.memory_space<vmem>>, vector<1x32xf32>
      %37 = vector.broadcast %36 : vector<1x32xf32> to vector<8x32xf32>
      %38 = arith.mulf %35, %37 : vector<8x32xf32>
      %c0_23 = arith.constant 0 : index
      %c0_24 = arith.constant 0 : index
      %39 = vector.load %arg8[%c0_23, %c0_24] : memref<1x32xf32, #tpu.memory_space<vmem>>, vector<1x32xf32>
      %40 = vector.broadcast %39 : vector<1x32xf32> to vector<8x32xf32>
      %41 = arith.addf %38, %40 : vector<8x32xf32>
      %c0_25 = arith.constant 0 : index
      %c0_26 = arith.constant 0 : index
      %42 = vector.load %arg9[%c0_25, %c0_26] : memref<8x32xf32, #tpu.memory_space<vmem>>, vector<8x32xf32>
      tpu.vector_store %arg9[%c0_25, %c0_26], %41 {strides = array<i32>} : memref<8x32xf32, #tpu.memory_space<vmem>>, vector<8x32xf32>,
    } else {
    }
    return
  }
  func.func @transform_0(%arg0: i32, %arg1: i32, %arg2: i32) -> (i32, i32) {
    %c0_i32 = arith.constant 0 : i32
    return %arg0, %arg2 : i32, i32
  }
  func.func @transform_1(%arg0: i32, %arg1: i32, %arg2: i32) -> (i32, i32) {
    %c0_i32 = arith.constant 0 : i32
    return %arg2, %arg1 : i32, i32
  }
  func.func @transform_2(%arg0: i32, %arg1: i32, %arg2: i32) -> (i32, i32) {
    %c0_i32 = arith.constant 0 : i32
    %c0_i32_0 = arith.constant 0 : i32
    return %c0_i32, %arg1 : i32, i32
  }
  func.func @transform_3(%arg0: i32, %arg1: i32, %arg2: i32) -> (i32, i32) {
    %c0_i32 = arith.constant 0 : i32
    %c0_i32_0 = arith.constant 0 : i32
    return %arg0, %c0_i32 : i32, i32
  }
  func.func @transform_4(%arg0: i32, %arg1: i32, %arg2: i32) -> (i32, i32) {
    %c0_i32 = arith.constant 0 : i32
    %c0_i32_0 = arith.constant 0 : i32
    %c0_i32_1 = arith.constant 0 : i32
    return %c0_i32, %c0_i32_0 : i32, i32
  }
  func.func @transform_5(%arg0: i32, %arg1: i32, %arg2: i32) -> (i32, i32) {
    %c0_i32 = arith.constant 0 : i32
    %c0_i32_0 = arith.constant 0 : i32
    %c0_i32_1 = arith.constant 0 : i32
    return %c0_i32, %c0_i32_0 : i32, i32
  }
  func.func @transform_6(%arg0: i32, %arg1: i32, %arg2: i32) -> (i32, i32) {
    %c0_i32 = arith.constant 0 : i32
    return %arg0, %arg1 : i32, i32
  }
}

module attributes {stable_mosaic.version = 11 : i64} {
  func.func @kernel(%arg0: i32, %arg1: i32, %arg2: i32, %arg3: memref<8x32xf32, #tpu.memory_space<vmem>>, %arg4: memref<32x32xf32, #tpu.memory_space<vmem>>, %arg5: memref<1x32xf32, #tpu.memory_space<vmem>>, %arg6: memref<8x32xf32, #tpu.memory_space<vmem>>, %arg7: memref<1x32xf32, #tpu.memory_space<vmem>>, %arg8: memref<1x32xf32, #tpu.memory_space<vmem>>, %arg9: memref<8x32xf32, #tpu.memory_space<vmem>>, %arg10: memref<8x32xf32, #tpu.memory_space<vmem>>) attributes {dimension_semantics = [#tpu.dimension_semantics<parallel>, #tpu.dimension_semantics<parallel>, #tpu.dimension_semantics<arbitrary>], iteration_bounds = array<i64: 2, 1, 1>, scalar_prefetch = 0 : i64, scratch_operands = 1 : i64, tpu.core_type = #tpu.core_type<tc>, window_params = [{transform_indices = @transform_0, window_bounds = array<i64: 8, 32>}, {transform_indices = @transform_1, window_bounds = array<i64: 32, 32>}, {transform_indices = @transform_2, window_bounds = array<i64: 1, 32>}, {transform_indices = @transform_3, window_bounds = array<i64: 8, 32>}, {pipeline_mode = #tpu.pipeline_mode<synchronous>, transform_indices = @transform_4, window_bounds = array<i64: 1, 32>}, {pipeline_mode = #tpu.pipeline_mode<synchronous>, transform_indices = @transform_5, window_bounds = array<i64: 1, 32>}, {transform_indices = @transform_6, window_bounds = array<i64: 8, 32>}]} {
    %c0_i32 = arith.constant 0 : i32
    %0 = arith.cmpi eq, %arg2, %c0_i32 : i32
    %1 = arith.extui %0 : i1 to i32
    %c0_i32_0 = arith.constant 0 : i32
    %2 = arith.cmpi ne, %1, %c0_i32_0 : i32
    scf.if %2 {
      %cst_10 = arith.constant 0.000000e+00 : f32
      %12 = vector.broadcast %cst_10 : f32 to vector<8x32xf32>
      %c0_11 = arith.constant 0 : index
      %c0_12 = arith.constant 0 : index
      %13 = vector.load %arg10[%c0_11, %c0_12] : memref<8x32xf32, #tpu.memory_space<vmem>>, vector<8x32xf32>
      tpu.vector_store %arg10[%c0_11, %c0_12], %12 {strides = array<i32>} : memref<8x32xf32, #tpu.memory_space<vmem>>, vector<8x32xf32>,
    } else {
    }
    %c0 = arith.constant 0 : index
    %c0_1 = arith.constant 0 : index
    %3 = vector.load %arg10[%c0, %c0_1] : memref<8x32xf32, #tpu.memory_space<vmem>>, vector<8x32xf32>
    %c0_2 = arith.constant 0 : index
    %c0_3 = arith.constant 0 : index
    %4 = vector.load %arg3[%c0_2, %c0_3] : memref<8x32xf32, #tpu.memory_space<vmem>>, vector<8x32xf32>
    %c0_4 = arith.constant 0 : index
    %c0_5 = arith.constant 0 : index
    %5 = vector.load %arg4[%c0_4, %c0_5] : memref<32x32xf32, #tpu.memory_space<vmem>>, vector<32x32xf32>
    %cst = arith.constant dense<0.000000e+00> : vector<8x32xf32>
    %6 = tpu.matmul %4, %5, %cst {dimension_numbers = #tpu.dot_dimension_numbers<[1], [0], [0], [1], [0, 0, 1, 1], [], []>} : vector<8x32xf32>, vector<32x32xf32>, vector<8x32xf32> -> vector<8x32xf32>
    %7 = arith.addf %3, %6 : vector<8x32xf32>
    %c0_6 = arith.constant 0 : index
    %c0_7 = arith.constant 0 : index
    %8 = vector.load %arg10[%c0_6, %c0_7] : memref<8x32xf32, #tpu.memory_space<vmem>>, vector<8x32xf32>
    tpu.vector_store %arg10[%c0_6, %c0_7], %7 {strides = array<i32>} : memref<8x32xf32, #tpu.memory_space<vmem>>, vector<8x32xf32>,
    %c0_i32_8 = arith.constant 0 : i32
    %9 = arith.cmpi eq, %arg2, %c0_i32_8 : i32
    %10 = arith.extui %9 : i1 to i32
    %c0_i32_9 = arith.constant 0 : i32
    %11 = arith.cmpi ne, %10, %c0_i32_9 : i32
    scf.if %11 {
      %c0_10 = arith.constant 0 : index
      %c0_11 = arith.constant 0 : index
      %12 = vector.load %arg10[%c0_10, %c0_11] : memref<8x32xf32, #tpu.memory_space<vmem>>, vector<8x32xf32>
      %c0_12 = arith.constant 0 : index
      %c0_13 = arith.constant 0 : index
      %13 = vector.load %arg5[%c0_12, %c0_13] : memref<1x32xf32, #tpu.memory_space<vmem>>, vector<1x32xf32>
      %14 = vector.broadcast %13 : vector<1x32xf32> to vector<8x32xf32>
      %15 = arith.addf %12, %14 : vector<8x32xf32>
      %c0_14 = arith.constant 0 : index
      %c0_15 = arith.constant 0 : index
      %16 = vector.load %arg6[%c0_14, %c0_15] : memref<8x32xf32, #tpu.memory_space<vmem>>, vector<8x32xf32>
      %17 = arith.addf %15, %16 : vector<8x32xf32>
      %cst_16 = arith.constant dense<0.000000e+00> : vector<8xf32>
      %18 = vector.multi_reduction <add>, %17, %cst_16 [1] : vector<8x32xf32> to vector<8xf32>
      %19 = vector.shape_cast %18 : vector<8xf32> to vector<8x1xf32>
      %cst_17 = arith.constant 3.200000e+01 : f32
      %20 = vector.broadcast %cst_17 : f32 to vector<8x1xf32>
      %21 = arith.divf %19, %20 : vector<8x1xf32>
      %22 = vector.broadcast %21 : vector<8x1xf32> to vector<8x32xf32>
      %23 = arith.subf %17, %22 : vector<8x32xf32>
      %24 = arith.mulf %23, %23 : vector<8x32xf32>
      %cst_18 = arith.constant dense<0.000000e+00> : vector<8xf32>
      %25 = vector.multi_reduction <add>, %24, %cst_18 [1] : vector<8x32xf32> to vector<8xf32>
      %26 = vector.shape_cast %25 : vector<8xf32> to vector<8x1xf32>
      %cst_19 = arith.constant 3.200000e+01 : f32
      %27 = vector.broadcast %cst_19 : f32 to vector<8x1xf32>
      %28 = arith.divf %26, %27 : vector<8x1xf32>
      %29 = vector.broadcast %21 : vector<8x1xf32> to vector<8x32xf32>
      %30 = arith.subf %17, %29 : vector<8x32xf32>
      %cst_20 = arith.constant 9.99999974E-6 : f32
      %31 = vector.broadcast %cst_20 : f32 to vector<8x1xf32>
      %32 = arith.addf %28, %31 : vector<8x1xf32>
      %33 = math.rsqrt %32 : vector<8x1xf32>
      %34 = vector.broadcast %33 : vector<8x1xf32> to vector<8x32xf32>
      %35 = arith.mulf %30, %34 : vector<8x32xf32>
      %c0_21 = arith.constant 0 : index
      %c0_22 = arith.constant 0 : index
      %36 = vector.load %arg7[%c0_21, %c0_22] : memref<1x32xf32, #tpu.memory_space<vmem>>, vector<1x32xf32>
      %37 = vector.broadcast %36 : vector<1x32xf32> to vector<8x32xf32>
      %38 = arith.mulf %35, %37 : vector<8x32xf32>
      %c0_23 = arith.constant 0 : index
      %c0_24 = arith.constant 0 : index
      %39 = vector.load %arg8[%c0_23, %c0_24] : memref<1x32xf32, #tpu.memory_space<vmem>>, vector<1x32xf32>
      %40 = vector.broadcast %39 : vector<1x32xf32> to vector<8x32xf32>
      %41 = arith.addf %38, %40 : vector<8x32xf32>
      %c0_25 = arith.constant 0 : index
      %c0_26 = arith.constant 0 : index
      %42 = vector.load %arg9[%c0_25, %c0_26] : memref<8x32xf32, #tpu.memory_space<vmem>>, vector<8x32xf32>
      tpu.vector_store %arg9[%c0_25, %c0_26], %41 {strides = array<i32>} : memref<8x32xf32, #tpu.memory_space<vmem>>, vector<8x32xf32>,
    } else {
    }
    return
  }
  func.func @transform_0(%arg0: i32, %arg1: i32, %arg2: i32) -> (i32, i32) {
    %c0_i32 = arith.constant 0 : i32
    return %arg0, %arg2 : i32, i32
  }
  func.func @transform_1(%arg0: i32, %arg1: i32, %arg2: i32) -> (i32, i32) {
    %c0_i32 = arith.constant 0 : i32
    return %arg2, %arg1 : i32, i32
  }
  func.func @transform_2(%arg0: i32, %arg1: i32, %arg2: i32) -> (i32, i32) {
    %c0_i32 = arith.constant 0 : i32
    %c0_i32_0 = arith.constant 0 : i32
    return %c0_i32, %arg1 : i32, i32
  }
  func.func @transform_3(%arg0: i32, %arg1: i32, %arg2: i32) -> (i32, i32) {
    %c0_i32 = arith.constant 0 : i32
    %c0_i32_0 = arith.constant 0 : i32
    return %arg0, %c0_i32 : i32, i32
  }
  func.func @transform_4(%arg0: i32, %arg1: i32, %arg2: i32) -> (i32, i32) {
    %c0_i32 = arith.constant 0 : i32
    %c0_i32_0 = arith.constant 0 : i32
    %c0_i32_1 = arith.constant 0 : i32
    return %c0_i32, %c0_i32_0 : i32, i32
  }
  func.func @transform_5(%arg0: i32, %arg1: i32, %arg2: i32) -> (i32, i32) {
    %c0_i32 = arith.constant 0 : i32
    %c0_i32_0 = arith.constant 0 : i32
    %c0_i32_1 = arith.constant 0 : i32
    return %c0_i32, %c0_i32_0 : i32, i32
  }
  func.func @transform_6(%arg0: i32, %arg1: i32, %arg2: i32) -> (i32, i32) {
    %c0_i32 = arith.constant 0 : i32
    return %arg0, %arg1 : i32, i32
  }
}

module attributes {stable_mosaic.version = 11 : i64} {
  func.func @kernel(%arg0: i32, %arg1: i32, %arg2: i32, %arg3: memref<8x32xf32, #tpu.memory_space<vmem>>, %arg4: memref<32x32xf32, #tpu.memory_space<vmem>>, %arg5: memref<1x32xf32, #tpu.memory_space<vmem>>, %arg6: memref<8x32xf32, #tpu.memory_space<vmem>>, %arg7: memref<8x32xf32, #tpu.memory_space<vmem>>) attributes {dimension_semantics = [#tpu.dimension_semantics<parallel>, #tpu.dimension_semantics<parallel>, #tpu.dimension_semantics<arbitrary>], iteration_bounds = array<i64: 2, 1, 1>, scalar_prefetch = 0 : i64, scratch_operands = 1 : i64, tpu.core_type = #tpu.core_type<tc>, window_params = [{transform_indices = @transform_0, window_bounds = array<i64: 8, 32>}, {transform_indices = @transform_1, window_bounds = array<i64: 32, 32>}, {transform_indices = @transform_2, window_bounds = array<i64: 1, 32>}, {transform_indices = @transform_3, window_bounds = array<i64: 8, 32>}]} {
    %c0_i32 = arith.constant 0 : i32
    %0 = arith.cmpi eq, %arg2, %c0_i32 : i32
    %1 = arith.extui %0 : i1 to i32
    %c0_i32_0 = arith.constant 0 : i32
    %2 = arith.cmpi ne, %1, %c0_i32_0 : i32
    scf.if %2 {
      %cst_10 = arith.constant 0.000000e+00 : f32
      %12 = vector.broadcast %cst_10 : f32 to vector<8x32xf32>
      %c0_11 = arith.constant 0 : index
      %c0_12 = arith.constant 0 : index
      %13 = vector.load %arg7[%c0_11, %c0_12] : memref<8x32xf32, #tpu.memory_space<vmem>>, vector<8x32xf32>
      tpu.vector_store %arg7[%c0_11, %c0_12], %12 {strides = array<i32>} : memref<8x32xf32, #tpu.memory_space<vmem>>, vector<8x32xf32>,
    } else {
    }
    %c0 = arith.constant 0 : index
    %c0_1 = arith.constant 0 : index
    %3 = vector.load %arg7[%c0, %c0_1] : memref<8x32xf32, #tpu.memory_space<vmem>>, vector<8x32xf32>
    %c0_2 = arith.constant 0 : index
    %c0_3 = arith.constant 0 : index
    %4 = vector.load %arg3[%c0_2, %c0_3] : memref<8x32xf32, #tpu.memory_space<vmem>>, vector<8x32xf32>
    %c0_4 = arith.constant 0 : index
    %c0_5 = arith.constant 0 : index
    %5 = vector.load %arg4[%c0_4, %c0_5] : memref<32x32xf32, #tpu.memory_space<vmem>>, vector<32x32xf32>
    %cst = arith.constant dense<0.000000e+00> : vector<8x32xf32>
    %6 = tpu.matmul %4, %5, %cst {dimension_numbers = #tpu.dot_dimension_numbers<[1], [0], [0], [1], [0, 0, 1, 1], [], []>} : vector<8x32xf32>, vector<32x32xf32>, vector<8x32xf32> -> vector<8x32xf32>
    %7 = arith.addf %3, %6 : vector<8x32xf32>
    %c0_6 = arith.constant 0 : index
    %c0_7 = arith.constant 0 : index
    %8 = vector.load %arg7[%c0_6, %c0_7] : memref<8x32xf32, #tpu.memory_space<vmem>>, vector<8x32xf32>
    tpu.vector_store %arg7[%c0_6, %c0_7], %7 {strides = array<i32>} : memref<8x32xf32, #tpu.memory_space<vmem>>, vector<8x32xf32>,
    %c0_i32_8 = arith.constant 0 : i32
    %9 = arith.cmpi eq, %arg2, %c0_i32_8 : i32
    %10 = arith.extui %9 : i1 to i32
    %c0_i32_9 = arith.constant 0 : i32
    %11 = arith.cmpi ne, %10, %c0_i32_9 : i32
    scf.if %11 {
      %c0_10 = arith.constant 0 : index
      %c0_11 = arith.constant 0 : index
      %12 = vector.load %arg7[%c0_10, %c0_11] : memref<8x32xf32, #tpu.memory_space<vmem>>, vector<8x32xf32>
      %c0_12 = arith.constant 0 : index
      %c0_13 = arith.constant 0 : index
      %13 = vector.load %arg5[%c0_12, %c0_13] : memref<1x32xf32, #tpu.memory_space<vmem>>, vector<1x32xf32>
      %14 = vector.broadcast %13 : vector<1x32xf32> to vector<8x32xf32>
      %15 = arith.addf %12, %14 : vector<8x32xf32>
      %c0_14 = arith.constant 0 : index
      %c0_15 = arith.constant 0 : index
      %16 = vector.load %arg6[%c0_14, %c0_15] : memref<8x32xf32, #tpu.memory_space<vmem>>, vector<8x32xf32>
      tpu.vector_store %arg6[%c0_14, %c0_15], %15 {strides = array<i32>} : memref<8x32xf32, #tpu.memory_space<vmem>>, vector<8x32xf32>,
    } else {
    }
    return
  }
  func.func @transform_0(%arg0: i32, %arg1: i32, %arg2: i32) -> (i32, i32) {
    %c0_i32 = arith.constant 0 : i32
    return %arg0, %arg2 : i32, i32
  }
  func.func @transform_1(%arg0: i32, %arg1: i32, %arg2: i32) -> (i32, i32) {
    %c0_i32 = arith.constant 0 : i32
    return %arg2, %arg1 : i32, i32
  }
  func.func @transform_2(%arg0: i32, %arg1: i32, %arg2: i32) -> (i32, i32) {
    %c0_i32 = arith.constant 0 : i32
    %c0_i32_0 = arith.constant 0 : i32
    return %c0_i32, %arg1 : i32, i32
  }
  func.func @transform_3(%arg0: i32, %arg1: i32, %arg2: i32) -> (i32, i32) {
    %c0_i32 = arith.constant 0 : i32
    return %arg0, %arg1 : i32, i32
  }
}

module attributes {stable_mosaic.version = 11 : i64} {
  func.func @kernel(%arg0: i32, %arg1: i32, %arg2: i32, %arg3: memref<8x32xf32, #tpu.memory_space<vmem>>, %arg4: memref<32x64xf32, #tpu.memory_space<vmem>>, %arg5: memref<1x64xf32, #tpu.memory_space<vmem>>, %arg6: memref<8x64xf32, #tpu.memory_space<vmem>>, %arg7: memref<8x64xf32, #tpu.memory_space<vmem>>) attributes {dimension_semantics = [#tpu.dimension_semantics<parallel>, #tpu.dimension_semantics<parallel>, #tpu.dimension_semantics<arbitrary>], iteration_bounds = array<i64: 2, 1, 1>, scalar_prefetch = 0 : i64, scratch_operands = 1 : i64, tpu.core_type = #tpu.core_type<tc>, window_params = [{transform_indices = @transform_0, window_bounds = array<i64: 8, 32>}, {transform_indices = @transform_1, window_bounds = array<i64: 32, 64>}, {transform_indices = @transform_2, window_bounds = array<i64: 1, 64>}, {transform_indices = @transform_3, window_bounds = array<i64: 8, 64>}]} {
    %c0_i32 = arith.constant 0 : i32
    %0 = arith.cmpi eq, %arg2, %c0_i32 : i32
    %1 = arith.extui %0 : i1 to i32
    %c0_i32_0 = arith.constant 0 : i32
    %2 = arith.cmpi ne, %1, %c0_i32_0 : i32
    scf.if %2 {
      %cst_10 = arith.constant 0.000000e+00 : f32
      %12 = vector.broadcast %cst_10 : f32 to vector<8x64xf32>
      %c0_11 = arith.constant 0 : index
      %c0_12 = arith.constant 0 : index
      %13 = vector.load %arg7[%c0_11, %c0_12] : memref<8x64xf32, #tpu.memory_space<vmem>>, vector<8x64xf32>
      tpu.vector_store %arg7[%c0_11, %c0_12], %12 {strides = array<i32>} : memref<8x64xf32, #tpu.memory_space<vmem>>, vector<8x64xf32>,
    } else {
    }
    %c0 = arith.constant 0 : index
    %c0_1 = arith.constant 0 : index
    %3 = vector.load %arg7[%c0, %c0_1] : memref<8x64xf32, #tpu.memory_space<vmem>>, vector<8x64xf32>
    %c0_2 = arith.constant 0 : index
    %c0_3 = arith.constant 0 : index
    %4 = vector.load %arg3[%c0_2, %c0_3] : memref<8x32xf32, #tpu.memory_space<vmem>>, vector<8x32xf32>
    %c0_4 = arith.constant 0 : index
    %c0_5 = arith.constant 0 : index
    %5 = vector.load %arg4[%c0_4, %c0_5] : memref<32x64xf32, #tpu.memory_space<vmem>>, vector<32x64xf32>
    %cst = arith.constant dense<0.000000e+00> : vector<8x64xf32>
    %6 = tpu.matmul %4, %5, %cst {dimension_numbers = #tpu.dot_dimension_numbers<[1], [0], [0], [1], [0, 0, 1, 1], [], []>} : vector<8x32xf32>, vector<32x64xf32>, vector<8x64xf32> -> vector<8x64xf32>
    %7 = arith.addf %3, %6 : vector<8x64xf32>
    %c0_6 = arith.constant 0 : index
    %c0_7 = arith.constant 0 : index
    %8 = vector.load %arg7[%c0_6, %c0_7] : memref<8x64xf32, #tpu.memory_space<vmem>>, vector<8x64xf32>
    tpu.vector_store %arg7[%c0_6, %c0_7], %7 {strides = array<i32>} : memref<8x64xf32, #tpu.memory_space<vmem>>, vector<8x64xf32>,
    %c0_i32_8 = arith.constant 0 : i32
    %9 = arith.cmpi eq, %arg2, %c0_i32_8 : i32
    %10 = arith.extui %9 : i1 to i32
    %c0_i32_9 = arith.constant 0 : i32
    %11 = arith.cmpi ne, %10, %c0_i32_9 : i32
    scf.if %11 {
      %c0_10 = arith.constant 0 : index
      %c0_11 = arith.constant 0 : index
      %12 = vector.load %arg7[%c0_10, %c0_11] : memref<8x64xf32, #tpu.memory_space<vmem>>, vector<8x64xf32>
      %c0_12 = arith.constant 0 : index
      %c0_13 = arith.constant 0 : index
      %13 = vector.load %arg5[%c0_12, %c0_13] : memref<1x64xf32, #tpu.memory_space<vmem>>, vector<1x64xf32>
      %14 = vector.broadcast %13 : vector<1x64xf32> to vector<8x64xf32>
      %15 = arith.addf %12, %14 : vector<8x64xf32>
      %cst_14 = arith.constant 5.000000e-01 : f32
      %16 = vector.broadcast %cst_14 : f32 to vector<8x64xf32>
      %17 = arith.mulf %16, %15 : vector<8x64xf32>
      %cst_15 = arith.constant 4.471500e-02 : f32
      %18 = vector.broadcast %cst_15 : f32 to vector<8x64xf32>
      %19 = arith.mulf %18, %15 : vector<8x64xf32>
      %20 = arith.mulf %19, %15 : vector<8x64xf32>
      %21 = arith.mulf %20, %15 : vector<8x64xf32>
      %22 = arith.addf %15, %21 : vector<8x64xf32>
      %cst_16 = arith.constant 0.797884583 : f32
      %23 = vector.broadcast %cst_16 : f32 to vector<8x64xf32>
      %24 = arith.mulf %23, %22 : vector<8x64xf32>
      %25 = math.tanh %24 : vector<8x64xf32>
      %cst_17 = arith.constant 1.000000e+00 : f32
      %26 = vector.broadcast %cst_17 : f32 to vector<8x64xf32>
      %27 = arith.addf %26, %25 : vector<8x64xf32>
      %28 = arith.mulf %17, %27 : vector<8x64xf32>
      %c0_18 = arith.constant 0 : index
      %c0_19 = arith.constant 0 : index
      %29 = vector.load %arg6[%c0_18, %c0_19] : memref<8x64xf32, #tpu.memory_space<vmem>>, vector<8x64xf32>
      tpu.vector_store %arg6[%c0_18, %c0_19], %28 {strides = array<i32>} : memref<8x64xf32, #tpu.memory_space<vmem>>, vector<8x64xf32>,
    } else {
    }
    return
  }
  func.func @transform_0(%arg0: i32, %arg1: i32, %arg2: i32) -> (i32, i32) {
    %c0_i32 = arith.constant 0 : i32
    return %arg0, %arg2 : i32, i32
  }
  func.func @transform_1(%arg0: i32, %arg1: i32, %arg2: i32) -> (i32, i32) {
    %c0_i32 = arith.constant 0 : i32
    return %arg2, %arg1 : i32, i32
  }
  func.func @transform_2(%arg0: i32, %arg1: i32, %arg2: i32) -> (i32, i32) {
    %c0_i32 = arith.constant 0 : i32
    %c0_i32_0 = arith.constant 0 : i32
    return %c0_i32, %arg1 : i32, i32
  }
  func.func @transform_3(%arg0: i32, %arg1: i32, %arg2: i32) -> (i32, i32) {
    %c0_i32 = arith.constant 0 : i32
    return %arg0, %arg1 : i32, i32
  }
}

module attributes {stable_mosaic.version = 11 : i64} {
  func.func @kernel(%arg0: i32, %arg1: i32, %arg2: i32, %arg3: memref<8x64xf32, #tpu.memory_space<vmem>>, %arg4: memref<64x32xf32, #tpu.memory_space<vmem>>, %arg5: memref<1x32xf32, #tpu.memory_space<vmem>>, %arg6: memref<8x32xf32, #tpu.memory_space<vmem>>, %arg7: memref<1x32xf32, #tpu.memory_space<vmem>>, %arg8: memref<1x32xf32, #tpu.memory_space<vmem>>, %arg9: memref<8x32xf32, #tpu.memory_space<vmem>>, %arg10: memref<8x32xf32, #tpu.memory_space<vmem>>) attributes {dimension_semantics = [#tpu.dimension_semantics<parallel>, #tpu.dimension_semantics<parallel>, #tpu.dimension_semantics<arbitrary>], iteration_bounds = array<i64: 2, 1, 1>, scalar_prefetch = 0 : i64, scratch_operands = 1 : i64, tpu.core_type = #tpu.core_type<tc>, window_params = [{transform_indices = @transform_0, window_bounds = array<i64: 8, 64>}, {transform_indices = @transform_1, window_bounds = array<i64: 64, 32>}, {transform_indices = @transform_2, window_bounds = array<i64: 1, 32>}, {transform_indices = @transform_3, window_bounds = array<i64: 8, 32>}, {pipeline_mode = #tpu.pipeline_mode<synchronous>, transform_indices = @transform_4, window_bounds = array<i64: 1, 32>}, {pipeline_mode = #tpu.pipeline_mode<synchronous>, transform_indices = @transform_5, window_bounds = array<i64: 1, 32>}, {transform_indices = @transform_6, window_bounds = array<i64: 8, 32>}]} {
    %c0_i32 = arith.constant 0 : i32
    %0 = arith.cmpi eq, %arg2, %c0_i32 : i32
    %1 = arith.extui %0 : i1 to i32
    %c0_i32_0 = arith.constant 0 : i32
    %2 = arith.cmpi ne, %1, %c0_i32_0 : i32
    scf.if %2 {
      %cst_10 = arith.constant 0.000000e+00 : f32
      %12 = vector.broadcast %cst_10 : f32 to vector<8x32xf32>
      %c0_11 = arith.constant 0 : index
      %c0_12 = arith.constant 0 : index
      %13 = vector.load %arg10[%c0_11, %c0_12] : memref<8x32xf32, #tpu.memory_space<vmem>>, vector<8x32xf32>
      tpu.vector_store %arg10[%c0_11, %c0_12], %12 {strides = array<i32>} : memref<8x32xf32, #tpu.memory_space<vmem>>, vector<8x32xf32>,
    } else {
    }
    %c0 = arith.constant 0 : index
    %c0_1 = arith.constant 0 : index
    %3 = vector.load %arg10[%c0, %c0_1] : memref<8x32xf32, #tpu.memory_space<vmem>>, vector<8x32xf32>
    %c0_2 = arith.constant 0 : index
    %c0_3 = arith.constant 0 : index
    %4 = vector.load %arg3[%c0_2, %c0_3] : memref<8x64xf32, #tpu.memory_space<vmem>>, vector<8x64xf32>
    %c0_4 = arith.constant 0 : index
    %c0_5 = arith.constant 0 : index
    %5 = vector.load %arg4[%c0_4, %c0_5] : memref<64x32xf32, #tpu.memory_space<vmem>>, vector<64x32xf32>
    %cst = arith.constant dense<0.000000e+00> : vector<8x32xf32>
    %6 = tpu.matmul %4, %5, %cst {dimension_numbers = #tpu.dot_dimension_numbers<[1], [0], [0], [1], [0, 0, 1, 1], [], []>} : vector<8x64xf32>, vector<64x32xf32>, vector<8x32xf32> -> vector<8x32xf32>
    %7 = arith.addf %3, %6 : vector<8x32xf32>
    %c0_6 = arith.constant 0 : index
    %c0_7 = arith.constant 0 : index
    %8 = vector.load %arg10[%c0_6, %c0_7] : memref<8x32xf32, #tpu.memory_space<vmem>>, vector<8x32xf32>
    tpu.vector_store %arg10[%c0_6, %c0_7], %7 {strides = array<i32>} : memref<8x32xf32, #tpu.memory_space<vmem>>, vector<8x32xf32>,
    %c0_i32_8 = arith.constant 0 : i32
    %9 = arith.cmpi eq, %arg2, %c0_i32_8 : i32
    %10 = arith.extui %9 : i1 to i32
    %c0_i32_9 = arith.constant 0 : i32
    %11 = arith.cmpi ne, %10, %c0_i32_9 : i32
    scf.if %11 {
      %c0_10 = arith.constant 0 : index
      %c0_11 = arith.constant 0 : index
      %12 = vector.load %arg10[%c0_10, %c0_11] : memref<8x32xf32, #tpu.memory_space<vmem>>, vector<8x32xf32>
      %c0_12 = arith.constant 0 : index
      %c0_13 = arith.constant 0 : index
      %13 = vector.load %arg5[%c0_12, %c0_13] : memref<1x32xf32, #tpu.memory_space<vmem>>, vector<1x32xf32>
      %14 = vector.broadcast %13 : vector<1x32xf32> to vector<8x32xf32>
      %15 = arith.addf %12, %14 : vector<8x32xf32>
      %c0_14 = arith.constant 0 : index
      %c0_15 = arith.constant 0 : index
      %16 = vector.load %arg6[%c0_14, %c0_15] : memref<8x32xf32, #tpu.memory_space<vmem>>, vector<8x32xf32>
      %17 = arith.addf %15, %16 : vector<8x32xf32>
      %cst_16 = arith.constant dense<0.000000e+00> : vector<8xf32>
      %18 = vector.multi_reduction <add>, %17, %cst_16 [1] : vector<8x32xf32> to vector<8xf32>
      %19 = vector.shape_cast %18 : vector<8xf32> to vector<8x1xf32>
      %cst_17 = arith.constant 3.200000e+01 : f32
      %20 = vector.broadcast %cst_17 : f32 to vector<8x1xf32>
      %21 = arith.divf %19, %20 : vector<8x1xf32>
      %22 = vector.broadcast %21 : vector<8x1xf32> to vector<8x32xf32>
      %23 = arith.subf %17, %22 : vector<8x32xf32>
      %24 = arith.mulf %23, %23 : vector<8x32xf32>
      %cst_18 = arith.constant dense<0.000000e+00> : vector<8xf32>
      %25 = vector.multi_reduction <add>, %24, %cst_18 [1] : vector<8x32xf32> to vector<8xf32>
      %26 = vector.shape_cast %25 : vector<8xf32> to vector<8x1xf32>
      %cst_19 = arith.constant 3.200000e+01 : f32
      %27 = vector.broadcast %cst_19 : f32 to vector<8x1xf32>
      %28 = arith.divf %26, %27 : vector<8x1xf32>
      %29 = vector.broadcast %21 : vector<8x1xf32> to vector<8x32xf32>
      %30 = arith.subf %17, %29 : vector<8x32xf32>
      %cst_20 = arith.constant 9.99999974E-6 : f32
      %31 = vector.broadcast %cst_20 : f32 to vector<8x1xf32>
      %32 = arith.addf %28, %31 : vector<8x1xf32>
      %33 = math.rsqrt %32 : vector<8x1xf32>
      %34 = vector.broadcast %33 : vector<8x1xf32> to vector<8x32xf32>
      %35 = arith.mulf %30, %34 : vector<8x32xf32>
      %c0_21 = arith.constant 0 : index
      %c0_22 = arith.constant 0 : index
      %36 = vector.load %arg7[%c0_21, %c0_22] : memref<1x32xf32, #tpu.memory_space<vmem>>, vector<1x32xf32>
      %37 = vector.broadcast %36 : vector<1x32xf32> to vector<8x32xf32>
      %38 = arith.mulf %35, %37 : vector<8x32xf32>
      %c0_23 = arith.constant 0 : index
      %c0_24 = arith.constant 0 : index
      %39 = vector.load %arg8[%c0_23, %c0_24] : memref<1x32xf32, #tpu.memory_space<vmem>>, vector<1x32xf32>
      %40 = vector.broadcast %39 : vector<1x32xf32> to vector<8x32xf32>
      %41 = arith.addf %38, %40 : vector<8x32xf32>
      %c0_25 = arith.constant 0 : index
      %c0_26 = arith.constant 0 : index
      %42 = vector.load %arg9[%c0_25, %c0_26] : memref<8x32xf32, #tpu.memory_space<vmem>>, vector<8x32xf32>
      tpu.vector_store %arg9[%c0_25, %c0_26], %41 {strides = array<i32>} : memref<8x32xf32, #tpu.memory_space<vmem>>, vector<8x32xf32>,
    } else {
    }
    return
  }
  func.func @transform_0(%arg0: i32, %arg1: i32, %arg2: i32) -> (i32, i32) {
    %c0_i32 = arith.constant 0 : i32
    return %arg0, %arg2 : i32, i32
  }
  func.func @transform_1(%arg0: i32, %arg1: i32, %arg2: i32) -> (i32, i32) {
    %c0_i32 = arith.constant 0 : i32
    return %arg2, %arg1 : i32, i32
  }
  func.func @transform_2(%arg0: i32, %arg1: i32, %arg2: i32) -> (i32, i32) {
    %c0_i32 = arith.constant 0 : i32
    %c0_i32_0 = arith.constant 0 : i32
    return %c0_i32, %arg1 : i32, i32
  }
  func.func @transform_3(%arg0: i32, %arg1: i32, %arg2: i32) -> (i32, i32) {
    %c0_i32 = arith.constant 0 : i32
    %c0_i32_0 = arith.constant 0 : i32
    return %arg0, %c0_i32 : i32, i32
  }
  func.func @transform_4(%arg0: i32, %arg1: i32, %arg2: i32) -> (i32, i32) {
    %c0_i32 = arith.constant 0 : i32
    %c0_i32_0 = arith.constant 0 : i32
    %c0_i32_1 = arith.constant 0 : i32
    return %c0_i32, %c0_i32_0 : i32, i32
  }
  func.func @transform_5(%arg0: i32, %arg1: i32, %arg2: i32) -> (i32, i32) {
    %c0_i32 = arith.constant 0 : i32
    %c0_i32_0 = arith.constant 0 : i32
    %c0_i32_1 = arith.constant 0 : i32
    return %c0_i32, %c0_i32_0 : i32, i32
  }
  func.func @transform_6(%arg0: i32, %arg1: i32, %arg2: i32) -> (i32, i32) {
    %c0_i32 = arith.constant 0 : i32
    return %arg0, %arg1 : i32, i32
  }
}

</mosaic_0001>

<bundles_post_ra>
// kernel: decoder_forward.18
= control target key start
LH: loop header
LB: loop body
LE: loop exit
PB: predicated region body
PF: predicated region fallthrough
CT: control target
= control target key end

     0   :  { %11 = vsyncpa [#allocation4], 0  ;;  %s734_s18 = smov 0   ;;  %s736_s19 = smov 0   ;;  %s792_s0 = inlined_call_operand.vmem [shape: f32[16,32], index: 0, kind: input, shape index: {}]   ;;  %s793_s1 = inlined_call_operand.hbm [shape: f32[32,96], index: 1, kind: input, shape index: {}]   ;;  %s794_s2 = inlined_call_operand.vmem [shape: f32[1,96], index: 2, kind: input, shape index: {}]   ;;  %s795_s3 = inlined_call_operand.vmem [shape: f32[16,32], index: 3, kind: output, shape index: {0}]   ;;  %s796_s4 = inlined_call_operand.vmem [shape: f32[16,32], index: 4, kind: output, shape index: {1}]   ;;  %s797_s5 = inlined_call_operand.vmem [shape: f32[16,32], index: 5, kind: output, shape index: {2}]  }
   0x1   :  { %s738_s20 = smov 0  }
   0x2 LB: > { %s584_s21 = sadd.s32 4294967295, %s696_s20   ;;  %s36_s22 = sadd.s32 1, %s692_s19  ;;  %s696_s20 = sphi %s738_s20, %s17_s20   ;;  %s692_s19 = sphi %s736_s19, %s799_s19   ;;  %s688_s18 = sphi %s734_s18, %s798_s18  }
   0x3   : > { %p38_p0 = scmp.ge.s32.totalorder %s36_s22, 2  ;;  %p586_p1 = scmp.ge.s32.totalorder %s696_s20, 1 }
   0x4   : > { %p207_p2 = scmp.lt.s32.totalorder %s696_s20, 3  ;;  %p607_p4 = scmp.eq.s32.totalorder %s584_s21, 0 }
   0x5   : > { %s801_s22 = smov (%p38_p0, %s36_s22), 0  ;;  %s222_s25 = sshll.u32 %s793_s1, 4  ;;  %s223_s25 = int_to_ptr.hbm [resolvable:$true] %s222_s25 }
   0x6   : > { %p208_p3 = pnand %p586_p1, %p207_p2  ;;  %s698_s26 = smov [#allocation3]  }
   0x7   : > { %s224_s27 = sshll.u32 %s698_s26, 4  ;;  %s699_s28 = smov 128   ;;  %s225_s27 = int_to_ptr.vmem [resolvable:$true] %s224_s27 }
   0x8   : > { %p603_p5 = pneg %p208_p3  ;;  %s700_s29 = smov 8  }
   0x9   : > { %256 = sbr.rel (%p208_p3) target bundleno = 285 (0x11d), region = 32 }
   0xa   : > { %p604_p6 = pnand %p607_p4, %p603_p5 }
   0xc   : > { %606 = dma.hbm_to_vmem [thread:$0]  (!%p604_p6), %s223_s25, 512, %s225_s27, [#allocation4], %s699_s28, %s699_s28, %s700_s29  }
   0xe   : > { %683 = dma.done.wait (%p607_p4), [#allocation4], 512  }
   0xf   : > { %685 = vsyncadd (%p607_p4), [#allocation4], 4294966784  ;;  %p306_p7 = scmp.lt.s32.totalorder %s688_s18, 1  ;;  %vm342_vm0 = vcmask 785408   ;;  %v701_v0 = vmov 0.0   ;;  %v349_v1 = vld [vmem:[#allocation3 + $0x18] sm:$0xff] }
  0x10   : > { %343 = vst.msk [vmem:[#allocation2] sm:$0xff] %vm342_vm0, %v701_v0  ;;  %v348_v2 = vld [vmem:[#allocation3 + $0x10] sm:$0xff]  ;;  %366 = vmatpush.msra.mxu0 %v349_v1  ;;  %v347_v3 = vld [vmem:[#allocation3 + $0x8] sm:$0xff]  ;;  %v346_v4 = vld [vmem:[#allocation3] sm:$0xff]  ;;  %vm350_vm1 = vcmask 261120   ;;  %s702_s14 = smov 96  }
  0x11   : > { %s803_s18 = smov (!%p306_p7, %s688_s18), 1  ;;  %v639_v9 = vld [vmem:[%s794_s2] ss:$0 sm:$0xff]  ;;  %s703_s15 = smov 64  }
  0x12   : > { %s757_s30 = sshll.u32 %s803_s18, 3  ;;  %367 = vmatpush.msra.mxu0 %v348_v2 }
  0x13   : > { %s312_s8 = scalar_lea.vmem %s792_s0, %s757_s30  ;;  %s323_s13 = scalar_lea.vmem %s795_s3, %s757_s30 }
  0x14   : > { %368 = vmatpush.msra.mxu0 %v347_v3  ;;  %v345_v5 = vld [vmem:[%s312_s8] sm:$0xff]  ;;  %s330_s18 = scalar_lea.vmem %s796_s4, %s757_s30  ;;  %s337_s24 = scalar_lea.vmem %s797_s5, %s757_s30 }
  0x16   : > { %369 = vmatpush.msra.mxu0 %v346_v4 }
  0x17   : > { %596 = vmatmul.msk.f32.vlgmr.msra.gmra.mxu0 %vm350_vm1, %v345_v5  ;;  %v344_v6 = vld [vmem:[#allocation2] sm:$0xff] }
  0x94   : > { %v371_v7 = vpop.f32.mrf.mxu0 }
  0x95   : > { %v374_v8 = vadd.f32 %v371_v7, %v344_v6 }
  0x97   : > { %376 = vst.msk [vmem:[#allocation2] sm:$0xff] %vm342_vm0, %v374_v8 }
  0x9e   : > { %v380_v10 = vld [vmem:[#allocation2] sm:$0xff] }
  0x9f   : > { %v385_v11 = vadd.f32 %v639_v9, %v380_v10 }
  0xa1   : > { %388 = vrot.lane.b32.xlu0 %v385_v11, %s702_s14  ;;  %386 = vst.msk [vmem:[%s323_s13] sm:$0xff] %vm350_vm1, %v385_v11 }
  0xa9   : > { %392 = vrot.lane.b32.xlu0 %v385_v11, %s703_s15 }
 0x113   : > { %v389_v12 = vpop.permute.xlu0 %388 }
 0x114   : > { %391 = vst.msk [vmem:[%s330_s18] sm:$0xff] %vm350_vm1, %v389_v12 }
 0x11b   : > { %v393_v13 = vpop.permute.xlu0 %392 }
 0x11c   : > { %395 = vst.msk [vmem:[%s337_s24] sm:$0xff] %vm350_vm1, %v393_v13 }
 0x11d PF: > { %s17_s20 = sadd.s32 1, %s696_s20   ;;  %s798_s18 = smov %s692_s19 }
 0x11e   : > { %p14_p8 = scmp.ge.s32.totalorder %s17_s20, 4   ;;  %s799_s19 = smov %s801_s22 }
 0x120   :  { %16 = sbr.rel (!%p14_p8) target bundleno = 2 (0x2), region = 103 }
 0x125   :  { %461 = vsyncpa [#allocation4], 1 }
 0x126   :  { %463 = vsyncpa [#allocation4 + $0x1], 1 }

// kernel: decoder_forward.22
= control target key start
LH: loop header
LB: loop body
LE: loop exit
PB: predicated region body
PF: predicated region fallthrough
CT: control target
= control target key end

     0   :  { %10 = vsyncpa [#allocation4], 0  ;;  %s816_s0 = inlined_call_operand.hbm [shape: f32[16,32], index: 0, kind: input, shape index: {}]   ;;  %s817_s1 = inlined_call_operand.vmem [shape: f32[32,64], index: 1, kind: input, shape index: {}]   ;;  %s818_s2 = inlined_call_operand.vmem [shape: f32[1,64], index: 2, kind: input, shape index: {}]   ;;  %s819_s3 = inlined_call_operand.vmem [shape: f32[16,32], index: 3, kind: output, shape index: {0}]   ;;  %s820_s4 = inlined_call_operand.vmem [shape: f32[16,32], index: 4, kind: output, shape index: {1}]  }
   0x1   :  { %12 = vsyncpa [#allocation4 + $0x1], 0  ;;  %s705_s15 = smov 0   ;;  %s707_s16 = smov 0  }
   0x2   :  { %s709_s17 = smov 0   ;;  %s711_s18 = smov 0  }
   0x3   :  { %s713_s19 = smov 0   ;;  %s715_s20 = smov 0  }
   0x4 LB: > { %s523_s21 = sadd.s32 4294967295, %s676_s20   ;;  %s37_s22 = sadd.s32 1, %s672_s19  ;;  %s676_s20 = sphi %s715_s20, %s18_s20   ;;  %s672_s19 = sphi %s713_s19, %s827_s19   ;;  %s668_s18 = sphi %s711_s18, %s826_s18   ;;  %s664_s17 = sphi %s709_s17, %s825_s17   ;;  %s660_s16 = sphi %s707_s16, %s824_s16   ;;  %s656_s15 = sphi %s705_s15, %s823_s15  }
   0x5   : > { %p39_p0 = scmp.ge.s32.totalorder %s37_s22, 2  ;;  %s46_s23 = sadd.s32 1, %s664_s17 }
   0x6   : > { %p53_p1 = scmp.ne.s32.totalorder %s664_s17, %s660_s16  ;;  %p54_p2 = scmp.eq.s32.totalorder %s676_s20, 0 }
   0x7   : > { %s829_s22 = smov (%p39_p0, %s37_s22), 0  ;;  %p59_p4 = scmp.ne.s32.totalorder %s660_s16, %s656_s15 }
   0x8   : > { %p741_p3 = por %p54_p2, %p53_p1  ;;  %s41_s25 = ssub.s32 %s672_s19, %s829_s22 }
   0x9   : > { %p60_p5 = scmp.eq.s32.totalorder %s523_s21, 0  ;;  %p44_p6 = scmp.eq.s32.totalorder %s41_s25, 0 }
   0xa   : > { %p544_p8 = scmp.lt.s32.totalorder %s676_s20, 2  ;;  %s211_s28 = sand.u32 1, %s664_s17  }
   0xb   : > { %p748_p7 = por %p60_p5, %p59_p4  ;;  %s530_s29 = sshll.u32 %s672_s19, 3 }
   0xc   : > { %s754_s27 = scalar_select %p44_p6, %s664_s17, %s46_s23  }
   0xd   : > { %s529_s30 = sshll.u32 %s211_s28, 3  ;;  %s220_s7 = scalar_lea.hbm %s816_s0, %s530_s29 }
   0xe   : > { %s222_s8 = sshll.u32 %s220_s7, 4  ;;  %s215_s9 = scalar_lea.vmem [#allocation3], %s529_s30  ;;  %s223_s8 = int_to_ptr.hbm [resolvable:$true] %s222_s8 }
   0xf   : > { %s224_s10 = sshll.u32 %s215_s9, 4  ;;  %p541_p9 = pnand %p544_p8, %p741_p3  ;;  %s225_s10 = int_to_ptr.vmem [resolvable:$true] %s224_s10 }
  0x10   : > { %p531_p10 = scmp.ge.s32.totalorder %s676_s20, 1  ;;  %p229_p11 = scmp.lt.s32.totalorder %s676_s20, 3 }
  0x11   : > { %s212_s11 = scalar_lea.sflag [#allocation4], %s211_s28 }
  0x12   : > { %543 = dma.hbm_to_vmem [thread:$0]  (!%p541_p9), %s223_s8, 128, %s225_s10, %s212_s11  }
  0x13   : > { %p230_p12 = pnand %p531_p10, %p229_p11 }
  0x14   : > { %s235_s12 = sand.u32 (!%p230_p12), 1, %s660_s16  }
  0x15   : > { %233 = sbr.rel (%p230_p12) target bundleno = 289 (0x121), region = 32  ;;  %s532_s13 = sshll.u32 (!%p230_p12), %s235_s12, 3 }
  0x16   : > { %s236_s14 = scalar_lea.sflag (!%p230_p12), [#allocation4], %s235_s12  ;;  %s239_s15 = scalar_lea.vmem (!%p230_p12), [#allocation3], %s532_s13 }
  0x1a   : > { %651 = dma.done.wait (%p748_p7), %s236_s14, 128  }
  0x1b   : > { %653 = vsyncadd (%p748_p7), %s236_s14, 4294967168  ;;  %vm315_vm0 = vcmask 523264   ;;  %v678_v0 = vmov 0.0   ;;  %v322_v1 = vld [vmem:[%s817_s1 + $0x18] sm:$0xff]  ;;  %v321_v2 = vld [vmem:[%s817_s1 + $0x10] sm:$0xff]  ;;  %vm323_vm1 = vcmask 261120  }
  0x1c   : > { %316 = vst.msk [vmem:[#allocation2] sm:$0xff] %vm315_vm0, %v678_v0  ;;  %339 = vmatpush.msra.mxu0 %v322_v1  ;;  %v320_v3 = vld [vmem:[%s817_s1 + $0x8] sm:$0xff]  ;;  %v319_v4 = vld [vmem:[%s817_s1] sm:$0xff]  ;;  %p297_p13 = scmp.lt.s32.totalorder %s668_s18, 1  ;;  %s679_s11 = smov 96  }
  0x1d   : > { %v318_v5 = vld [vmem:[%s239_s15] sm:$0xff]  ;;  %v595_v9 = vld [vmem:[%s818_s2] ss:$0 sm:$0xff] }
  0x1e   : > { %340 = vmatpush.msra.mxu0 %v321_v2  ;;  %s831_s18 = smov (!%p297_p13, %s668_s18), 1 }
  0x1f   : > { %s533_s7 = sshll.u32 %s831_s18, 3 }
  0x20   : > { %341 = vmatpush.msra.mxu0 %v320_v3  ;;  %s303_s10 = scalar_lea.vmem %s819_s3, %s533_s7  ;;  %s310_s14 = scalar_lea.vmem %s820_s4, %s533_s7 }
  0x22   : > { %342 = vmatpush.msra.mxu0 %v319_v4 }
  0x23   : > { %535 = vmatmul.msk.f32.vlgmr.msra.gmra.mxu0 %vm323_vm1, %v318_v5  ;;  %v317_v6 = vld [vmem:[#allocation2] sm:$0xff] }
  0xa0   : > { %v344_v7 = vpop.f32.mrf.mxu0 }
  0xa1   : > { %v347_v8 = vadd.f32 %v344_v7, %v317_v6 }
  0xa3   : > { %349 = vst.msk [vmem:[#allocation2] sm:$0xff] %vm315_vm0, %v347_v8 }
  0xaa   : > { %v353_v10 = vld [vmem:[#allocation2] sm:$0xff] }
  0xab   : > { %v358_v11 = vadd.f32 %v595_v9, %v353_v10 }
  0xad   : > { %361 = vrot.lane.b32.xlu0 %v358_v11, %s679_s11  ;;  %359 = vst.msk [vmem:[%s303_s10] sm:$0xff] %vm323_vm1, %v358_v11 }
 0x11f   : > { %v362_v12 = vpop.permute.xlu0 %361 }
 0x120   : > { %364 = vst.msk [vmem:[%s310_s14] sm:$0xff] %vm323_vm1, %v362_v12 }
 0x121 PF: > { %s18_s20 = sadd.s32 1, %s676_s20   ;;  %s823_s15 = smov %s660_s16 }
 0x122   : > { %p15_p0 = scmp.ge.s32.totalorder %s18_s20, 4   ;;  %s824_s16 = smov %s664_s17 }
 0x123   : > { %s825_s17 = smov %s754_s27  ;;  %s826_s18 = smov %s672_s19 }
 0x124   : > { %s827_s19 = smov %s829_s22  ;;  %17 = sbr.rel (!%p15_p0) target bundleno = 4 (0x4), region = 98 }
 0x129   :  { %410 = vsyncpa [#allocation4], 1 }
 0x12a   :  { %412 = vsyncpa [#allocation4 + $0x1], 1 }

// kernel: decoder_forward.20
= control target key start
LH: loop header
LB: loop body
LE: loop exit
PB: predicated region body
PF: predicated region fallthrough
CT: control target
= control target key end

     0   :  { %11 = vsyncpa [#allocation4], 0  ;;  %s710_s21 = smov 0   ;;  %s712_s22 = smov 0   ;;  %s770_s0 = inlined_call_operand.vmem [shape: f32[16,32], index: 0, kind: input, shape index: {}]   ;;  %s771_s1 = inlined_call_operand.hbm [shape: f32[32,32], index: 1, kind: input, shape index: {}]   ;;  %s772_s2 = inlined_call_operand.vmem [shape: f32[1,32], index: 2, kind: input, shape index: {}]   ;;  %s773_s3 = inlined_call_operand.vmem [shape: f32[16,32], index: 3, kind: input, shape index: {}]   ;;  %s774_s4 = inlined_call_operand.vmem [shape: f32[1,32], index: 4, kind: input, shape index: {}]   ;;  %s775_s5 = inlined_call_operand.vmem [shape: f32[1,32], index: 5, kind: input, shape index: {}]   ;;  %s776_s6 = inlined_call_operand.vmem [shape: f32[16,32], index: 6, kind: output, shape index: {}]  }
   0x1   :  { %s714_s23 = smov 0  }
   0x2 LB: > { %s552_s24 = sadd.s32 4294967295, %s668_s23   ;;  %s36_s25 = sadd.s32 1, %s664_s22  ;;  %s668_s23 = sphi %s714_s23, %s17_s23   ;;  %s664_s22 = sphi %s712_s22, %s778_s22   ;;  %s660_s21 = sphi %s710_s21, %s777_s21  }
   0x3   : > { %p38_p0 = scmp.ge.s32.totalorder %s36_s25, 2  ;;  %p554_p1 = scmp.ge.s32.totalorder %s668_s23, 1 }
   0x4   : > { %p219_p2 = scmp.lt.s32.totalorder %s668_s23, 3  ;;  %p574_p4 = scmp.eq.s32.totalorder %s552_s24, 0 }
   0x5   : > { %s780_s25 = smov (%p38_p0, %s36_s25), 0  ;;  %s234_s28 = sshll.u32 %s771_s1, 4  ;;  %s235_s28 = int_to_ptr.hbm [resolvable:$true] %s234_s28 }
   0x6   : > { %p220_p3 = pnand %p554_p1, %p219_p2  ;;  %s670_s29 = smov [#allocation3]  }
   0x7   : > { %s236_s30 = sshll.u32 %s670_s29, 4  ;;  %s671_s7 = smov 128   ;;  %s237_s30 = int_to_ptr.vmem [resolvable:$true] %s236_s30 }
   0x8   : > { %p570_p5 = pneg %p220_p3  ;;  %s672_s8 = smov 8  }
   0x9   : > { %281 = sbr.rel (%p220_p3) target bundleno = 432 (0x1b0), region = 44 }
   0xa   : > { %p571_p6 = pnand %p574_p4, %p570_p5 }
   0xc   : > { %573 = dma.hbm_to_vmem [thread:$0]  (!%p571_p6), %s235_s28, 512, %s237_s30, [#allocation4], %s671_s7, %s671_s7, %s672_s8  }
   0xe   : > { %655 = dma.done.wait (%p574_p4), [#allocation4], 512  }
   0xf   : > { %657 = vsyncadd (%p574_p4), [#allocation4], 4294966784  ;;  %p323_p7 = scmp.lt.s32.totalorder %s660_s21, 1  ;;  %vm349_vm0 = vcmask 261120   ;;  %v673_v0 = vmov 0.0   ;;  %v356_v1 = vld [vmem:[#allocation3 + $0x18] sm:$0xff] }
  0x10   : > { %350 = vst.msk [vmem:[#allocation2] sm:$0xff] %vm349_vm0, %v673_v0  ;;  %v355_v2 = vld [vmem:[#allocation3 + $0x10] sm:$0xff]  ;;  %373 = vmatpush.msra.mxu0 %v356_v1  ;;  %v354_v3 = vld [vmem:[#allocation3 + $0x8] sm:$0xff]  ;;  %v353_v4 = vld [vmem:[#allocation3] sm:$0xff]  ;;  %v674_v15 = vmov 32.0  }
  0x11   : > { %s782_s21 = smov (!%p323_p7, %s660_s21), 1  ;;  %v605_v9 = vld [vmem:[%s772_s2] ss:$0 sm:$0xff]  ;;  %608 = vrcp.f32 %v674_v15 }
  0x12   : > { %s733_s9 = sshll.u32 %s782_s21, 3  ;;  %374 = vmatpush.msra.mxu0 %v355_v2  ;;  %v606_v36 = vld [vmem:[%s774_s4] ss:$0 sm:$0xff] }
  0x13   : > { %s329_s12 = scalar_lea.vmem %s770_s0, %s733_s9  ;;  %s337_s15 = scalar_lea.vmem %s773_s3, %s733_s9  ;;  %v607_v38 = vld [vmem:[%s775_s5] ss:$0 sm:$0xff] }
  0x14   : > { %375 = vmatpush.msra.mxu0 %v354_v3  ;;  %v352_v5 = vld [vmem:[%s329_s12] sm:$0xff]  ;;  %s344_s27 = scalar_lea.vmem %s776_s6, %s733_s9 }
  0x15   : > { %v392_v11 = vld [vmem:[%s337_s15] sm:$0xff] }
  0x16   : > { %376 = vmatpush.msra.mxu0 %v353_v4 }
  0x17   : > { %563 = vmatmul.msk.f32.vlgmr.msra.gmra.mxu0 %vm349_vm0, %v352_v5  ;;  %v351_v6 = vld [vmem:[#allocation2] sm:$0xff]  ;;  %v609_v16 = vpop.eup %608 }
  0x18   : > { %v398_v17 = vmul.f32 32.0, %v609_v16  ;;  %vm402_vm1 = vweird.f32 %v609_v16 }
  0x1a   : > { %v399_v18 = vsub.f32 1.0, %v398_v17 }
  0x1c   : > { %v400_v19 = vmul.f32 %v609_v16, %v399_v18 }
  0x1e   : > { %v401_v20 = vadd.f32 %v609_v16, %v400_v19 }
  0x20   : > { %v403_v21 = vsel %vm402_vm1, %v609_v16, %v401_v20 }
  0x94   : > { %v378_v7 = vpop.f32.mrf.mxu0 }
  0x95   : > { %v381_v8 = vadd.f32 %v378_v7, %v351_v6 }
  0x97   : > { %382 = vst.msk [vmem:[#allocation2] sm:$0xff] %vm349_vm0, %v381_v8 }
  0x9e   : > { %v386_v10 = vld [vmem:[#allocation2] sm:$0xff] }
  0x9f   : > { %v391_v12 = vadd.f32 %v605_v9, %v386_v10 }
  0xa1   : > { %v393_v13 = vadd.f32 %v392_v11, %v391_v12 }
  0xa3   : > { %v394_v14 = vsel %vm349_vm0, %v393_v13, 0.0 }
  0xa4   : > { %395 = vadd.xlane.f32.xlu0 %v394_v14 }
 0x117   : > { %v396_v22 = vpop.xlane.xlu0 %395 }
 0x118   : > { %v404_v23 = vmul.f32 %v403_v21, %v396_v22 }
 0x11a   : > { %v405_v24 = vsub.f32 %v393_v13, %v404_v23 }
 0x11c   : > { %v406_v25 = vmul.f32 %v405_v24, %v405_v24 }
 0x11e   : > { %v407_v26 = vsel %vm349_vm0, %v406_v25, 0.0 }
 0x11f   : > { %408 = vadd.xlane.f32.xlu0 %v407_v26 }
 0x192   : > { %v409_v27 = vpop.xlane.xlu0 %408 }
 0x193   : > { %v410_v28 = vmul.f32 %v409_v27, %v403_v21 }
 0x195   : > { %v411_v29 = vadd.f32 1e-05, %v410_v28 }
 0x197   : > { %610 = vrsqrt.f32 %v411_v29  ;;  %vm418_vm3 = vweird.f32 %v411_v29 }
 0x19d   : > { %v611_v30 = vpop.eup %610 }
 0x19e   : > { %v413_v31 = vmul.f32 %v611_v30, %v411_v29  ;;  %vm419_vm2 = vweird.f32 %v611_v30 }
 0x19f   : > { %vm420_vm4 = vmor %vm418_vm3, %vm419_vm2 }
 0x1a0   : > { %v414_v32 = vmul.f32 %v611_v30, %v413_v31 }
 0x1a2   : > { %v415_v33 = vmul.f32 0.5, %v414_v32 }
 0x1a4   : > { %v416_v34 = vsub.f32 1.5, %v415_v33 }
 0x1a6   : > { %v417_v35 = vmul.f32 %v611_v30, %v416_v34 }
 0x1a8   : > { %v421_v37 = vsel %vm420_vm4, %v611_v30, %v417_v35 }
 0x1a9   : > { %v422_v39 = vmul.f32 %v421_v37, %v405_v24 }
 0x1ab   : > { %v427_v40 = vmul.f32 %v606_v36, %v422_v39 }
 0x1ad   : > { %v432_v41 = vadd.f32 %v607_v38, %v427_v40 }
 0x1af   : > { %433 = vst.msk [vmem:[%s344_s27] sm:$0xff] %vm349_vm0, %v432_v41 }
 0x1b0 PF: > { %s17_s23 = sadd.s32 1, %s668_s23   ;;  %s777_s21 = smov %s664_s22 }
 0x1b1   : > { %p14_p8 = scmp.ge.s32.totalorder %s17_s23, 4   ;;  %s778_s22 = smov %s780_s25 }
 0x1b3   :  { %16 = sbr.rel (!%p14_p8) target bundleno = 2 (0x2), region = 94 }
 0x1b8   :  { %459 = vsyncpa [#allocation4], 1 }
 0x1b9   :  { %461 = vsyncpa [#allocation4 + $0x1], 1 }

// kernel: decoder_forward.19
= control target key start
LH: loop header
LB: loop body
LE: loop exit
PB: predicated region body
PF: predicated region fallthrough
CT: control target
= control target key end

     0   :  { %s852_s15 = smov 0   ;;  %s854_s16 = smov 0   ;;  %s950_s0 = inlined_call_operand.vmem [shape: f32[2,8,32], index: 0, kind: input, shape index: {}]   ;;  %s951_s1 = inlined_call_operand.vmem [shape: f32[2,8,32], index: 1, kind: input, shape index: {}]   ;;  %s952_s2 = inlined_call_operand.vmem [shape: f32[2,8,32], index: 2, kind: input, shape index: {}]   ;;  %s953_s3 = inlined_call_operand.vmem [shape: f32[2,8,32], index: 3, kind: output, shape index: {0}]   ;;  %s954_s4 = inlined_call_operand.vmem [shape: f32[2,4,8,8], index: 4, kind: output, shape index: {1}]  }
   0x1   :  { %s856_s17 = smov 0  }
   0x2 LB: > { %s27_s18 = sadd.s32 1, %s815_s16  ;;  %p726_p0 = scmp.ge.s32.totalorder %s819_s17, 1  ;;  %s819_s17 = sphi %s856_s17, %s15_s17   ;;  %s815_s16 = sphi %s854_s16, %s956_s16   ;;  %s811_s15 = sphi %s852_s15, %s955_s15  }
   0x3   : > { %p29_p1 = scmp.ge.s32.totalorder %s27_s18, 2  ;;  %p203_p2 = scmp.lt.s32.totalorder %s819_s17, 3 }
   0x5   : > { %s958_s18 = smov (%p29_p1, %s27_s18), 0  ;;  %p204_p3 = pnand %p726_p0, %p203_p2 }
   0x6   : > { %p249_p4 = scmp.lt.s32.totalorder (!%p204_p3), %s811_s15, 1  ;;  %s821_s26 = smov (!%p204_p3), 120  }
   0x7   : > { %207 = sbr.rel (%p204_p3) target bundleno = 1051 (0x41b), region = 32  ;;  %s822_s27 = smov (!%p204_p3), 112  }
   0x8   : > { %s823_s28 = smov (!%p204_p3), 104   ;;  %s824_s10 = smov (!%p204_p3), 24  }
   0x9   : > { %s825_s11 = smov (!%p204_p3), 8   ;;  %s826_s12 = smov (!%p204_p3), 16  }
   0xc   : > { %s960_s15 = smov (!%p249_p4, %s811_s15), 1  ;;  %vm282_vm0 = vcmask 64512   ;;  %vm571_vm1 = vcmask 130048   ;;  %vm573_vm2 = vcmask 195584   ;;  %vm575_vm3 = vcmask 261120  }
   0xd   : > { %s873_s19 = sshll.u32 %s960_s15, 3  ;;  %s750_s6 = sshll.u32 %s960_s15, 5 }
   0xe   : > { %s259_s22 = scalar_lea.vmem %s951_s1, %s873_s19  ;;  %s255_s25 = scalar_lea.vmem %s950_s0, %s873_s19 }
   0xf   : > { %v280_v0 = vld [vmem:[%s259_s22] sm:$0xff]  ;;  %s263_s5 = scalar_lea.vmem %s952_s2, %s873_s19  ;;  %s914_s9 = scalar_lea.vmem %s954_s4, %s750_s6 }
  0x10   : > { %733 = vmatpush.xpose.msk.msra.mxu0 %vm282_vm0, %v280_v0  ;;  %v279_v1 = vld [vmem:[%s255_s25] sm:$0xff]  ;;  %349 = vrot.lane.b32.xlu1 %v280_v0, %s821_s26  ;;  %s270_s15 = scalar_lea.vmem %s953_s3, %s873_s19 }
  0x11   : > { %420 = vrot.lane.b32.xlu2 %v280_v0, %s822_s27  ;;  %v899_v11 = vld [vmem:[%s263_s5] sm:$0xff] }
  0x12   : > { %342 = vmatpush.msra.mxu1 %v899_v11 }
  0x13   : > { %734 = vmatmul.msk.f32.vlgmr.msra.gmra.mxu0 %vm282_vm0, %v279_v1 }
  0x18   : > { %347 = vrot.lane.b32.xlu1 %v279_v1, %s821_s26 }
  0x19   : > { %490 = vrot.lane.b32.xlu2 %v280_v0, %s823_s28 }
  0x20   : > { %488 = vrot.lane.b32.xlu1 %v279_v1, %s823_s28 }
  0x6b   : > { %v421_v6 = vpop.permute.xlu2 %420 }
  0x6c   : > { %740 = vmatpush.xpose.msk.msrb.mxu1 %vm282_vm0, %v421_v6 }
  0x73   : > { %v491_v7 = vpop.permute.xlu2 %490 }
  0x74   : > { %744 = vmatpush.xpose.msk.msrb.mxu0 %vm282_vm0, %v491_v7 }
  0x82   : > { %v350_v2 = vpop.permute.xlu1 %349 }
  0x83   : > { %736 = vmatpush.xpose.msk.msra.mxu2 %vm282_vm0, %v350_v2 }
  0x8a   : > { %v348_v3 = vpop.permute.xlu1 %347 }
  0x8b   : > { %737 = vmatmul.msk.f32.vlgmr.msra.gmra.mxu2 %vm282_vm0, %v348_v3 }
  0x90   : > { %v306_v4 = vpop.f32.mrf.mxu0 }
  0x91   : > { %v309_v5 = vsel %vm282_vm0, %v306_v4, -inf }
  0x92   : > { %310 = vmax.xlane.f32.xlu0 %v309_v5  ;;  %v489_v8 = vpop.permute.xlu1 %488 }
  0x93   : > { %745 = vmatmul.msk.f32.vlgmr.msrb.gmra.mxu0 %vm282_vm0, %v489_v8 }
 0x105   : > { %v311_v9 = vpop.xlane.xlu0 %310 }
 0x106   : > { %v312_v10 = vsub.f32 %v306_v4, %v311_v9 }
 0x108   : > { %v313_v12 = vmul.f32 1.442695, %v312_v10 }
 0x10a   : > { %781 = vpow2.f32 %v313_v12 }
 0x10e   : > { %v372_v13 = vpop.f32.mrf.mxu2 }
 0x10f   : > { %v375_v14 = vsel %vm282_vm0, %v372_v13, -inf }
 0x110   : > { %v782_v15 = vpop.eup %781  ;;  %376 = vmax.xlane.f32.xlu2 %v375_v14  ;;  %v513_v17 = vpop.f32.mrf.mxu0 }
 0x111   : > { %v315_v16 = vsel %vm282_vm0, %v782_v15, 0.0  ;;  %v516_v18 = vsel %vm282_vm0, %v513_v17, -inf }
 0x112   : > { %316 = vadd.xlane.f32.xlu0 %v315_v16 }
 0x126   : > { %418 = vrot.lane.b32.xlu0 %v279_v1, %s822_s27 }
 0x150   : > { %517 = vmax.xlane.f32.xlu0 %v516_v18 }
 0x164   : > { %532 = vrot.lane.b32.xlu0 %v899_v11, %s823_s28 }
 0x183   : > { %v377_v19 = vpop.xlane.xlu2 %376 }
 0x184   : > { %v378_v20 = vsub.f32 %v372_v13, %v377_v19 }
 0x185   : > { %v317_v21 = vpop.xlane.xlu0 %316 }
 0x186   : > { %783 = vrcp.f32 %v317_v21  ;;  %v379_v22 = vmul.f32 1.442695, %v378_v20 }
 0x188   : > { %785 = vpow2.f32 %v379_v22 }
 0x18c   : > { %v784_v23 = vpop.eup %783 }
 0x18d   : > { %v319_v24 = vmul.f32 %v784_v23, %v317_v21 }
 0x18e   : > { %v786_v25 = vpop.eup %785 }
 0x18f   : > { %v320_v26 = vsub.f32 2.0, %v319_v24  ;;  %v381_v27 = vsel %vm282_vm0, %v786_v25, 0.0 }
 0x190   : > { %382 = vadd.xlane.f32.xlu2 %v381_v27 }
 0x191   : > { %v321_v28 = vmul.f32 %v784_v23, %v320_v26 }
 0x193   : > { %v322_v29 = vmul.f32 %v782_v15, %v321_v28 }
 0x195   : > { %323 = vst.msk [vmem:[%s914_s9] sm:$0xff] %vm282_vm0, %v322_v29  ;;  %735 = vmatmul.msk.f32.vlgmr.msra.gmra.mxu1 %vm282_vm0, %v322_v29 }
 0x198   : > { %v419_v30 = vpop.permute.xlu0 %418 }
 0x19d   : > { %741 = vmatmul.msk.f32.vlgmr.msrb.gmra.mxu1 %vm282_vm0, %v419_v30 }
 0x1c3   : > { %v518_v36 = vpop.xlane.xlu0 %517 }
 0x1c4   : > { %v519_v38 = vsub.f32 %v513_v17, %v518_v36 }
 0x1c6   : > { %v520_v40 = vmul.f32 1.442695, %v519_v38 }
 0x1d6   : > { %v533_v45 = vpop.permute.xlu0 %532 }
 0x1d7   : > { %553 = vmatpush.msrb.mxu2 %v533_v45 }
 0x203   : > { %v383_v31 = vpop.xlane.xlu2 %382 }
 0x204   : > { %787 = vrcp.f32 %v383_v31 }
 0x205   : > { %789 = vpow2.f32 %v520_v40 }
 0x20a   : > { %v788_v32 = vpop.eup %787 }
 0x20b   : > { %v385_v33 = vmul.f32 %v788_v32, %v383_v31  ;;  %v790_v43 = vpop.eup %789 }
 0x20c   : > { %v522_v44 = vsel %vm282_vm0, %v790_v43, 0.0 }
 0x20d   : > { %v386_v34 = vsub.f32 2.0, %v385_v33 }
 0x20f   : > { %v387_v35 = vmul.f32 %v788_v32, %v386_v34 }
 0x211   : > { %v388_v37 = vmul.f32 %v786_v25, %v387_v35 }
 0x212   : > { %v344_v39 = vpop.f32.mrf.mxu1 }
 0x213   : > { %738 = vst.msk [vmem:[%s914_s9 + $0x8] sm:$0xff] %vm282_vm0, %v388_v37 }
 0x21a   : > { %v443_v41 = vpop.f32.mrf.mxu1 }
 0x21b   : > { %v446_v42 = vsel %vm282_vm0, %v443_v41, -inf }
 0x21c   : > { %447 = vmax.xlane.f32.xlu1 %v446_v42 }
 0x224   : > { %523 = vadd.xlane.f32.xlu1 %v522_v44 }
 0x23d   : > { %462 = vrot.lane.b32.xlu1 %v899_v11, %s822_s27 }
 0x28f   : > { %v448_v46 = vpop.xlane.xlu1 %447 }
 0x290   : > { %v449_v47 = vsub.f32 %v443_v41, %v448_v46 }
 0x292   : > { %v450_v48 = vmul.f32 1.442695, %v449_v47 }
 0x294   : > { %791 = vpow2.f32 %v450_v48 }
 0x297   : > { %v524_v49 = vpop.xlane.xlu1 %523 }
 0x298   : > { %793 = vrcp.f32 %v524_v49 }
 0x29a   : > { %v792_v50 = vpop.eup %791 }
 0x29b   : > { %v452_v51 = vsel %vm282_vm0, %v792_v50, 0.0 }
 0x29c   : > { %453 = vadd.xlane.f32.xlu2 %v452_v51 }
 0x29e   : > { %v794_v52 = vpop.eup %793 }
 0x29f   : > { %v526_v53 = vmul.f32 %v794_v52, %v524_v49 }
 0x2a1   : > { %v527_v54 = vsub.f32 2.0, %v526_v53 }
 0x2a3   : > { %v528_v55 = vmul.f32 %v794_v52, %v527_v54 }
 0x2a5   : > { %v529_v56 = vmul.f32 %v790_v43, %v528_v55 }
 0x2a7   : > { %746 = vst.msk [vmem:[%s914_s9 + $0x18] sm:$0xff] %vm282_vm0, %v529_v56  ;;  %747 = vmatmul.msk.f32.vlgmr.msrb.gmra.mxu2 %vm282_vm0, %v529_v56 }
 0x2af   : > { %v463_v61 = vpop.permute.xlu1 %462 }
 0x2b4   : > { %392 = vrot.lane.b32.xlu2 %v899_v11, %s821_s26 }
 0x30f   : > { %v454_v57 = vpop.xlane.xlu2 %453 }
 0x310   : > { %795 = vrcp.f32 %v454_v57 }
 0x316   : > { %v796_v58 = vpop.eup %795 }
 0x317   : > { %v456_v59 = vmul.f32 %v796_v58, %v454_v57  ;;  %v393_v60 = vpop.permute.xlu2 %392 }
 0x318   : > { %413 = vmatpush.msra.mxu3 %v393_v60 }
 0x319   : > { %v457_v62 = vsub.f32 2.0, %v456_v59  ;;  %739 = vmatmul.msk.f32.vlgmr.msra.gmra.mxu3 %vm282_vm0, %v388_v37 }
 0x31a   : > { %483 = vmatpush.msrb.mxu3 %v463_v61 }
 0x31b   : > { %v458_v63 = vmul.f32 %v796_v58, %v457_v62 }
 0x31d   : > { %v459_v0 = vmul.f32 %v792_v50, %v458_v63 }
 0x31f   : > { %742 = vst.msk [vmem:[%s914_s9 + $0x10] sm:$0xff] %vm282_vm0, %v459_v0 }
 0x321   : > { %743 = vmatmul.msk.f32.vlgmr.msrb.gmra.mxu3 %vm282_vm0, %v459_v0 }
 0x32a   : > { %v555_v1 = vpop.f32.mrf.mxu2 }
 0x32b   : > { %567 = vrot.lane.b32.xlu1 %v555_v1, %s824_s10 }
 0x39c   : > { %v415_v2 = vpop.f32.mrf.mxu3 }
 0x39d   : > { %559 = vrot.lane.b32.xlu2 %v415_v2, %s825_s11  ;;  %v568_v7 = vpop.permute.xlu1 %567 }
 0x3a4   : > { %v485_v3 = vpop.f32.mrf.mxu3 }
 0x3a5   : > { %563 = vrot.lane.b32.xlu0 %v485_v3, %s826_s12 }
 0x3f7   : > { %v560_v4 = vpop.permute.xlu2 %559 }
 0x3f8   : > { %v570_v5 = vsel %vm282_vm0, %v344_v39, %v560_v4 }
 0x417   : > { %v564_v6 = vpop.permute.xlu0 %563 }
 0x418   : > { %v572_v8 = vsel %vm571_vm1, %v570_v5, %v564_v6 }
 0x419   : > { %v574_v9 = vsel %vm573_vm2, %v572_v8, %v568_v7 }
 0x41a   : > { %576 = vst.msk [vmem:[%s270_s15] sm:$0xff] %vm575_vm3, %v574_v9 }
 0x41b PF: > { %s15_s17 = sadd.s32 1, %s819_s17   ;;  %s955_s15 = smov %s815_s16 }
 0x41c   : > { %p12_p5 = scmp.ge.s32.totalorder %s15_s17, 4   ;;  %s956_s16 = smov %s958_s18 }
 0x41e   :  { %14 = sbr.rel (!%p12_p5) target bundleno = 2 (0x2), region = 83 }

// kernel: decoder_forward.21
= control target key start
LH: loop header
LB: loop body
LE: loop exit
PB: predicated region body
PF: predicated region fallthrough
CT: control target
= control target key end

     0   :  { %8 = vsyncpa [#allocation4], 0  ;;  %s535_s12 = smov 0   ;;  %s537_s13 = smov 0   ;;  %s579_s0 = inlined_call_operand.vmem [shape: f32[16,32], index: 0, kind: input, shape index: {}]   ;;  %s580_s1 = inlined_call_operand.hbm [shape: f32[32,32], index: 1, kind: input, shape index: {}]   ;;  %s581_s2 = inlined_call_operand.vmem [shape: f32[1,32], index: 2, kind: input, shape index: {}]   ;;  %s582_s3 = inlined_call_operand.vmem [shape: f32[16,32], index: 3, kind: output, shape index: {}]  }
   0x1   :  { %s539_s14 = smov 0  }
   0x2 LB: > { %s401_s15 = sadd.s32 4294967295, %s509_s14   ;;  %s33_s16 = sadd.s32 1, %s505_s13  ;;  %s509_s14 = sphi %s539_s14, %s14_s14   ;;  %s505_s13 = sphi %s537_s13, %s584_s13   ;;  %s501_s12 = sphi %s535_s12, %s583_s12  }
   0x3   : > { %p35_p0 = scmp.ge.s32.totalorder %s33_s16, 2  ;;  %p403_p1 = scmp.ge.s32.totalorder %s509_s14, 1 }
   0x4   : > { %p148_p2 = scmp.lt.s32.totalorder %s509_s14, 3  ;;  %p422_p4 = scmp.eq.s32.totalorder %s401_s15, 0 }
   0x5   : > { %s586_s16 = smov (%p35_p0, %s33_s16), 0  ;;  %s163_s19 = sshll.u32 %s580_s1, 4  ;;  %s164_s19 = int_to_ptr.hbm [resolvable:$true] %s163_s19 }
   0x6   : > { %p149_p3 = pnand %p403_p1, %p148_p2  ;;  %s511_s20 = smov [#allocation3]  }
   0x7   : > { %s165_s21 = sshll.u32 %s511_s20, 4  ;;  %s512_s22 = smov 128   ;;  %s166_s21 = int_to_ptr.vmem [resolvable:$true] %s165_s21 }
   0x8   : > { %p418_p5 = pneg %p149_p3  ;;  %s513_s23 = smov 8  }
   0x9   : > { %197 = sbr.rel (%p149_p3) target bundleno = 162 (0xa2), region = 32 }
   0xa   : > { %p419_p6 = pnand %p422_p4, %p418_p5 }
   0xc   : > { %421 = dma.hbm_to_vmem [thread:$0]  (!%p419_p6), %s164_s19, 512, %s166_s21, [#allocation4], %s512_s22, %s512_s22, %s513_s23  }
   0xe   : > { %496 = dma.done.wait (%p422_p4), [#allocation4], 512  }
   0xf   : > { %498 = vsyncadd (%p422_p4), [#allocation4], 4294966784  ;;  %p229_p7 = scmp.lt.s32.totalorder %s501_s12, 1  ;;  %vm251_vm0 = vcmask 261120   ;;  %v514_v0 = vmov 0.0   ;;  %v258_v1 = vld [vmem:[#allocation3 + $0x18] sm:$0xff] }
  0x10   : > { %252 = vst.msk [vmem:[#allocation2] sm:$0xff] %vm251_vm0, %v514_v0  ;;  %v257_v2 = vld [vmem:[#allocation3 + $0x10] sm:$0xff]  ;;  %275 = vmatpush.msra.mxu0 %v258_v1  ;;  %v256_v3 = vld [vmem:[#allocation3 + $0x8] sm:$0xff]  ;;  %v255_v4 = vld [vmem:[#allocation3] sm:$0xff] }
  0x11   : > { %s588_s12 = smov (!%p229_p7, %s501_s12), 1  ;;  %v452_v9 = vld [vmem:[%s581_s2] ss:$0 sm:$0xff] }
  0x12   : > { %s409_s24 = sshll.u32 %s588_s12, 3  ;;  %276 = vmatpush.msra.mxu0 %v257_v2 }
  0x13   : > { %s235_s27 = scalar_lea.vmem %s579_s0, %s409_s24  ;;  %s246_s5 = scalar_lea.vmem %s582_s3, %s409_s24 }
  0x14   : > { %277 = vmatpush.msra.mxu0 %v256_v3  ;;  %v254_v5 = vld [vmem:[%s235_s27] sm:$0xff] }
  0x16   : > { %278 = vmatpush.msra.mxu0 %v255_v4 }
  0x17   : > { %411 = vmatmul.msk.f32.vlgmr.msra.gmra.mxu0 %vm251_vm0, %v254_v5  ;;  %v253_v6 = vld [vmem:[#allocation2] sm:$0xff] }
  0x94   : > { %v280_v7 = vpop.f32.mrf.mxu0 }
  0x95   : > { %v283_v8 = vadd.f32 %v280_v7, %v253_v6 }
  0x97   : > { %284 = vst.msk [vmem:[#allocation2] sm:$0xff] %vm251_vm0, %v283_v8 }
  0x9e   : > { %v288_v10 = vld [vmem:[#allocation2] sm:$0xff] }
  0x9f   : > { %v293_v11 = vadd.f32 %v452_v9, %v288_v10 }
  0xa1   : > { %294 = vst.msk [vmem:[%s246_s5] sm:$0xff] %vm251_vm0, %v293_v11 }
  0xa2 PF: > { %s14_s14 = sadd.s32 1, %s509_s14   ;;  %s583_s12 = smov %s505_s13 }
  0xa3   : > { %p11_p8 = scmp.ge.s32.totalorder %s14_s14, 4   ;;  %s584_s13 = smov %s586_s16 }
  0xa5   :  { %13 = sbr.rel (!%p11_p8) target bundleno = 2 (0x2), region = 79 }
  0xaa   :  { %320 = vsyncpa [#allocation4], 1 }
  0xab   :  { %322 = vsyncpa [#allocation4 + $0x1], 1 }

// kernel: decoder_forward.25
= control target key start
LH: loop header
LB: loop body
LE: loop exit
PB: predicated region body
PF: predicated region fallthrough
CT: control target
= control target key end

     0   :  { %8 = vsyncpa [#allocation4], 0  ;;  %s675_s0 = inlined_call_operand.vmem [shape: f32[16,32], index: 0, kind: input, shape index: {}]   ;;  %s676_s1 = inlined_call_operand.hbm [shape: f32[32,64], index: 1, kind: input, shape index: {}]   ;;  %s677_s2 = inlined_call_operand.hbm [shape: f32[1,64], index: 2, kind: input, shape index: {}]   ;;  %s678_s3 = inlined_call_operand.vmem [shape: f32[16,64], index: 3, kind: output, shape index: {}]  }
   0x1   :  { %9 = vsyncpa [#allocation6], 0  ;;  %s599_s12 = smov 0   ;;  %s601_s13 = smov 0  }
   0x2   :  { %s603_s14 = smov 0  }
   0x3 LB: > { %s417_s15 = sadd.s32 4294967295, %s572_s14   ;;  %s34_s16 = sadd.s32 1, %s568_s13  ;;  %s572_s14 = sphi %s603_s14, %s15_s14   ;;  %s568_s13 = sphi %s601_s13, %s682_s13   ;;  %s564_s12 = sphi %s599_s12, %s681_s12  }
   0x4   : > { %p36_p0 = scmp.ge.s32.totalorder %s34_s16, 2  ;;  %p419_p1 = scmp.ge.s32.totalorder %s572_s14, 1 }
   0x5   : > { %p149_p2 = scmp.lt.s32.totalorder %s572_s14, 3  ;;  %p624_p4 = scmp.eq.s32.totalorder %s417_s15, 0 }
   0x6   : > { %s684_s16 = smov (%p36_p0, %s34_s16), 0  ;;  %s164_s21 = sshll.u32 %s676_s1, 4  ;;  %s165_s21 = int_to_ptr.hbm [resolvable:$true] %s164_s21 }
   0x7   : > { %p620_p3 = pnand %p419_p1, %p149_p2  ;;  %s574_s22 = smov [#allocation3]  }
   0x8   : > { %s166_s23 = sshll.u32 %s574_s22, 4  ;;  %s180_s26 = sshll.u32 %s677_s2, 4  ;;  %s167_s23 = int_to_ptr.vmem [resolvable:$true] %s166_s23  ;;  %s181_s26 = int_to_ptr.hbm [resolvable:$true] %s180_s26 }
   0x9   : > { %p439_p5 = pneg %p620_p3  ;;  %s575_s27 = smov 128  }
   0xa   : > { %s576_s28 = smov 8   ;;  %s577_s29 = smov [#allocation5]  }
   0xb   : > { %p440_p6 = pnand %p624_p4, %p439_p5  ;;  %s182_s30 = sshll.u32 %s577_s29, 4  ;;  %s183_s30 = int_to_ptr.vmem [resolvable:$true] %s182_s30 }
   0xc   : > { %205 = sbr.rel (%p620_p3) target bundleno = 188 (0xbc), region = 32 }
   0xd   : > { %442 = dma.hbm_to_vmem [thread:$0]  (!%p440_p6), %s165_s21, 512, %s167_s23, [#allocation4], %s575_s27, %s575_s27, %s576_s28  }
   0xe   : > { %445 = dma.hbm_to_vmem [thread:$0]  (!%p440_p6), %s181_s26, 16, %s183_s30, [#allocation6]  }
  0x11   : > { %555 = dma.done.wait (%p624_p4), [#allocation4], 512  }
  0x12   : > { %557 = vsyncadd (%p624_p4), [#allocation4], 4294966784 }
  0x13   : > { %559 = dma.done.wait (%p624_p4), [#allocation6], 16  }
  0x14   : > { %561 = vsyncadd (%p624_p4), [#allocation6], 4294967280  ;;  %p239_p7 = scmp.lt.s32.totalorder %s564_s12, 1  ;;  %vm258_vm0 = vcmask 523264   ;;  %v578_v0 = vmov 0.0   ;;  %v265_v1 = vld [vmem:[#allocation3 + $0x18] sm:$0xff] }
  0x15   : > { %259 = vst.msk [vmem:[#allocation2] sm:$0xff] %vm258_vm0, %v578_v0  ;;  %v264_v2 = vld [vmem:[#allocation3 + $0x10] sm:$0xff]  ;;  %282 = vmatpush.msra.mxu0 %v265_v1  ;;  %v263_v3 = vld [vmem:[#allocation3 + $0x8] sm:$0xff]  ;;  %v262_v4 = vld [vmem:[#allocation3] sm:$0xff]  ;;  %vm266_vm1 = vcmask 261120  }
  0x16   : > { %s686_s12 = smov (!%p239_p7, %s564_s12), 1  ;;  %v479_v9 = vld [vmem:[#allocation5] ss:$0 sm:$0xff] }
  0x17   : > { %s426_s4 = sshll.u32 %s686_s12, 3  ;;  %283 = vmatpush.msra.mxu0 %v264_v2 }
  0x18   : > { %s245_s7 = scalar_lea.vmem %s675_s0, %s426_s4  ;;  %s253_s10 = scalar_lea.vmem %s678_s3, %s426_s4 }
  0x19   : > { %284 = vmatpush.msra.mxu0 %v263_v3  ;;  %v261_v5 = vld [vmem:[%s245_s7] sm:$0xff] }
  0x1b   : > { %285 = vmatpush.msra.mxu0 %v262_v4 }
  0x1c   : > { %428 = vmatmul.msk.f32.vlgmr.msra.gmra.mxu0 %vm266_vm1, %v261_v5  ;;  %v260_v6 = vld [vmem:[#allocation2] sm:$0xff] }
  0x99   : > { %v287_v7 = vpop.f32.mrf.mxu0 }
  0x9a   : > { %v290_v8 = vadd.f32 %v287_v7, %v260_v6 }
  0x9c   : > { %292 = vst.msk [vmem:[#allocation2] sm:$0xff] %vm258_vm0, %v290_v8 }
  0xa3   : > { %v296_v10 = vld [vmem:[#allocation2] sm:$0xff] }
  0xa4   : > { %v301_v11 = vadd.f32 %v479_v9, %v296_v10 }
  0xa6   : > { %v303_v12 = vmul.f32 0.044715, %v301_v11  ;;  %v302_v18 = vmul.f32 0.5, %v301_v11 }
  0xa8   : > { %v304_v13 = vmul.f32 %v303_v12, %v301_v11 }
  0xaa   : > { %v305_v14 = vmul.f32 %v304_v13, %v301_v11 }
  0xac   : > { %v306_v15 = vadd.f32 %v305_v14, %v301_v11 }
  0xae   : > { %v307_v16 = vmul.f32 0.7978846, %v306_v15 }
  0xb0   : > { %480 = vtanh.f32 %v307_v16 }
  0xb6   : > { %v481_v17 = vpop.eup %480 }
  0xb7   : > { %v309_v19 = vadd.f32 1.0, %v481_v17 }
  0xb9   : > { %v310_v20 = vmul.f32 %v309_v19, %v302_v18 }
  0xbb   : > { %311 = vst.msk [vmem:[%s253_s10] sm:$0xff] %vm258_vm0, %v310_v20 }
  0xbc PF: > { %s15_s14 = sadd.s32 1, %s572_s14   ;;  %s681_s12 = smov %s568_s13 }
  0xbd   : > { %p12_p8 = scmp.ge.s32.totalorder %s15_s14, 4   ;;  %s682_s13 = smov %s684_s16 }
  0xbf   :  { %14 = sbr.rel (!%p12_p8) target bundleno = 3 (0x3), region = 81 }
  0xc4   :  { %337 = vsyncpa [#allocation4], 1 }
  0xc5   :  { %339 = vsyncpa [#allocation4 + $0x1], 1 }
  0xc6   :  { %340 = vsyncpa [#allocation6], 1 }

// kernel: decoder_forward.24
= control target key start
LH: loop header
LB: loop body
LE: loop exit
PB: predicated region body
PF: predicated region fallthrough
CT: control target
= control target key end

     0   :  { %11 = vsyncpa [#allocation4], 0  ;;  %s944_s0 = inlined_call_operand.vmem [shape: f32[16,32], index: 0, kind: input, shape index: {}]   ;;  %s945_s1 = inlined_call_operand.hbm [shape: f32[32,32], index: 1, kind: input, shape index: {}]   ;;  %s946_s2 = inlined_call_operand.vmem [shape: f32[1,32], index: 2, kind: input, shape index: {}]   ;;  %s947_s3 = inlined_call_operand.vmem [shape: f32[16,32], index: 3, kind: input, shape index: {}]   ;;  %s948_s4 = inlined_call_operand.hbm [shape: f32[1,32], index: 4, kind: input, shape index: {}]   ;;  %s949_s5 = inlined_call_operand.hbm [shape: f32[1,32], index: 5, kind: input, shape index: {}]   ;;  %s950_s6 = inlined_call_operand.vmem [shape: f32[16,32], index: 6, kind: output, shape index: {}]  }
   0x1   :  { %12 = vsyncpa [#allocation6], 0  ;;  %s848_s21 = smov 0   ;;  %s850_s22 = smov 0  }
   0x2   :  { %s852_s23 = smov 0  }
   0x3 LB: > { %s256_s26 = sshll.u32 %s948_s4, 4  ;;  %s600_s27 = sadd.s32 4294967295, %s804_s23   ;;  %s804_s23 = sphi %s852_s23, %s18_s23   ;;  %s800_s22 = sphi %s850_s22, %s955_s22   ;;  %s796_s21 = sphi %s848_s21, %s954_s21   ;;  %s257_s26 = int_to_ptr.hbm [resolvable:$true] %s256_s26 }
   0x4   : > { %p602_p0 = scmp.ge.s32.totalorder %s804_s23, 1  ;;  %p220_p1 = scmp.lt.s32.totalorder %s804_s23, 3 }
   0x5   : > { %p869_p2 = scmp.eq.s32.totalorder %s600_s27, 0  ;;  %s806_s30 = smov [#allocation5]  }
   0x6   : > { %p873_p3 = pnand %p602_p0, %p220_p1  ;;  %s258_s7 = sshll.u32 %s806_s30, 4  ;;  %s259_s7 = int_to_ptr.vmem [resolvable:$true] %s258_s7 }
   0x7   : > { %s37_s9 = sadd.s32 1, %s800_s22  ;;  %s235_s12 = sshll.u32 %s945_s1, 4  ;;  %s236_s12 = int_to_ptr.hbm [resolvable:$true] %s235_s12 }
   0x8   : > { %p630_p4 = pneg %p873_p3  ;;  %p39_p6 = scmp.ge.s32.totalorder %s37_s9, 2 }
   0x9   : > { %s807_s13 = smov [#allocation3]   ;;  %s268_s17 = sshll.u32 %s949_s5, 4  ;;  %s269_s17 = int_to_ptr.hbm [resolvable:$true] %s268_s17 }
   0xa   : > { %p881_p5 = pnand %p869_p2, %p630_p4  ;;  %s957_s9 = smov (%p39_p6, %s37_s9), 0 }
   0xb   : > { %s237_s14 = sshll.u32 %s807_s13, 4  ;;  %s808_s18 = smov 128   ;;  %s238_s14 = int_to_ptr.vmem [resolvable:$true] %s237_s14 }
   0xc   : > { %636 = dma.hbm_to_vmem [thread:$0]  (!%p881_p5), %s257_s26, 16, %s259_s7, [#allocation6]  }
   0xd   : > { %s809_s19 = smov 8   ;;  %s810_s20 = smov [#allocation7]  }
   0xe   : > { %633 = dma.hbm_to_vmem [thread:$0]  (!%p881_p5), %s236_s12, 512, %s238_s14, [#allocation4], %s808_s18, %s808_s18, %s809_s19  }
   0xf   : > { %s270_s24 = sshll.u32 %s810_s20, 4  ;;  %300 = sbr.rel (%p873_p3) target bundleno = 440 (0x1b8), region = 44  ;;  %s271_s24 = int_to_ptr.vmem [resolvable:$true] %s270_s24 }
  0x10   : > { %639 = dma.hbm_to_vmem [thread:$0]  (!%p881_p5), %s269_s17, 16, %s271_s24, [#allocation6]  }
  0x14   : > { %787 = dma.done.wait (%p869_p2), [#allocation4], 512  }
  0x15   : > { %789 = vsyncadd (%p869_p2), [#allocation4], 4294966784 }
  0x16   : > { %791 = dma.done.wait (%p869_p2), [#allocation6], 32  }
  0x17   : > { %793 = vsyncadd (%p869_p2), [#allocation6], 4294967264  ;;  %p352_p7 = scmp.lt.s32.totalorder %s796_s21, 1  ;;  %vm378_vm0 = vcmask 261120   ;;  %v811_v0 = vmov 0.0   ;;  %v385_v1 = vld [vmem:[#allocation3 + $0x18] sm:$0xff] }
  0x18   : > { %379 = vst.msk [vmem:[#allocation2] sm:$0xff] %vm378_vm0, %v811_v0  ;;  %v384_v2 = vld [vmem:[#allocation3 + $0x10] sm:$0xff]  ;;  %402 = vmatpush.msra.mxu0 %v385_v1  ;;  %v383_v3 = vld [vmem:[#allocation3 + $0x8] sm:$0xff]  ;;  %v382_v4 = vld [vmem:[#allocation3] sm:$0xff]  ;;  %v812_v15 = vmov 32.0  }
  0x19   : > { %s959_s21 = smov (!%p352_p7, %s796_s21), 1  ;;  %v677_v9 = vld [vmem:[%s946_s2] ss:$0 sm:$0xff]  ;;  %680 = vrcp.f32 %v812_v15  ;;  %v678_v36 = vld [vmem:[#allocation5] ss:$0 sm:$0xff] }
  0x1a   : > { %s913_s25 = sshll.u32 %s959_s21, 3  ;;  %403 = vmatpush.msra.mxu0 %v384_v2  ;;  %v679_v38 = vld [vmem:[#allocation7] ss:$0 sm:$0xff] }
  0x1b   : > { %s358_s28 = scalar_lea.vmem %s944_s0, %s913_s25  ;;  %s366_s30 = scalar_lea.vmem %s947_s3, %s913_s25 }
  0x1c   : > { %404 = vmatpush.msra.mxu0 %v383_v3  ;;  %v381_v5 = vld [vmem:[%s358_s28] sm:$0xff]  ;;  %s373_s12 = scalar_lea.vmem %s950_s6, %s913_s25 }
  0x1d   : > { %v421_v11 = vld [vmem:[%s366_s30] sm:$0xff] }
  0x1e   : > { %405 = vmatpush.msra.mxu0 %v382_v4 }
  0x1f   : > { %615 = vmatmul.msk.f32.vlgmr.msra.gmra.mxu0 %vm378_vm0, %v381_v5  ;;  %v380_v6 = vld [vmem:[#allocation2] sm:$0xff]  ;;  %v681_v16 = vpop.eup %680 }
  0x20   : > { %v427_v17 = vmul.f32 32.0, %v681_v16  ;;  %vm431_vm1 = vweird.f32 %v681_v16 }
  0x22   : > { %v428_v18 = vsub.f32 1.0, %v427_v17 }
  0x24   : > { %v429_v19 = vmul.f32 %v681_v16, %v428_v18 }
  0x26   : > { %v430_v20 = vadd.f32 %v681_v16, %v429_v19 }
  0x28   : > { %v432_v21 = vsel %vm431_vm1, %v681_v16, %v430_v20 }
  0x9c   : > { %v407_v7 = vpop.f32.mrf.mxu0 }
  0x9d   : > { %v410_v8 = vadd.f32 %v407_v7, %v380_v6 }
  0x9f   : > { %411 = vst.msk [vmem:[#allocation2] sm:$0xff] %vm378_vm0, %v410_v8 }
  0xa6   : > { %v415_v10 = vld [vmem:[#allocation2] sm:$0xff] }
  0xa7   : > { %v420_v12 = vadd.f32 %v677_v9, %v415_v10 }
  0xa9   : > { %v422_v13 = vadd.f32 %v421_v11, %v420_v12 }
  0xab   : > { %v423_v14 = vsel %vm378_vm0, %v422_v13, 0.0 }
  0xac   : > { %424 = vadd.xlane.f32.xlu0 %v423_v14 }
 0x11f   : > { %v425_v22 = vpop.xlane.xlu0 %424 }
 0x120   : > { %v433_v23 = vmul.f32 %v432_v21, %v425_v22 }
 0x122   : > { %v434_v24 = vsub.f32 %v422_v13, %v433_v23 }
 0x124   : > { %v435_v25 = vmul.f32 %v434_v24, %v434_v24 }
 0x126   : > { %v436_v26 = vsel %vm378_vm0, %v435_v25, 0.0 }
 0x127   : > { %437 = vadd.xlane.f32.xlu0 %v436_v26 }
 0x19a   : > { %v438_v27 = vpop.xlane.xlu0 %437 }
 0x19b   : > { %v439_v28 = vmul.f32 %v438_v27, %v432_v21 }
 0x19d   : > { %v440_v29 = vadd.f32 1e-05, %v439_v28 }
 0x19f   : > { %682 = vrsqrt.f32 %v440_v29  ;;  %vm447_vm3 = vweird.f32 %v440_v29 }
 0x1a5   : > { %v683_v30 = vpop.eup %682 }
 0x1a6   : > { %v442_v31 = vmul.f32 %v683_v30, %v440_v29  ;;  %vm448_vm2 = vweird.f32 %v683_v30 }
 0x1a7   : > { %vm449_vm4 = vmor %vm447_vm3, %vm448_vm2 }
 0x1a8   : > { %v443_v32 = vmul.f32 %v683_v30, %v442_v31 }
 0x1aa   : > { %v444_v33 = vmul.f32 0.5, %v443_v32 }
 0x1ac   : > { %v445_v34 = vsub.f32 1.5, %v444_v33 }
 0x1ae   : > { %v446_v35 = vmul.f32 %v683_v30, %v445_v34 }
 0x1b0   : > { %v450_v37 = vsel %vm449_vm4, %v683_v30, %v446_v35 }
 0x1b1   : > { %v451_v39 = vmul.f32 %v450_v37, %v434_v24 }
 0x1b3   : > { %v456_v40 = vmul.f32 %v678_v36, %v451_v39 }
 0x1b5   : > { %v461_v41 = vadd.f32 %v679_v38, %v456_v40 }
 0x1b7   : > { %462 = vst.msk [vmem:[%s373_s12] sm:$0xff] %vm378_vm0, %v461_v41 }
 0x1b8 PF: > { %s18_s23 = sadd.s32 1, %s804_s23   ;;  %s954_s21 = smov %s800_s22 }
 0x1b9   : > { %p15_p8 = scmp.ge.s32.totalorder %s18_s23, 4   ;;  %s955_s22 = smov %s957_s9 }
 0x1bb   :  { %17 = sbr.rel (!%p15_p8) target bundleno = 3 (0x3), region = 102 }
 0x1c0   :  { %488 = vsyncpa [#allocation4], 1 }
 0x1c1   :  { %490 = vsyncpa [#allocation4 + $0x1], 1 }
 0x1c2   :  { %491 = vsyncpa [#allocation6], 1 }

// kernel: decoder_forward.27
= control target key start
LH: loop header
LB: loop body
LE: loop exit
PB: predicated region body
PF: predicated region fallthrough
CT: control target
= control target key end

     0   :  { %s689_s18 = smov 0   ;;  %s691_s19 = smov 0   ;;  %s749_s0 = inlined_call_operand.vmem [shape: f32[16,32], index: 0, kind: input, shape index: {}]   ;;  %s750_s1 = inlined_call_operand.vmem [shape: f32[32,96], index: 1, kind: input, shape index: {}]   ;;  %s751_s2 = inlined_call_operand.vmem [shape: f32[1,96], index: 2, kind: input, shape index: {}]   ;;  %s752_s3 = inlined_call_operand.vmem [shape: f32[16,32], index: 3, kind: output, shape index: {0}]   ;;  %s753_s4 = inlined_call_operand.vmem [shape: f32[16,32], index: 4, kind: output, shape index: {1}]   ;;  %s754_s5 = inlined_call_operand.vmem [shape: f32[16,32], index: 5, kind: output, shape index: {2}]  }
   0x1   :  { %s693_s20 = smov 0  }
   0x2 LB: > { %s35_s21 = sadd.s32 1, %s650_s19  ;;  %p596_p0 = scmp.ge.s32.totalorder %s654_s20, 1  ;;  %s654_s20 = sphi %s693_s20, %s16_s20   ;;  %s650_s19 = sphi %s691_s19, %s756_s19   ;;  %s646_s18 = sphi %s689_s18, %s755_s18  }
   0x3   : > { %p37_p1 = scmp.ge.s32.totalorder %s35_s21, 2  ;;  %p245_p2 = scmp.lt.s32.totalorder %s654_s20, 3 }
   0x5   : > { %s758_s21 = smov (%p37_p1, %s35_s21), 0  ;;  %p246_p3 = pnand %p596_p0, %p245_p2 }
   0x6   : > { %p302_p4 = scmp.lt.s32.totalorder (!%p246_p3), %s646_s18, 1  ;;  %s657_s14 = smov (!%p246_p3), 96  }
   0x7   : > { %249 = sbr.rel (%p246_p3) target bundleno = 282 (0x11a), region = 32  ;;  %s658_s15 = smov (!%p246_p3), 64  }
   0xc   : > { %v353_v0 = vld [vmem:[%s750_s1 + $0x18] sm:$0xff]  ;;  %v352_v1 = vld [vmem:[%s750_s1 + $0x10] sm:$0xff]  ;;  %vm346_vm0 = vcmask 785408   ;;  %v351_v2 = vld [vmem:[%s750_s1 + $0x8] sm:$0xff]  ;;  %s760_s18 = smov (!%p302_p4, %s646_s18), 1  ;;  %v656_v3 = vmov 0.0  }
   0xd   : > { %370 = vmatpush.msra.mxu0 %v353_v0  ;;  %347 = vst.msk [vmem:[#allocation2] sm:$0xff] %vm346_vm0, %v656_v3  ;;  %v350_v4 = vld [vmem:[%s750_s1] sm:$0xff]  ;;  %s597_s30 = sshll.u32 %s760_s18, 3  ;;  %vm354_vm1 = vcmask 261120  }
   0xe   : > { %s308_s8 = scalar_lea.vmem %s749_s0, %s597_s30  ;;  %v631_v9 = vld [vmem:[%s751_s2] ss:$0 sm:$0xff]  ;;  %s327_s13 = scalar_lea.vmem %s752_s3, %s597_s30 }
   0xf   : > { %371 = vmatpush.msra.mxu0 %v352_v1  ;;  %v349_v5 = vld [vmem:[%s308_s8] sm:$0xff]  ;;  %s334_s18 = scalar_lea.vmem %s753_s4, %s597_s30  ;;  %s341_s24 = scalar_lea.vmem %s754_s5, %s597_s30 }
  0x11   : > { %372 = vmatpush.msra.mxu0 %v351_v2 }
  0x13   : > { %373 = vmatpush.msra.mxu0 %v350_v4 }
  0x14   : > { %601 = vmatmul.msk.f32.vlgmr.msra.gmra.mxu0 %vm354_vm1, %v349_v5  ;;  %v348_v6 = vld [vmem:[#allocation2] sm:$0xff] }
  0x91   : > { %v375_v7 = vpop.f32.mrf.mxu0 }
  0x92   : > { %v378_v8 = vadd.f32 %v375_v7, %v348_v6 }
  0x94   : > { %380 = vst.msk [vmem:[#allocation2] sm:$0xff] %vm346_vm0, %v378_v8 }
  0x9b   : > { %v384_v10 = vld [vmem:[#allocation2] sm:$0xff] }
  0x9c   : > { %v389_v11 = vadd.f32 %v631_v9, %v384_v10 }
  0x9e   : > { %392 = vrot.lane.b32.xlu0 %v389_v11, %s657_s14  ;;  %390 = vst.msk [vmem:[%s327_s13] sm:$0xff] %vm354_vm1, %v389_v11 }
  0xa6   : > { %396 = vrot.lane.b32.xlu0 %v389_v11, %s658_s15 }
 0x110   : > { %v393_v12 = vpop.permute.xlu0 %392 }
 0x111   : > { %395 = vst.msk [vmem:[%s334_s18] sm:$0xff] %vm354_vm1, %v393_v12 }
 0x118   : > { %v397_v13 = vpop.permute.xlu0 %396 }
 0x119   : > { %399 = vst.msk [vmem:[%s341_s24] sm:$0xff] %vm354_vm1, %v397_v13 }
 0x11a PF: > { %s16_s20 = sadd.s32 1, %s654_s20   ;;  %s755_s18 = smov %s650_s19 }
 0x11b   : > { %p13_p5 = scmp.ge.s32.totalorder %s16_s20, 4   ;;  %s756_s19 = smov %s758_s21 }
 0x11d   :  { %15 = sbr.rel (!%p13_p5) target bundleno = 2 (0x2), region = 100 }

// kernel: decoder_forward.26
= control target key start
LH: loop header
LB: loop body
LE: loop exit
PB: predicated region body
PF: predicated region fallthrough
CT: control target
= control target key end

     0   :  { %s670_s21 = smov 0   ;;  %s672_s22 = smov 0   ;;  %s749_s0 = inlined_call_operand.vmem [shape: f32[16,64], index: 0, kind: input, shape index: {}]   ;;  %s750_s1 = inlined_call_operand.vmem [shape: f32[64,32], index: 1, kind: input, shape index: {}]   ;;  %s751_s2 = inlined_call_operand.vmem [shape: f32[1,32], index: 2, kind: input, shape index: {}]   ;;  %s752_s3 = inlined_call_operand.vmem [shape: f32[16,32], index: 3, kind: input, shape index: {}]   ;;  %s753_s4 = inlined_call_operand.vmem [shape: f32[1,32], index: 4, kind: input, shape index: {}]   ;;  %s754_s5 = inlined_call_operand.vmem [shape: f32[1,32], index: 5, kind: input, shape index: {}]   ;;  %s755_s6 = inlined_call_operand.vmem [shape: f32[16,32], index: 6, kind: output, shape index: {}]  }
   0x1   :  { %s674_s23 = smov 0  }
   0x2 LB: > { %s35_s24 = sadd.s32 1, %s627_s22  ;;  %p569_p0 = scmp.ge.s32.totalorder %s631_s23, 1  ;;  %s631_s23 = sphi %s674_s23, %s16_s23   ;;  %s627_s22 = sphi %s672_s22, %s757_s22   ;;  %s623_s21 = sphi %s670_s21, %s756_s21  }
   0x3   : > { %p37_p1 = scmp.ge.s32.totalorder %s35_s24, 2  ;;  %p270_p2 = scmp.lt.s32.totalorder %s631_s23, 3 }
   0x5   : > { %s759_s24 = smov (%p37_p1, %s35_s24), 0  ;;  %p271_p3 = pnand %p569_p0, %p270_p2 }
   0x6   : > { %p319_p4 = scmp.lt.s32.totalorder (!%p271_p3), %s623_s21, 1 }
   0x7   : > { %274 = sbr.rel (%p271_p3) target bundleno = 437 (0x1b5), region = 44 }
   0xc   : > { %v364_v0 = vld [vmem:[%s750_s1 + $0x38] sm:$0xff]  ;;  %v363_v1 = vld [vmem:[%s750_s1 + $0x30] sm:$0xff]  ;;  %vm353_vm0 = vcmask 261120   ;;  %v362_v2 = vld [vmem:[%s750_s1 + $0x28] sm:$0xff]  ;;  %v633_v3 = vmov 0.0   ;;  %s761_s21 = smov (!%p319_p4, %s623_s21), 1 }
   0xd   : > { %377 = vmatpush.msra.mxu0 %v364_v0  ;;  %354 = vst.msk [vmem:[#allocation2] sm:$0xff] %vm353_vm0, %v633_v3  ;;  %v361_v4 = vld [vmem:[%s750_s1 + $0x20] sm:$0xff]  ;;  %v360_v5 = vld [vmem:[%s750_s1 + $0x18] sm:$0xff]  ;;  %s704_s11 = sshll.u32 %s761_s21, 3  ;;  %v359_v6 = vld [vmem:[%s750_s1 + $0x10] sm:$0xff]  ;;  %vm365_vm1 = vcmask 523264  }
   0xe   : > { %v358_v7 = vld [vmem:[%s750_s1 + $0x8] sm:$0xff]  ;;  %s325_s18 = scalar_lea.vmem %s749_s0, %s704_s11  ;;  %v357_v8 = vld [vmem:[%s750_s1] sm:$0xff]  ;;  %s341_s26 = scalar_lea.vmem %s752_s3, %s704_s11  ;;  %v634_v19 = vmov 32.0  }
   0xf   : > { %378 = vmatpush.msra.mxu0 %v363_v1  ;;  %v356_v9 = vld [vmem:[%s325_s18] sm:$0xff]  ;;  %605 = vrcp.f32 %v634_v19  ;;  %s348_s12 = scalar_lea.vmem %s755_s6, %s704_s11 }
  0x10   : > { %v602_v13 = vld [vmem:[%s751_s2] ss:$0 sm:$0xff] }
  0x11   : > { %379 = vmatpush.msra.mxu0 %v362_v2  ;;  %v401_v15 = vld [vmem:[%s341_s26] sm:$0xff] }
  0x12   : > { %v603_v40 = vld [vmem:[%s753_s4] ss:$0 sm:$0xff] }
  0x13   : > { %380 = vmatpush.msra.mxu0 %v361_v4  ;;  %v604_v42 = vld [vmem:[%s754_s5] ss:$0 sm:$0xff] }
  0x14   : > { %v355_v10 = vld [vmem:[#allocation2] sm:$0xff] }
  0x15   : > { %381 = vmatpush.msra.mxu0 %v360_v5  ;;  %v606_v20 = vpop.eup %605 }
  0x16   : > { %v407_v21 = vmul.f32 32.0, %v606_v20  ;;  %vm411_vm2 = vweird.f32 %v606_v20 }
  0x17   : > { %382 = vmatpush.msra.mxu0 %v359_v6 }
  0x18   : > { %v408_v22 = vsub.f32 1.0, %v407_v21 }
  0x19   : > { %383 = vmatpush.msra.mxu0 %v358_v7 }
  0x1a   : > { %v409_v23 = vmul.f32 %v606_v20, %v408_v22 }
  0x1b   : > { %384 = vmatpush.msra.mxu0 %v357_v8 }
  0x1c   : > { %573 = vmatmul.msk.f32.vlgmr.msra.gmra.mxu0 %vm365_vm1, %v356_v9  ;;  %v410_v24 = vadd.f32 %v606_v20, %v409_v23 }
  0x1e   : > { %v412_v25 = vsel %vm411_vm2, %v606_v20, %v410_v24 }
  0x99   : > { %v386_v11 = vpop.f32.mrf.mxu0 }
  0x9a   : > { %v389_v12 = vadd.f32 %v386_v11, %v355_v10 }
  0x9c   : > { %391 = vst.msk [vmem:[#allocation2] sm:$0xff] %vm353_vm0, %v389_v12 }
  0xa3   : > { %v395_v14 = vld [vmem:[#allocation2] sm:$0xff] }
  0xa4   : > { %v400_v16 = vadd.f32 %v602_v13, %v395_v14 }
  0xa6   : > { %v402_v17 = vadd.f32 %v401_v15, %v400_v16 }
  0xa8   : > { %v403_v18 = vsel %vm353_vm0, %v402_v17, 0.0 }
  0xa9   : > { %404 = vadd.xlane.f32.xlu0 %v403_v18 }
 0x11c   : > { %v405_v26 = vpop.xlane.xlu0 %404 }
 0x11d   : > { %v413_v27 = vmul.f32 %v412_v25, %v405_v26 }
 0x11f   : > { %v414_v28 = vsub.f32 %v402_v17, %v413_v27 }
 0x121   : > { %v415_v29 = vmul.f32 %v414_v28, %v414_v28 }
 0x123   : > { %v416_v30 = vsel %vm353_vm0, %v415_v29, 0.0 }
 0x124   : > { %417 = vadd.xlane.f32.xlu0 %v416_v30 }
 0x197   : > { %v418_v31 = vpop.xlane.xlu0 %417 }
 0x198   : > { %v419_v32 = vmul.f32 %v418_v31, %v412_v25 }
 0x19a   : > { %v420_v33 = vadd.f32 1e-05, %v419_v32 }
 0x19c   : > { %607 = vrsqrt.f32 %v420_v33  ;;  %vm427_vm4 = vweird.f32 %v420_v33 }
 0x1a2   : > { %v608_v34 = vpop.eup %607 }
 0x1a3   : > { %v422_v35 = vmul.f32 %v608_v34, %v420_v33  ;;  %vm428_vm3 = vweird.f32 %v608_v34 }
 0x1a4   : > { %vm429_vm5 = vmor %vm427_vm4, %vm428_vm3 }
 0x1a5   : > { %v423_v36 = vmul.f32 %v608_v34, %v422_v35 }
 0x1a7   : > { %v424_v37 = vmul.f32 0.5, %v423_v36 }
 0x1a9   : > { %v425_v38 = vsub.f32 1.5, %v424_v37 }
 0x1ab   : > { %v426_v39 = vmul.f32 %v608_v34, %v425_v38 }
 0x1ad   : > { %v430_v41 = vsel %vm429_vm5, %v608_v34, %v426_v39 }
 0x1ae   : > { %v431_v43 = vmul.f32 %v430_v41, %v414_v28 }
 0x1b0   : > { %v436_v44 = vmul.f32 %v603_v40, %v431_v43 }
 0x1b2   : > { %v441_v45 = vadd.f32 %v604_v42, %v436_v44 }
 0x1b4   : > { %442 = vst.msk [vmem:[%s348_s12] sm:$0xff] %vm353_vm0, %v441_v45 }
 0x1b5 PF: > { %s16_s23 = sadd.s32 1, %s631_s23   ;;  %s756_s21 = smov %s627_s22 }
 0x1b6   : > { %p13_p5 = scmp.ge.s32.totalorder %s16_s23, 4   ;;  %s757_s22 = smov %s759_s24 }
 0x1b8   :  { %15 = sbr.rel (!%p13_p5) target bundleno = 2 (0x2), region = 91 }

// kernel: decoder_forward.29
= control target key start
LH: loop header
LB: loop body
LE: loop exit
PB: predicated region body
PF: predicated region fallthrough
CT: control target
= control target key end

     0   :  { %s665_s21 = smov 0   ;;  %s667_s22 = smov 0   ;;  %s733_s0 = inlined_call_operand.vmem [shape: f32[16,32], index: 0, kind: input, shape index: {}]   ;;  %s734_s1 = inlined_call_operand.vmem [shape: f32[32,32], index: 1, kind: input, shape index: {}]   ;;  %s735_s2 = inlined_call_operand.vmem [shape: f32[1,32], index: 2, kind: input, shape index: {}]   ;;  %s736_s3 = inlined_call_operand.vmem [shape: f32[16,32], index: 3, kind: input, shape index: {}]   ;;  %s737_s4 = inlined_call_operand.vmem [shape: f32[1,32], index: 4, kind: input, shape index: {}]   ;;  %s738_s5 = inlined_call_operand.vmem [shape: f32[1,32], index: 5, kind: input, shape index: {}]   ;;  %s739_s6 = inlined_call_operand.vmem [shape: f32[16,32], index: 6, kind: output, shape index: {}]  }
   0x1   :  { %s669_s23 = smov 0  }
   0x2 LB: > { %s35_s24 = sadd.s32 1, %s622_s22  ;;  %p564_p0 = scmp.ge.s32.totalorder %s626_s23, 1  ;;  %s626_s23 = sphi %s669_s23, %s16_s23   ;;  %s622_s22 = sphi %s667_s22, %s741_s22   ;;  %s618_s21 = sphi %s665_s21, %s740_s21  }
   0x3   : > { %p37_p1 = scmp.ge.s32.totalorder %s35_s24, 2  ;;  %p270_p2 = scmp.lt.s32.totalorder %s626_s23, 3 }
   0x5   : > { %s743_s24 = smov (%p37_p1, %s35_s24), 0  ;;  %p271_p3 = pnand %p564_p0, %p270_p2 }
   0x6   : > { %p319_p4 = scmp.lt.s32.totalorder (!%p271_p3), %s618_s21, 1 }
   0x7   : > { %274 = sbr.rel (%p271_p3) target bundleno = 429 (0x1ad), region = 44 }
   0xc   : > { %v360_v0 = vld [vmem:[%s734_s1 + $0x18] sm:$0xff]  ;;  %v359_v1 = vld [vmem:[%s734_s1 + $0x10] sm:$0xff]  ;;  %vm353_vm0 = vcmask 261120   ;;  %v628_v2 = vmov 0.0   ;;  %v358_v3 = vld [vmem:[%s734_s1 + $0x8] sm:$0xff]  ;;  %s745_s21 = smov (!%p319_p4, %s618_s21), 1 }
   0xd   : > { %377 = vmatpush.msra.mxu0 %v360_v0  ;;  %354 = vst.msk [vmem:[#allocation2] sm:$0xff] %vm353_vm0, %v628_v2  ;;  %v357_v4 = vld [vmem:[%s734_s1] sm:$0xff]  ;;  %s696_s9 = sshll.u32 %s745_s21, 3  ;;  %v629_v15 = vmov 32.0  }
   0xe   : > { %s325_s12 = scalar_lea.vmem %s733_s0, %s696_s9  ;;  %s341_s15 = scalar_lea.vmem %s736_s3, %s696_s9  ;;  %v597_v9 = vld [vmem:[%s735_s2] ss:$0 sm:$0xff]  ;;  %600 = vrcp.f32 %v629_v15 }
   0xf   : > { %378 = vmatpush.msra.mxu0 %v359_v1  ;;  %v356_v5 = vld [vmem:[%s325_s12] sm:$0xff]  ;;  %s348_s27 = scalar_lea.vmem %s739_s6, %s696_s9 }
  0x10   : > { %v396_v11 = vld [vmem:[%s341_s15] sm:$0xff] }
  0x11   : > { %379 = vmatpush.msra.mxu0 %v358_v3  ;;  %v598_v36 = vld [vmem:[%s737_s4] ss:$0 sm:$0xff] }
  0x12   : > { %v599_v38 = vld [vmem:[%s738_s5] ss:$0 sm:$0xff] }
  0x13   : > { %380 = vmatpush.msra.mxu0 %v357_v4 }
  0x14   : > { %568 = vmatmul.msk.f32.vlgmr.msra.gmra.mxu0 %vm353_vm0, %v356_v5  ;;  %v355_v6 = vld [vmem:[#allocation2] sm:$0xff]  ;;  %v601_v16 = vpop.eup %600 }
  0x15   : > { %v402_v17 = vmul.f32 32.0, %v601_v16  ;;  %vm406_vm1 = vweird.f32 %v601_v16 }
  0x17   : > { %v403_v18 = vsub.f32 1.0, %v402_v17 }
  0x19   : > { %v404_v19 = vmul.f32 %v601_v16, %v403_v18 }
  0x1b   : > { %v405_v20 = vadd.f32 %v601_v16, %v404_v19 }
  0x1d   : > { %v407_v21 = vsel %vm406_vm1, %v601_v16, %v405_v20 }
  0x91   : > { %v382_v7 = vpop.f32.mrf.mxu0 }
  0x92   : > { %v385_v8 = vadd.f32 %v382_v7, %v355_v6 }
  0x94   : > { %386 = vst.msk [vmem:[#allocation2] sm:$0xff] %vm353_vm0, %v385_v8 }
  0x9b   : > { %v390_v10 = vld [vmem:[#allocation2] sm:$0xff] }
  0x9c   : > { %v395_v12 = vadd.f32 %v597_v9, %v390_v10 }
  0x9e   : > { %v397_v13 = vadd.f32 %v396_v11, %v395_v12 }
  0xa0   : > { %v398_v14 = vsel %vm353_vm0, %v397_v13, 0.0 }
  0xa1   : > { %399 = vadd.xlane.f32.xlu0 %v398_v14 }
 0x114   : > { %v400_v22 = vpop.xlane.xlu0 %399 }
 0x115   : > { %v408_v23 = vmul.f32 %v407_v21, %v400_v22 }
 0x117   : > { %v409_v24 = vsub.f32 %v397_v13, %v408_v23 }
 0x119   : > { %v410_v25 = vmul.f32 %v409_v24, %v409_v24 }
 0x11b   : > { %v411_v26 = vsel %vm353_vm0, %v410_v25, 0.0 }
 0x11c   : > { %412 = vadd.xlane.f32.xlu0 %v411_v26 }
 0x18f   : > { %v413_v27 = vpop.xlane.xlu0 %412 }
 0x190   : > { %v414_v28 = vmul.f32 %v413_v27, %v407_v21 }
 0x192   : > { %v415_v29 = vadd.f32 1e-05, %v414_v28 }
 0x194   : > { %602 = vrsqrt.f32 %v415_v29  ;;  %vm422_vm3 = vweird.f32 %v415_v29 }
 0x19a   : > { %v603_v30 = vpop.eup %602 }
 0x19b   : > { %v417_v31 = vmul.f32 %v603_v30, %v415_v29  ;;  %vm423_vm2 = vweird.f32 %v603_v30 }
 0x19c   : > { %vm424_vm4 = vmor %vm422_vm3, %vm423_vm2 }
 0x19d   : > { %v418_v32 = vmul.f32 %v603_v30, %v417_v31 }
 0x19f   : > { %v419_v33 = vmul.f32 0.5, %v418_v32 }
 0x1a1   : > { %v420_v34 = vsub.f32 1.5, %v419_v33 }
 0x1a3   : > { %v421_v35 = vmul.f32 %v603_v30, %v420_v34 }
 0x1a5   : > { %v425_v37 = vsel %vm424_vm4, %v603_v30, %v421_v35 }
 0x1a6   : > { %v426_v39 = vmul.f32 %v425_v37, %v409_v24 }
 0x1a8   : > { %v431_v40 = vmul.f32 %v598_v36, %v426_v39 }
 0x1aa   : > { %v436_v41 = vadd.f32 %v599_v38, %v431_v40 }
 0x1ac   : > { %437 = vst.msk [vmem:[%s348_s27] sm:$0xff] %vm353_vm0, %v436_v41 }
 0x1ad PF: > { %s16_s23 = sadd.s32 1, %s626_s23   ;;  %s740_s21 = smov %s622_s22 }
 0x1ae   : > { %p13_p5 = scmp.ge.s32.totalorder %s16_s23, 4   ;;  %s741_s22 = smov %s743_s24 }
 0x1b0   :  { %15 = sbr.rel (!%p13_p5) target bundleno = 2 (0x2), region = 91 }

// kernel: decoder_forward.30
= control target key start
LH: loop header
LB: loop body
LE: loop exit
PB: predicated region body
PF: predicated region fallthrough
CT: control target
= control target key end

     0   :  { %s490_s12 = smov 0   ;;  %s492_s13 = smov 0   ;;  %s542_s0 = inlined_call_operand.vmem [shape: f32[16,32], index: 0, kind: input, shape index: {}]   ;;  %s543_s1 = inlined_call_operand.vmem [shape: f32[32,32], index: 1, kind: input, shape index: {}]   ;;  %s544_s2 = inlined_call_operand.vmem [shape: f32[1,32], index: 2, kind: input, shape index: {}]   ;;  %s545_s3 = inlined_call_operand.vmem [shape: f32[16,32], index: 3, kind: output, shape index: {}]  }
   0x1   :  { %s494_s14 = smov 0  }
   0x2 LB: > { %s32_s15 = sadd.s32 1, %s463_s13  ;;  %p413_p0 = scmp.ge.s32.totalorder %s467_s14, 1  ;;  %s467_s14 = sphi %s494_s14, %s13_s14   ;;  %s463_s13 = sphi %s492_s13, %s547_s13   ;;  %s459_s12 = sphi %s490_s12, %s546_s12  }
   0x3   : > { %p34_p1 = scmp.ge.s32.totalorder %s32_s15, 2  ;;  %p186_p2 = scmp.lt.s32.totalorder %s467_s14, 3 }
   0x5   : > { %s549_s15 = smov (%p34_p1, %s32_s15), 0  ;;  %p187_p3 = pnand %p413_p0, %p186_p2 }
   0x6   : > { %p225_p4 = scmp.lt.s32.totalorder (!%p187_p3), %s459_s12, 1 }
   0x7   : > { %190 = sbr.rel (%p187_p3) target bundleno = 159 (0x9f), region = 32 }
   0xc   : > { %v262_v0 = vld [vmem:[%s543_s1 + $0x18] sm:$0xff]  ;;  %v261_v1 = vld [vmem:[%s543_s1 + $0x10] sm:$0xff]  ;;  %vm255_vm0 = vcmask 261120   ;;  %v469_v2 = vmov 0.0   ;;  %v260_v3 = vld [vmem:[%s543_s1 + $0x8] sm:$0xff]  ;;  %s551_s12 = smov (!%p225_p4, %s459_s12), 1 }
   0xd   : > { %279 = vmatpush.msra.mxu0 %v262_v0  ;;  %256 = vst.msk [vmem:[#allocation2] sm:$0xff] %vm255_vm0, %v469_v2  ;;  %v259_v4 = vld [vmem:[%s543_s1] sm:$0xff]  ;;  %s414_s24 = sshll.u32 %s551_s12, 3 }
   0xe   : > { %s231_s27 = scalar_lea.vmem %s542_s0, %s414_s24  ;;  %v444_v9 = vld [vmem:[%s544_s2] ss:$0 sm:$0xff]  ;;  %s250_s5 = scalar_lea.vmem %s545_s3, %s414_s24 }
   0xf   : > { %280 = vmatpush.msra.mxu0 %v261_v1  ;;  %v258_v5 = vld [vmem:[%s231_s27] sm:$0xff] }
  0x11   : > { %281 = vmatpush.msra.mxu0 %v260_v3 }
  0x13   : > { %282 = vmatpush.msra.mxu0 %v259_v4 }
  0x14   : > { %416 = vmatmul.msk.f32.vlgmr.msra.gmra.mxu0 %vm255_vm0, %v258_v5  ;;  %v257_v6 = vld [vmem:[#allocation2] sm:$0xff] }
  0x91   : > { %v284_v7 = vpop.f32.mrf.mxu0 }
  0x92   : > { %v287_v8 = vadd.f32 %v284_v7, %v257_v6 }
  0x94   : > { %288 = vst.msk [vmem:[#allocation2] sm:$0xff] %vm255_vm0, %v287_v8 }
  0x9b   : > { %v292_v10 = vld [vmem:[#allocation2] sm:$0xff] }
  0x9c   : > { %v297_v11 = vadd.f32 %v444_v9, %v292_v10 }
  0x9e   : > { %298 = vst.msk [vmem:[%s250_s5] sm:$0xff] %vm255_vm0, %v297_v11 }
  0x9f PF: > { %s13_s14 = sadd.s32 1, %s467_s14   ;;  %s546_s12 = smov %s463_s13 }
  0xa0   : > { %p10_p5 = scmp.ge.s32.totalorder %s13_s14, 4   ;;  %s547_s13 = smov %s549_s15 }
  0xa2   :  { %12 = sbr.rel (!%p10_p5) target bundleno = 2 (0x2), region = 76 }

// kernel: decoder_forward.34
= control target key start
LH: loop header
LB: loop body
LE: loop exit
PB: predicated region body
PF: predicated region fallthrough
CT: control target
= control target key end

     0   :  { %s502_s12 = smov 0   ;;  %s504_s13 = smov 0   ;;  %s556_s0 = inlined_call_operand.vmem [shape: f32[16,32], index: 0, kind: input, shape index: {}]   ;;  %s557_s1 = inlined_call_operand.vmem [shape: f32[32,64], index: 1, kind: input, shape index: {}]   ;;  %s558_s2 = inlined_call_operand.vmem [shape: f32[1,64], index: 2, kind: input, shape index: {}]   ;;  %s559_s3 = inlined_call_operand.vmem [shape: f32[16,64], index: 3, kind: output, shape index: {}]  }
   0x1   :  { %s506_s14 = smov 0  }
   0x2 LB: > { %s32_s15 = sadd.s32 1, %s475_s13  ;;  %p423_p0 = scmp.ge.s32.totalorder %s479_s14, 1  ;;  %s479_s14 = sphi %s506_s14, %s13_s14   ;;  %s475_s13 = sphi %s504_s13, %s561_s13   ;;  %s471_s12 = sphi %s502_s12, %s560_s12  }
   0x3   : > { %p34_p1 = scmp.ge.s32.totalorder %s32_s15, 2  ;;  %p186_p2 = scmp.lt.s32.totalorder %s479_s14, 3 }
   0x5   : > { %s563_s15 = smov (%p34_p1, %s32_s15), 0  ;;  %p187_p3 = pnand %p423_p0, %p186_p2 }
   0x6   : > { %p225_p4 = scmp.lt.s32.totalorder (!%p187_p3), %s471_s12, 1 }
   0x7   : > { %190 = sbr.rel (%p187_p3) target bundleno = 180 (0xb4), region = 32 }
   0xc   : > { %v262_v0 = vld [vmem:[%s557_s1 + $0x18] sm:$0xff]  ;;  %v261_v1 = vld [vmem:[%s557_s1 + $0x10] sm:$0xff]  ;;  %vm255_vm0 = vcmask 523264   ;;  %v260_v2 = vld [vmem:[%s557_s1 + $0x8] sm:$0xff]  ;;  %s565_s12 = smov (!%p225_p4, %s471_s12), 1  ;;  %v481_v3 = vmov 0.0  }
   0xd   : > { %279 = vmatpush.msra.mxu0 %v262_v0  ;;  %256 = vst.msk [vmem:[#allocation2] sm:$0xff] %vm255_vm0, %v481_v3  ;;  %v259_v4 = vld [vmem:[%s557_s1] sm:$0xff]  ;;  %s424_s24 = sshll.u32 %s565_s12, 3  ;;  %vm263_vm1 = vcmask 261120  }
   0xe   : > { %s231_s27 = scalar_lea.vmem %s556_s0, %s424_s24  ;;  %v454_v9 = vld [vmem:[%s558_s2] ss:$0 sm:$0xff]  ;;  %s250_s5 = scalar_lea.vmem %s559_s3, %s424_s24 }
   0xf   : > { %280 = vmatpush.msra.mxu0 %v261_v1  ;;  %v258_v5 = vld [vmem:[%s231_s27] sm:$0xff] }
  0x11   : > { %281 = vmatpush.msra.mxu0 %v260_v2 }
  0x13   : > { %282 = vmatpush.msra.mxu0 %v259_v4 }
  0x14   : > { %426 = vmatmul.msk.f32.vlgmr.msra.gmra.mxu0 %vm263_vm1, %v258_v5  ;;  %v257_v6 = vld [vmem:[#allocation2] sm:$0xff] }
  0x91   : > { %v284_v7 = vpop.f32.mrf.mxu0 }
  0x92   : > { %v287_v8 = vadd.f32 %v284_v7, %v257_v6 }
  0x94   : > { %289 = vst.msk [vmem:[#allocation2] sm:$0xff] %vm255_vm0, %v287_v8 }
  0x9b   : > { %v293_v10 = vld [vmem:[#allocation2] sm:$0xff] }
  0x9c   : > { %v298_v11 = vadd.f32 %v454_v9, %v293_v10 }
  0x9e   : > { %v300_v12 = vmul.f32 0.044715, %v298_v11  ;;  %v299_v18 = vmul.f32 0.5, %v298_v11 }
  0xa0   : > { %v301_v13 = vmul.f32 %v300_v12, %v298_v11 }
  0xa2   : > { %v302_v14 = vmul.f32 %v301_v13, %v298_v11 }
  0xa4   : > { %v303_v15 = vadd.f32 %v302_v14, %v298_v11 }
  0xa6   : > { %v304_v16 = vmul.f32 0.7978846, %v303_v15 }
  0xa8   : > { %455 = vtanh.f32 %v304_v16 }
  0xae   : > { %v456_v17 = vpop.eup %455 }
  0xaf   : > { %v306_v19 = vadd.f32 1.0, %v456_v17 }
  0xb1   : > { %v307_v20 = vmul.f32 %v306_v19, %v299_v18 }
  0xb3   : > { %308 = vst.msk [vmem:[%s250_s5] sm:$0xff] %vm255_vm0, %v307_v20 }
  0xb4 PF: > { %s13_s14 = sadd.s32 1, %s479_s14   ;;  %s560_s12 = smov %s475_s13 }
  0xb5   : > { %p10_p5 = scmp.ge.s32.totalorder %s13_s14, 4   ;;  %s561_s13 = smov %s563_s15 }
  0xb7   :  { %12 = sbr.rel (!%p10_p5) target bundleno = 2 (0x2), region = 76 }

// kernel: decoder_forward.35
= control target key start
LH: loop header
LB: loop body
LE: loop exit
PB: predicated region body
PF: predicated region fallthrough
CT: control target
= control target key end

     0   :  { %11 = vsyncpa [#allocation4], 0  ;;  %s904_s0 = inlined_call_operand.vmem [shape: f32[16,64], index: 0, kind: input, shape index: {}]   ;;  %s905_s1 = inlined_call_operand.vmem [shape: f32[64,32], index: 1, kind: input, shape index: {}]   ;;  %s906_s2 = inlined_call_operand.vmem [shape: f32[1,32], index: 2, kind: input, shape index: {}]   ;;  %s907_s3 = inlined_call_operand.vmem [shape: f32[16,32], index: 3, kind: input, shape index: {}]   ;;  %s908_s4 = inlined_call_operand.vmem [shape: f32[1,32], index: 4, kind: input, shape index: {}]   ;;  %s909_s5 = inlined_call_operand.vmem [shape: f32[1,32], index: 5, kind: input, shape index: {}]   ;;  %s910_s6 = inlined_call_operand.hbm [shape: f32[16,32], index: 6, kind: output, shape index: {}]  }
   0x1   :  { %13 = vsyncpa [#allocation4 + $0x1], 0  ;;  %s766_s21 = smov 0   ;;  %s768_s22 = smov 0  }
   0x2   :  { %s770_s23 = smov 0   ;;  %s772_s24 = smov 0  }
   0x3   :  { %s774_s25 = smov 0   ;;  %s776_s26 = smov 0  }
   0x4 LB: > { %s570_s27 = sadd.s32 4294967295, %s727_s26   ;;  %s571_s28 = sadd.s32 4294967294, %s727_s26   ;;  %s727_s26 = sphi %s776_s26, %s19_s26   ;;  %s723_s25 = sphi %s774_s25, %s917_s25   ;;  %s719_s24 = sphi %s772_s24, %s916_s24   ;;  %s715_s23 = sphi %s770_s23, %s915_s23   ;;  %s711_s22 = sphi %s768_s22, %s914_s22   ;;  %s707_s21 = sphi %s766_s21, %s913_s21  }
   0x5   : > { %s38_s29 = sadd.s32 1, %s723_s25  ;;  %s197_s30 = sadd.s32 1, %s715_s23 }
   0x6   : > { %p40_p0 = scmp.ge.s32.totalorder %s38_s29, 2  ;;  %p207_p1 = scmp.ne.s32.totalorder %s715_s23, %s711_s22 }
   0x7   : > { %p208_p2 = scmp.eq.s32.totalorder %s570_s27, 1  ;;  %p213_p3 = scmp.ne.s32.totalorder %s711_s22, %s707_s21 }
   0x8   : > { %s919_s29 = smov (%p40_p0, %s38_s29), 0  ;;  %p214_p5 = scmp.eq.s32.totalorder %s571_s28, 1 }
   0x9   : > { %p806_p4 = por %p208_p2, %p207_p1  ;;  %s192_s8 = ssub.s32 %s723_s25, %s919_s29 }
   0xa   : > { %p576_p6 = scmp.ge.s32.totalorder %s727_s26, 1  ;;  %p195_p7 = scmp.eq.s32.totalorder %s192_s8, 0 }
   0xb   : > { %p813_p8 = por %p214_p5, %p213_p3  ;;  %p273_p9 = scmp.lt.s32.totalorder %s727_s26, 3 }
   0xc   : > { %s819_s10 = scalar_select %p195_p7, %s715_s23, %s197_s30  }
   0xd   : > { %p274_p10 = pnand %p576_p6, %p273_p9 }
   0xe   : > { %p320_p11 = scmp.lt.s32.totalorder (!%p274_p10), %s719_s24, 1  ;;  %s582_s11 = sshll.u32 (!%p274_p10), %s719_s24, 3 }
   0xf   : > { %277 = sbr.rel (%p274_p10) target bundleno = 447 (0x1bf), region = 44  ;;  %s449_s16 = scalar_lea.hbm (!%p274_p10), %s910_s6, %s582_s11 }
  0x14   : > { %v358_v0 = vld [vmem:[%s905_s1 + $0x38] sm:$0xff]  ;;  %v357_v1 = vld [vmem:[%s905_s1 + $0x30] sm:$0xff]  ;;  %vm347_vm0 = vcmask 261120   ;;  %v356_v2 = vld [vmem:[%s905_s1 + $0x28] sm:$0xff]  ;;  %v729_v3 = vmov 0.0   ;;  %s321_s17 = scalar_select %p320_p11, %s719_s24, 1 }
  0x15   : > { %371 = vmatpush.msra.mxu0 %v358_v0  ;;  %348 = vst.msk [vmem:[#allocation2] sm:$0xff] %vm347_vm0, %v729_v3  ;;  %v355_v4 = vld [vmem:[%s905_s1 + $0x20] sm:$0xff]  ;;  %v354_v5 = vld [vmem:[%s905_s1 + $0x18] sm:$0xff]  ;;  %v353_v6 = vld [vmem:[%s905_s1 + $0x10] sm:$0xff]  ;;  %vm359_vm1 = vcmask 523264   ;;  %v730_v19 = vmov 32.0  }
  0x16   : > { %s578_s28 = sshll.u32 %s321_s17, 3  ;;  %v352_v7 = vld [vmem:[%s905_s1 + $0x8] sm:$0xff]  ;;  %v351_v8 = vld [vmem:[%s905_s1] sm:$0xff]  ;;  %645 = vrcp.f32 %v730_v19 }
  0x17   : > { %372 = vmatpush.msra.mxu0 %v357_v1  ;;  %s326_s15 = scalar_lea.vmem %s904_s0, %s578_s28  ;;  %s342_s20 = scalar_lea.vmem %s907_s3, %s578_s28  ;;  %v642_v13 = vld [vmem:[%s906_s2] ss:$0 sm:$0xff] }
  0x18   : > { %v350_v9 = vld [vmem:[%s326_s15] sm:$0xff]  ;;  %s317_s28 = sand.u32 1, %s711_s22  }
  0x19   : > { %373 = vmatpush.msra.mxu0 %v356_v2  ;;  %v395_v15 = vld [vmem:[%s342_s20] sm:$0xff]  ;;  %s577_s8 = sshll.u32 %s317_s28, 3  ;;  %s453_s20 = sshll.u32 %s449_s16, 4  ;;  %s454_s20 = int_to_ptr.hbm [resolvable:$true] %s453_s20 }
  0x1a   : > { %v643_v40 = vld [vmem:[%s908_s4] ss:$0 sm:$0xff]  ;;  %s319_s19 = scalar_lea.vmem [#allocation3], %s577_s8  ;;  %s438_s27 = scalar_lea.sflag [#allocation4], %s317_s28 }
  0x1b   : > { %374 = vmatpush.msra.mxu0 %v355_v4  ;;  %v644_v43 = vld [vmem:[%s909_s5] ss:$0 sm:$0xff]  ;;  %s451_s24 = sshll.u32 %s319_s19, 4  ;;  %s663_s30 = sshra.s32 %s454_s20, 4  ;;  %s452_s24 = int_to_ptr.vmem [resolvable:$true] %s451_s24  ;;  %s664_s30 = int_to_ptr.hbm [resolvable:$true] %s663_s30 }
  0x1c   : > { %v349_v10 = vld [vmem:[#allocation2] sm:$0xff]  ;;  %v646_v20 = vpop.eup %645  ;;  %s665_s11 = scalar_lea.hbm %s664_s30, 8  ;;  %s669_s8 = scalar_lea.hbm %s910_s6, 16 }
  0x1d   : > { %375 = vmatpush.msra.mxu0 %v354_v5  ;;  %v401_v21 = vmul.f32 32.0, %v646_v20  ;;  %vm405_vm2 = vweird.f32 %v646_v20  ;;  %p666_p12 = scmp.ne.s32.totalorder %s664_s30, %s665_s11  ;;  %p670_p1 = scmp.lt.s32.totalorder %s664_s30, %s910_s6 }
  0x1e   : > { %p671_p2 = scmp.lt.s32.totalorder %s669_s8, %s665_s11 }
  0x1f   : > { %376 = vmatpush.msra.mxu0 %v353_v6  ;;  %v402_v22 = vsub.f32 1.0, %v401_v21  ;;  %p667_p13 = pnand %p666_p12, %p806_p4 }
  0x20   : > { %p672_p3 = por %p671_p2, %p670_p1 }
  0x21   : > { %377 = vmatpush.msra.mxu0 %v352_v7  ;;  %v403_v23 = vmul.f32 %v646_v20, %v402_v22  ;;  %p668_p0 = pneg %p667_p13 }
  0x23   : > { %378 = vmatpush.msra.mxu0 %v351_v8  ;;  %v404_v24 = vadd.f32 %v646_v20, %v403_v23  ;;  %p673_p5 = pnand %p672_p3, %p668_p0 }
  0x24   : > { %580 = vmatmul.msk.f32.vlgmr.msra.gmra.mxu0 %vm359_vm1, %v350_v9 }
  0x25   : > { %v406_v25 = vsel %vm405_vm2, %v646_v20, %v404_v24 }
  0xa1   : > { %v380_v11 = vpop.f32.mrf.mxu0 }
  0xa2   : > { %v383_v12 = vadd.f32 %v380_v11, %v349_v10 }
  0xa4   : > { %385 = vst.msk [vmem:[#allocation2] sm:$0xff] %vm347_vm0, %v383_v12 }
  0xab   : > { %v389_v14 = vld [vmem:[#allocation2] sm:$0xff] }
  0xac   : > { %v394_v16 = vadd.f32 %v642_v13, %v389_v14 }
  0xae   : > { %v396_v17 = vadd.f32 %v395_v15, %v394_v16 }
  0xb0   : > { %v397_v18 = vsel %vm347_vm0, %v396_v17, 0.0 }
  0xb1   : > { %398 = vadd.xlane.f32.xlu0 %v397_v18 }
 0x124   : > { %v399_v26 = vpop.xlane.xlu0 %398 }
 0x125   : > { %v407_v27 = vmul.f32 %v406_v25, %v399_v26 }
 0x127   : > { %v408_v28 = vsub.f32 %v396_v17, %v407_v27 }
 0x129   : > { %v409_v29 = vmul.f32 %v408_v28, %v408_v28 }
 0x12b   : > { %v410_v30 = vsel %vm347_vm0, %v409_v29, 0.0 }
 0x12c   : > { %411 = vadd.xlane.f32.xlu0 %v410_v30 }
 0x19f   : > { %v412_v31 = vpop.xlane.xlu0 %411 }
 0x1a0   : > { %v413_v32 = vmul.f32 %v412_v31, %v406_v25 }
 0x1a2   : > { %v414_v33 = vadd.f32 1e-05, %v413_v32 }
 0x1a4   : > { %647 = vrsqrt.f32 %v414_v33  ;;  %vm421_vm4 = vweird.f32 %v414_v33 }
 0x1aa   : > { %v648_v34 = vpop.eup %647 }
 0x1ab   : > { %v416_v35 = vmul.f32 %v648_v34, %v414_v33  ;;  %vm422_vm3 = vweird.f32 %v648_v34 }
 0x1ac   : > { %vm423_vm5 = vmor %vm421_vm4, %vm422_vm3 }
 0x1ad   : > { %v417_v36 = vmul.f32 %v648_v34, %v416_v35 }
 0x1af   : > { %v418_v37 = vmul.f32 0.5, %v417_v36 }
 0x1b1   : > { %v419_v38 = vsub.f32 1.5, %v418_v37 }
 0x1b3   : > { %v420_v39 = vmul.f32 %v648_v34, %v419_v38 }
 0x1b5   : > { %v424_v41 = vsel %vm423_vm5, %v648_v34, %v420_v39 }
 0x1b6   : > { %v425_v42 = vmul.f32 %v424_v41, %v408_v28 }
 0x1b8   : > { %v430_v44 = vmul.f32 %v643_v40, %v425_v42 }
 0x1ba   : > { %v435_v45 = vadd.f32 %v644_v43, %v430_v44 }
 0x1bc   : > { %436 = vst.msk [vmem:[%s319_s19] sm:$0xff] %vm347_vm0, %v435_v45 }
 0x1bd   : > { %676 = shalt.err (!%p673_p5)
}
 0x1be   : > { %585 = dma.vmem_to_hbm [thread:$0]  (%p806_p4), %s452_s24, 128, %s454_s20, %s438_s27  }
 0x1bf PF: > { %p591_p6 = scmp.ge.s32.totalorder %s727_s26, 2  ;;  %s465_s28 = sand.u32 1, %s707_s21  }
 0x1c0   : > { %s466_s16 = scalar_lea.sflag [#allocation4], %s465_s28 }
 0x1c1   : > { %p588_p7 = pnand %p591_p6, %p813_p8 }
 0x1c3   : > { %p589_p9 = pneg %p588_p7 }
 0x1c5   : > { %702 = dma.done.wait (%p589_p9), %s466_s16, 128  }
 0x1c6   : > { %704 = vsyncadd (%p589_p9), %s466_s16, 4294967168  ;;  %s19_s26 = sadd.s32 1, %s727_s26   ;;  %s913_s21 = smov %s711_s22 }
 0x1c7   : > { %p16_p10 = scmp.ge.s32.totalorder %s19_s26, 4   ;;  %s914_s22 = smov %s715_s23 }
 0x1c8   : > { %s915_s23 = smov %s819_s10  ;;  %s916_s24 = smov %s723_s25 }
 0x1c9   : > { %s917_s25 = smov %s919_s29  ;;  %18 = sbr.rel (!%p16_p10) target bundleno = 4 (0x4), region = 96 }
 0x1ce   :  { %472 = vsyncpa [#allocation4], 1 }
 0x1cf   :  { %474 = vsyncpa [#allocation4 + $0x1], 1 }

</bundles_post_ra>
